<compile_context>
chip_gen: v5e
topology: v5e:2x2
jax: 0.10.0
libtpu: 0.0.40
codegen_flags: <defaults>
</compile_context>

<pallas_src>
import functools
import math

import jax
import jax.numpy as jnp
from jax.experimental import pallas as pl
from jax.experimental.pallas import tpu as pltpu


def _latent_quantizer_kernel(z_ref, v_ref, zq_ref, idx_ref, part_ref,
                             *, levels_per_dim):
    """One grid step: quantize a lane-dense (block_rows, W) tile.

    z_ref    : (TR, W) f32   folded latent values; lane j <-> latent dim j % D
    v_ref    : (L,  W) f32   codebook, tiled along lanes with period D
    zq_ref   : (TR, W) f32   quantized values (straight-through forward value)
    idx_ref  : (TR, W) int8  argmin level indices
    part_ref : (8,  W) f32   per-block partial sum of squared error
    """
    z = z_ref[...]                                   # (TR, W)
    v0 = v_ref[0:1, :]                               # (1, W)
    best_d = jnp.abs(z - v0)                         # (TR, W)
    best_i = jnp.zeros(z.shape, jnp.int32)
    best_v = v0                                      # (1, W); broadcasts in jnp.where

    # Small static loop over levels.  Strict '<' keeps the first occurrence,
    # matching torch.argmin tie-breaking.  The (1, W) codebook rows broadcast
    # implicitly; no explicit broadcast_to materialization per level.
    for l in range(1, levels_per_dim):
        vl = v_ref[l:l + 1, :]                       # (1, W)
        d = jnp.abs(z - vl)
        take = d < best_d
        best_d = jnp.where(take, d, best_d)
        best_i = jnp.where(take, l, best_i)
        best_v = jnp.where(take, vl, best_v)

    if best_v.shape != z.shape:                      # only if levels_per_dim == 1
        best_v = jnp.broadcast_to(best_v, z.shape)

    # Straight-through: z + (z_quant - z).detach() == z_quant numerically.
    zq_ref[...] = best_v.astype(zq_ref.dtype)
    idx_ref[...] = best_i.astype(jnp.int8)

    # Per-block squared-error partial: fold sublane groups down to an (8, W)
    # slab with plain VPU adds (no XLU reduce, no tiny masked stores per step);
    # the final reduce + mean happens once in the wrapper.
    diff = best_v - z
    sq = diff * diff
    acc = sq[0:8, :]
    for r in range(8, z.shape[0], 8):
        acc = acc + sq[r:r + 8, :]
    part_ref[...] = acc


def latent_quantizer_forward(z, values, *, block_rows=512, target_lanes=512):
    """Forward pass of LatentQuantizer.

    z      : (N, D) f32, D == latent_dim
    values : (L, D) f32 codebook (values_per_latent stacked along the dim axis)

    Returns (z_quant_for_recon, quant_idxs (int32), loss_quant, loss_commit).
    """
    N, D = z.shape
    L, D2 = values.shape
    assert D2 == D
    assert 1 <= L <= 127, "levels_per_dim must fit in int8 index storage"
    assert block_rows % 32 == 0, "block_rows must respect the int8 (32,128) tiling"

    total = N * D

    # Lane width: a multiple of both D and 128 (lane-dense, unmasked stores),
    # widened up to `target_lanes` when there is enough data to fill it.
    W = (D * 128) // math.gcd(D, 128)
    while W * 2 <= target_lanes and total >= W * 2 * 8:
        W *= 2

    rows = -(-total // W)
    rows_pad = -(-rows // block_rows) * block_rows
    num_blocks = rows_pad // block_rows

    # Pad with the level-0 codebook value of the matching latent dim: padded
    # elements quantize with exactly zero error, contribute nothing to the loss
    # sum, and are sliced off afterwards.
    flat = z.reshape(-1)
    pad_len = rows_pad * W - total
    if pad_len:
        pad = jnp.tile(values[0], pad_len // D)
        flat = jnp.concatenate([flat, pad])
    z_folded = flat.reshape(rows_pad, W)

    # Codebook tiled along lanes with period D; lane j <-> latent dim j % D.
    v_tiled = jnp.tile(values, (1, W // D))                  # (L, W)

    kernel = functools.partial(_latent_quantizer_kernel, levels_per_dim=int(L))

    out_shape = (
        jax.ShapeDtypeStruct((rows_pad, W), z.dtype),        # folded z_quant
        jax.ShapeDtypeStruct((rows_pad, W), jnp.int8),       # folded indices
        jax.ShapeDtypeStruct((num_blocks * 8, W), jnp.float32),  # loss partials
    )

    # VMEM per grid step: (f32 z + f32 zq + i8 idx + f32 partial) * 2 buffers
    # ≈ 4.5 MiB at the defaults — well inside v7x's 64 MiB / default scoped
    # limit, so no vmem_limit_bytes override is needed.
    zq_p, idx_p, partials = pl.pallas_call(
        kernel,
        out_shape=out_shape,
        grid=(num_blocks,),
        in_specs=[
            pl.BlockSpec((block_rows, W), lambda i: (i, 0)),   # z tile
            pl.BlockSpec((L, W), lambda i: (0, 0)),            # full codebook
        ],
        out_specs=(
            pl.BlockSpec((block_rows, W), lambda i: (i, 0)),
            pl.BlockSpec((block_rows, W), lambda i: (i, 0)),
            pl.BlockSpec((8, W), lambda i: (i, 0)),
        ),
        # No grid-resident accumulators -> the row axis is fully independent,
        # so it can be sharded across both TensorCores on v7x.
        compiler_params=pltpu.CompilerParams(
            dimension_semantics=("parallel",)),
    )(z_folded, v_tiled)

    zq = zq_p.reshape(-1)[:total].reshape(N, D)
    idx = idx_p.reshape(-1)[:total].reshape(N, D).astype(jnp.int32)
    mse = jnp.sum(partials, dtype=jnp.float32) / float(total)
    # loss_quant = mse(zhat.detach(), z); loss_commit = mse(z.detach(), zhat):
    # identical forward values (they differ only in which side gradients flow).
    return zq, idx, mse, mse


def make_codebook(latent_dim, levels_per_dim):
    """Deterministic init matching the PyTorch __init__ (laid out (L, D))."""
    if levels_per_dim % 2 == 1:
        vals = jnp.linspace(-0.5, 0.5, levels_per_dim, dtype=jnp.float32)
    else:
        vals = jnp.arange(levels_per_dim, dtype=jnp.float32) / levels_per_dim - 0.5
    return jnp.stack([vals] * latent_dim, axis=1).astype(jnp.float32)


def _reference_forward(z, values):
    # Pure-JAX reference mirroring the torch code.
    v_dl = values.T                                        # (D, L)
    dist = jnp.abs(z[:, :, None] - v_dl[None, :, :])       # (N, D, L)
    idx = jnp.argmin(dist, axis=-1)                        # (N, D)
    D = z.shape[1]
    zq = v_dl[jnp.arange(D)[None, :], idx]                 # (N, D)
    mse = jnp.mean((zq - z) ** 2)
    return zq, idx.astype(jnp.int32), mse, mse


if __name__ == "__main__":
    latent_dim = 4
    levels_per_dim = 5
    N = 16   # flattened batch rows (e.g. batch=2 x seq=8), trailing dim = latent_dim

    key = jax.random.PRNGKey(0)
    z = jax.random.normal(key, (N, latent_dim), dtype=jnp.float32)
    values = make_codebook(latent_dim, levels_per_dim)     # (L, D)

    zq, idx, loss_q, loss_c = latent_quantizer_forward(z, values)
    jax.block_until_ready((zq, idx, loss_q, loss_c))

    zq_r, idx_r, lq_r, lc_r = _reference_forward(z, values)
    assert zq.shape == (N, latent_dim) and idx.shape == (N, latent_dim)
    assert jnp.allclose(zq, zq_r, atol=1e-6), "z_quant mismatch"
    assert jnp.array_equal(idx, idx_r), "quant_idxs mismatch"
    assert jnp.allclose(loss_q, lq_r, atol=1e-6), "loss_quant mismatch"
    assert jnp.allclose(loss_c, lc_r, atol=1e-6), "loss_commit mismatch"

    print("KERNEL_OK")
</pallas_src>

<mosaic_0001>
module attributes {stable_mosaic.version = 11 : i64} {
  func.func @_latent_quantizer_kernel(%arg0: i32, %arg1: memref<512x128xf32, #tpu.memory_space<vmem>>, %arg2: memref<5x128xf32, #tpu.memory_space<vmem>>, %arg3: memref<512x128xf32, #tpu.memory_space<vmem>>, %arg4: memref<512x128xi8, #tpu.memory_space<vmem>>, %arg5: memref<8x128xf32, #tpu.memory_space<vmem>>) attributes {dimension_semantics = [#tpu.dimension_semantics<parallel>], iteration_bounds = array<i64: 1>, scalar_prefetch = 0 : i64, scratch_operands = 0 : i64, tpu.core_type = #tpu.core_type<tc>, window_params = [{transform_indices = @transform_0, window_bounds = array<i64: 512, 128>}, {pipeline_mode = #tpu.pipeline_mode<synchronous>, transform_indices = @transform_1, window_bounds = array<i64: 5, 128>}, {transform_indices = @transform_2, window_bounds = array<i64: 512, 128>}, {transform_indices = @transform_3, window_bounds = array<i64: 512, 128>}, {transform_indices = @transform_4, window_bounds = array<i64: 8, 128>}]} {
    %c0 = arith.constant 0 : index
    %c0_0 = arith.constant 0 : index
    %0 = vector.load %arg1[%c0, %c0_0] : memref<512x128xf32, #tpu.memory_space<vmem>>, vector<512x128xf32>
    %c0_1 = arith.constant 0 : index
    %c0_2 = arith.constant 0 : index
    %1 = vector.load %arg2[%c0_1, %c0_2] : memref<5x128xf32, #tpu.memory_space<vmem>>, vector<1x128xf32>
    %2 = vector.broadcast %1 : vector<1x128xf32> to vector<512x128xf32>
    %3 = arith.subf %0, %2 : vector<512x128xf32>
    %4 = math.absf %3 : vector<512x128xf32>
    %c0_i32 = arith.constant 0 : i32
    %5 = vector.broadcast %c0_i32 : i32 to vector<512x128xi32>
    %c1 = arith.constant 1 : index
    %c0_3 = arith.constant 0 : index
    %6 = vector.load %arg2[%c1, %c0_3] : memref<5x128xf32, #tpu.memory_space<vmem>>, vector<1x128xf32>
    %7 = vector.broadcast %6 : vector<1x128xf32> to vector<512x128xf32>
    %8 = arith.subf %0, %7 : vector<512x128xf32>
    %9 = math.absf %8 : vector<512x128xf32>
    %10 = arith.cmpf olt, %9, %4 : vector<512x128xf32>
    %11 = arith.select %10, %9, %4 : vector<512x128xi1>, vector<512x128xf32>
    %c1_i32 = arith.constant 1 : i32
    %12 = vector.broadcast %c1_i32 : i32 to vector<512x128xi32>
    %13 = arith.select %10, %12, %5 : vector<512x128xi1>, vector<512x128xi32>
    %14 = vector.shape_cast %6 : vector<1x128xf32> to vector<1x128xf32>
    %15 = vector.broadcast %14 : vector<1x128xf32> to vector<512x128xf32>
    %16 = vector.shape_cast %1 : vector<1x128xf32> to vector<1x128xf32>
    %17 = vector.broadcast %16 : vector<1x128xf32> to vector<512x128xf32>
    %18 = arith.select %10, %15, %17 : vector<512x128xi1>, vector<512x128xf32>
    %c2 = arith.constant 2 : index
    %c0_4 = arith.constant 0 : index
    %19 = vector.load %arg2[%c2, %c0_4] : memref<5x128xf32, #tpu.memory_space<vmem>>, vector<1x128xf32>
    %20 = vector.broadcast %19 : vector<1x128xf32> to vector<512x128xf32>
    %21 = arith.subf %0, %20 : vector<512x128xf32>
    %22 = math.absf %21 : vector<512x128xf32>
    %23 = arith.cmpf olt, %22, %11 : vector<512x128xf32>
    %24 = arith.select %23, %22, %11 : vector<512x128xi1>, vector<512x128xf32>
    %c2_i32 = arith.constant 2 : i32
    %25 = vector.broadcast %c2_i32 : i32 to vector<512x128xi32>
    %26 = arith.select %23, %25, %13 : vector<512x128xi1>, vector<512x128xi32>
    %27 = vector.shape_cast %19 : vector<1x128xf32> to vector<1x128xf32>
    %28 = vector.broadcast %27 : vector<1x128xf32> to vector<512x128xf32>
    %29 = arith.select %23, %28, %18 : vector<512x128xi1>, vector<512x128xf32>
    %c3 = arith.constant 3 : index
    %c0_5 = arith.constant 0 : index
    %30 = vector.load %arg2[%c3, %c0_5] : memref<5x128xf32, #tpu.memory_space<vmem>>, vector<1x128xf32>
    %31 = vector.broadcast %30 : vector<1x128xf32> to vector<512x128xf32>
    %32 = arith.subf %0, %31 : vector<512x128xf32>
    %33 = math.absf %32 : vector<512x128xf32>
    %34 = arith.cmpf olt, %33, %24 : vector<512x128xf32>
    %35 = arith.select %34, %33, %24 : vector<512x128xi1>, vector<512x128xf32>
    %c3_i32 = arith.constant 3 : i32
    %36 = vector.broadcast %c3_i32 : i32 to vector<512x128xi32>
    %37 = arith.select %34, %36, %26 : vector<512x128xi1>, vector<512x128xi32>
    %38 = vector.shape_cast %30 : vector<1x128xf32> to vector<1x128xf32>
    %39 = vector.broadcast %38 : vector<1x128xf32> to vector<512x128xf32>
    %40 = arith.select %34, %39, %29 : vector<512x128xi1>, vector<512x128xf32>
    %c4 = arith.constant 4 : index
    %c0_6 = arith.constant 0 : index
    %41 = vector.load %arg2[%c4, %c0_6] : memref<5x128xf32, #tpu.memory_space<vmem>>, vector<1x128xf32>
    %42 = vector.broadcast %41 : vector<1x128xf32> to vector<512x128xf32>
    %43 = arith.subf %0, %42 : vector<512x128xf32>
    %44 = math.absf %43 : vector<512x128xf32>
    %45 = arith.cmpf olt, %44, %35 : vector<512x128xf32>
    %c4_i32 = arith.constant 4 : i32
    %46 = vector.broadcast %c4_i32 : i32 to vector<512x128xi32>
    %47 = arith.select %45, %46, %37 : vector<512x128xi1>, vector<512x128xi32>
    %48 = vector.shape_cast %41 : vector<1x128xf32> to vector<1x128xf32>
    %49 = vector.broadcast %48 : vector<1x128xf32> to vector<512x128xf32>
    %50 = arith.select %45, %49, %40 : vector<512x128xi1>, vector<512x128xf32>
    %c0_7 = arith.constant 0 : index
    %c0_8 = arith.constant 0 : index
    %51 = vector.load %arg3[%c0_7, %c0_8] : memref<512x128xf32, #tpu.memory_space<vmem>>, vector<512x128xf32>
    tpu.vector_store %arg3[%c0_7, %c0_8], %50 {strides = array<i32>} : memref<512x128xf32, #tpu.memory_space<vmem>>, vector<512x128xf32>,
    %52 = arith.trunci %47 : vector<512x128xi32> to vector<512x128xi8>
    %c0_9 = arith.constant 0 : index
    %c0_10 = arith.constant 0 : index
    %53 = vector.load %arg4[%c0_9, %c0_10] : memref<512x128xi8, #tpu.memory_space<vmem>>, vector<512x128xi8>
    tpu.vector_store %arg4[%c0_9, %c0_10], %52 {strides = array<i32>} : memref<512x128xi8, #tpu.memory_space<vmem>>, vector<512x128xi8>,
    %54 = arith.subf %50, %0 : vector<512x128xf32>
    %55 = arith.mulf %54, %54 : vector<512x128xf32>
    %56 = vector.extract_strided_slice %55 {offsets = [0, 0], sizes = [8, 128], strides = [1, 1]} : vector<512x128xf32> to vector<8x128xf32>
    %57 = vector.extract_strided_slice %55 {offsets = [8, 0], sizes = [8, 128], strides = [1, 1]} : vector<512x128xf32> to vector<8x128xf32>
    %58 = arith.addf %56, %57 : vector<8x128xf32>
    %59 = vector.extract_strided_slice %55 {offsets = [16, 0], sizes = [8, 128], strides = [1, 1]} : vector<512x128xf32> to vector<8x128xf32>
    %60 = arith.addf %58, %59 : vector<8x128xf32>
    %61 = vector.extract_strided_slice %55 {offsets = [24, 0], sizes = [8, 128], strides = [1, 1]} : vector<512x128xf32> to vector<8x128xf32>
    %62 = arith.addf %60, %61 : vector<8x128xf32>
    %63 = vector.extract_strided_slice %55 {offsets = [32, 0], sizes = [8, 128], strides = [1, 1]} : vector<512x128xf32> to vector<8x128xf32>
    %64 = arith.addf %62, %63 : vector<8x128xf32>
    %65 = vector.extract_strided_slice %55 {offsets = [40, 0], sizes = [8, 128], strides = [1, 1]} : vector<512x128xf32> to vector<8x128xf32>
    %66 = arith.addf %64, %65 : vector<8x128xf32>
    %67 = vector.extract_strided_slice %55 {offsets = [48, 0], sizes = [8, 128], strides = [1, 1]} : vector<512x128xf32> to vector<8x128xf32>
    %68 = arith.addf %66, %67 : vector<8x128xf32>
    %69 = vector.extract_strided_slice %55 {offsets = [56, 0], sizes = [8, 128], strides = [1, 1]} : vector<512x128xf32> to vector<8x128xf32>
    %70 = arith.addf %68, %69 : vector<8x128xf32>
    %71 = vector.extract_strided_slice %55 {offsets = [64, 0], sizes = [8, 128], strides = [1, 1]} : vector<512x128xf32> to vector<8x128xf32>
    %72 = arith.addf %70, %71 : vector<8x128xf32>
    %73 = vector.extract_strided_slice %55 {offsets = [72, 0], sizes = [8, 128], strides = [1, 1]} : vector<512x128xf32> to vector<8x128xf32>
    %74 = arith.addf %72, %73 : vector<8x128xf32>
    %75 = vector.extract_strided_slice %55 {offsets = [80, 0], sizes = [8, 128], strides = [1, 1]} : vector<512x128xf32> to vector<8x128xf32>
    %76 = arith.addf %74, %75 : vector<8x128xf32>
    %77 = vector.extract_strided_slice %55 {offsets = [88, 0], sizes = [8, 128], strides = [1, 1]} : vector<512x128xf32> to vector<8x128xf32>
    %78 = arith.addf %76, %77 : vector<8x128xf32>
    %79 = vector.extract_strided_slice %55 {offsets = [96, 0], sizes = [8, 128], strides = [1, 1]} : vector<512x128xf32> to vector<8x128xf32>
    %80 = arith.addf %78, %79 : vector<8x128xf32>
    %81 = vector.extract_strided_slice %55 {offsets = [104, 0], sizes = [8, 128], strides = [1, 1]} : vector<512x128xf32> to vector<8x128xf32>
    %82 = arith.addf %80, %81 : vector<8x128xf32>
    %83 = vector.extract_strided_slice %55 {offsets = [112, 0], sizes = [8, 128], strides = [1, 1]} : vector<512x128xf32> to vector<8x128xf32>
    %84 = arith.addf %82, %83 : vector<8x128xf32>
    %85 = vector.extract_strided_slice %55 {offsets = [120, 0], sizes = [8, 128], strides = [1, 1]} : vector<512x128xf32> to vector<8x128xf32>
    %86 = arith.addf %84, %85 : vector<8x128xf32>
    %87 = vector.extract_strided_slice %55 {offsets = [128, 0], sizes = [8, 128], strides = [1, 1]} : vector<512x128xf32> to vector<8x128xf32>
    %88 = arith.addf %86, %87 : vector<8x128xf32>
    %89 = vector.extract_strided_slice %55 {offsets = [136, 0], sizes = [8, 128], strides = [1, 1]} : vector<512x128xf32> to vector<8x128xf32>
    %90 = arith.addf %88, %89 : vector<8x128xf32>
    %91 = vector.extract_strided_slice %55 {offsets = [144, 0], sizes = [8, 128], strides = [1, 1]} : vector<512x128xf32> to vector<8x128xf32>
    %92 = arith.addf %90, %91 : vector<8x128xf32>
    %93 = vector.extract_strided_slice %55 {offsets = [152, 0], sizes = [8, 128], strides = [1, 1]} : vector<512x128xf32> to vector<8x128xf32>
    %94 = arith.addf %92, %93 : vector<8x128xf32>
    %95 = vector.extract_strided_slice %55 {offsets = [160, 0], sizes = [8, 128], strides = [1, 1]} : vector<512x128xf32> to vector<8x128xf32>
    %96 = arith.addf %94, %95 : vector<8x128xf32>
    %97 = vector.extract_strided_slice %55 {offsets = [168, 0], sizes = [8, 128], strides = [1, 1]} : vector<512x128xf32> to vector<8x128xf32>
    %98 = arith.addf %96, %97 : vector<8x128xf32>
    %99 = vector.extract_strided_slice %55 {offsets = [176, 0], sizes = [8, 128], strides = [1, 1]} : vector<512x128xf32> to vector<8x128xf32>
    %100 = arith.addf %98, %99 : vector<8x128xf32>
    %101 = vector.extract_strided_slice %55 {offsets = [184, 0], sizes = [8, 128], strides = [1, 1]} : vector<512x128xf32> to vector<8x128xf32>
    %102 = arith.addf %100, %101 : vector<8x128xf32>
    %103 = vector.extract_strided_slice %55 {offsets = [192, 0], sizes = [8, 128], strides = [1, 1]} : vector<512x128xf32> to vector<8x128xf32>
    %104 = arith.addf %102, %103 : vector<8x128xf32>
    %105 = vector.extract_strided_slice %55 {offsets = [200, 0], sizes = [8, 128], strides = [1, 1]} : vector<512x128xf32> to vector<8x128xf32>
    %106 = arith.addf %104, %105 : vector<8x128xf32>
    %107 = vector.extract_strided_slice %55 {offsets = [208, 0], sizes = [8, 128], strides = [1, 1]} : vector<512x128xf32> to vector<8x128xf32>
    %108 = arith.addf %106, %107 : vector<8x128xf32>
    %109 = vector.extract_strided_slice %55 {offsets = [216, 0], sizes = [8, 128], strides = [1, 1]} : vector<512x128xf32> to vector<8x128xf32>
    %110 = arith.addf %108, %109 : vector<8x128xf32>
    %111 = vector.extract_strided_slice %55 {offsets = [224, 0], sizes = [8, 128], strides = [1, 1]} : vector<512x128xf32> to vector<8x128xf32>
    %112 = arith.addf %110, %111 : vector<8x128xf32>
    %113 = vector.extract_strided_slice %55 {offsets = [232, 0], sizes = [8, 128], strides = [1, 1]} : vector<512x128xf32> to vector<8x128xf32>
    %114 = arith.addf %112, %113 : vector<8x128xf32>
    %115 = vector.extract_strided_slice %55 {offsets = [240, 0], sizes = [8, 128], strides = [1, 1]} : vector<512x128xf32> to vector<8x128xf32>
    %116 = arith.addf %114, %115 : vector<8x128xf32>
    %117 = vector.extract_strided_slice %55 {offsets = [248, 0], sizes = [8, 128], strides = [1, 1]} : vector<512x128xf32> to vector<8x128xf32>
    %118 = arith.addf %116, %117 : vector<8x128xf32>
    %119 = vector.extract_strided_slice %55 {offsets = [256, 0], sizes = [8, 128], strides = [1, 1]} : vector<512x128xf32> to vector<8x128xf32>
    %120 = arith.addf %118, %119 : vector<8x128xf32>
    %121 = vector.extract_strided_slice %55 {offsets = [264, 0], sizes = [8, 128], strides = [1, 1]} : vector<512x128xf32> to vector<8x128xf32>
    %122 = arith.addf %120, %121 : vector<8x128xf32>
    %123 = vector.extract_strided_slice %55 {offsets = [272, 0], sizes = [8, 128], strides = [1, 1]} : vector<512x128xf32> to vector<8x128xf32>
    %124 = arith.addf %122, %123 : vector<8x128xf32>
    %125 = vector.extract_strided_slice %55 {offsets = [280, 0], sizes = [8, 128], strides = [1, 1]} : vector<512x128xf32> to vector<8x128xf32>
    %126 = arith.addf %124, %125 : vector<8x128xf32>
    %127 = vector.extract_strided_slice %55 {offsets = [288, 0], sizes = [8, 128], strides = [1, 1]} : vector<512x128xf32> to vector<8x128xf32>
    %128 = arith.addf %126, %127 : vector<8x128xf32>
    %129 = vector.extract_strided_slice %55 {offsets = [296, 0], sizes = [8, 128], strides = [1, 1]} : vector<512x128xf32> to vector<8x128xf32>
    %130 = arith.addf %128, %129 : vector<8x128xf32>
    %131 = vector.extract_strided_slice %55 {offsets = [304, 0], sizes = [8, 128], strides = [1, 1]} : vector<512x128xf32> to vector<8x128xf32>
    %132 = arith.addf %130, %131 : vector<8x128xf32>
    %133 = vector.extract_strided_slice %55 {offsets = [312, 0], sizes = [8, 128], strides = [1, 1]} : vector<512x128xf32> to vector<8x128xf32>
    %134 = arith.addf %132, %133 : vector<8x128xf32>
    %135 = vector.extract_strided_slice %55 {offsets = [320, 0], sizes = [8, 128], strides = [1, 1]} : vector<512x128xf32> to vector<8x128xf32>
    %136 = arith.addf %134, %135 : vector<8x128xf32>
    %137 = vector.extract_strided_slice %55 {offsets = [328, 0], sizes = [8, 128], strides = [1, 1]} : vector<512x128xf32> to vector<8x128xf32>
    %138 = arith.addf %136, %137 : vector<8x128xf32>
    %139 = vector.extract_strided_slice %55 {offsets = [336, 0], sizes = [8, 128], strides = [1, 1]} : vector<512x128xf32> to vector<8x128xf32>
    %140 = arith.addf %138, %139 : vector<8x128xf32>
    %141 = vector.extract_strided_slice %55 {offsets = [344, 0], sizes = [8, 128], strides = [1, 1]} : vector<512x128xf32> to vector<8x128xf32>
    %142 = arith.addf %140, %141 : vector<8x128xf32>
    %143 = vector.extract_strided_slice %55 {offsets = [352, 0], sizes = [8, 128], strides = [1, 1]} : vector<512x128xf32> to vector<8x128xf32>
    %144 = arith.addf %142, %143 : vector<8x128xf32>
    %145 = vector.extract_strided_slice %55 {offsets = [360, 0], sizes = [8, 128], strides = [1, 1]} : vector<512x128xf32> to vector<8x128xf32>
    %146 = arith.addf %144, %145 : vector<8x128xf32>
    %147 = vector.extract_strided_slice %55 {offsets = [368, 0], sizes = [8, 128], strides = [1, 1]} : vector<512x128xf32> to vector<8x128xf32>
    %148 = arith.addf %146, %147 : vector<8x128xf32>
    %149 = vector.extract_strided_slice %55 {offsets = [376, 0], sizes = [8, 128], strides = [1, 1]} : vector<512x128xf32> to vector<8x128xf32>
    %150 = arith.addf %148, %149 : vector<8x128xf32>
    %151 = vector.extract_strided_slice %55 {offsets = [384, 0], sizes = [8, 128], strides = [1, 1]} : vector<512x128xf32> to vector<8x128xf32>
    %152 = arith.addf %150, %151 : vector<8x128xf32>
    %153 = vector.extract_strided_slice %55 {offsets = [392, 0], sizes = [8, 128], strides = [1, 1]} : vector<512x128xf32> to vector<8x128xf32>
    %154 = arith.addf %152, %153 : vector<8x128xf32>
    %155 = vector.extract_strided_slice %55 {offsets = [400, 0], sizes = [8, 128], strides = [1, 1]} : vector<512x128xf32> to vector<8x128xf32>
    %156 = arith.addf %154, %155 : vector<8x128xf32>
    %157 = vector.extract_strided_slice %55 {offsets = [408, 0], sizes = [8, 128], strides = [1, 1]} : vector<512x128xf32> to vector<8x128xf32>
    %158 = arith.addf %156, %157 : vector<8x128xf32>
    %159 = vector.extract_strided_slice %55 {offsets = [416, 0], sizes = [8, 128], strides = [1, 1]} : vector<512x128xf32> to vector<8x128xf32>
    %160 = arith.addf %158, %159 : vector<8x128xf32>
    %161 = vector.extract_strided_slice %55 {offsets = [424, 0], sizes = [8, 128], strides = [1, 1]} : vector<512x128xf32> to vector<8x128xf32>
    %162 = arith.addf %160, %161 : vector<8x128xf32>
    %163 = vector.extract_strided_slice %55 {offsets = [432, 0], sizes = [8, 128], strides = [1, 1]} : vector<512x128xf32> to vector<8x128xf32>
    %164 = arith.addf %162, %163 : vector<8x128xf32>
    %165 = vector.extract_strided_slice %55 {offsets = [440, 0], sizes = [8, 128], strides = [1, 1]} : vector<512x128xf32> to vector<8x128xf32>
    %166 = arith.addf %164, %165 : vector<8x128xf32>
    %167 = vector.extract_strided_slice %55 {offsets = [448, 0], sizes = [8, 128], strides = [1, 1]} : vector<512x128xf32> to vector<8x128xf32>
    %168 = arith.addf %166, %167 : vector<8x128xf32>
    %169 = vector.extract_strided_slice %55 {offsets = [456, 0], sizes = [8, 128], strides = [1, 1]} : vector<512x128xf32> to vector<8x128xf32>
    %170 = arith.addf %168, %169 : vector<8x128xf32>
    %171 = vector.extract_strided_slice %55 {offsets = [464, 0], sizes = [8, 128], strides = [1, 1]} : vector<512x128xf32> to vector<8x128xf32>
    %172 = arith.addf %170, %171 : vector<8x128xf32>
    %173 = vector.extract_strided_slice %55 {offsets = [472, 0], sizes = [8, 128], strides = [1, 1]} : vector<512x128xf32> to vector<8x128xf32>
    %174 = arith.addf %172, %173 : vector<8x128xf32>
    %175 = vector.extract_strided_slice %55 {offsets = [480, 0], sizes = [8, 128], strides = [1, 1]} : vector<512x128xf32> to vector<8x128xf32>
    %176 = arith.addf %174, %175 : vector<8x128xf32>
    %177 = vector.extract_strided_slice %55 {offsets = [488, 0], sizes = [8, 128], strides = [1, 1]} : vector<512x128xf32> to vector<8x128xf32>
    %178 = arith.addf %176, %177 : vector<8x128xf32>
    %179 = vector.extract_strided_slice %55 {offsets = [496, 0], sizes = [8, 128], strides = [1, 1]} : vector<512x128xf32> to vector<8x128xf32>
    %180 = arith.addf %178, %179 : vector<8x128xf32>
    %181 = vector.extract_strided_slice %55 {offsets = [504, 0], sizes = [8, 128], strides = [1, 1]} : vector<512x128xf32> to vector<8x128xf32>
    %182 = arith.addf %180, %181 : vector<8x128xf32>
    %c0_11 = arith.constant 0 : index
    %c0_12 = arith.constant 0 : index
    %183 = vector.load %arg5[%c0_11, %c0_12] : memref<8x128xf32, #tpu.memory_space<vmem>>, vector<8x128xf32>
    tpu.vector_store %arg5[%c0_11, %c0_12], %182 {strides = array<i32>} : memref<8x128xf32, #tpu.memory_space<vmem>>, vector<8x128xf32>,
    return
  }
  func.func @transform_0(%arg0: i32) -> (i32, i32) {
    %c0_i32 = arith.constant 0 : i32
    %c0_i32_0 = arith.constant 0 : i32
    return %arg0, %c0_i32 : i32, i32
  }
  func.func @transform_1(%arg0: i32) -> (i32, i32) {
    %c0_i32 = arith.constant 0 : i32
    %c0_i32_0 = arith.constant 0 : i32
    %c0_i32_1 = arith.constant 0 : i32
    return %c0_i32, %c0_i32_0 : i32, i32
  }
  func.func @transform_2(%arg0: i32) -> (i32, i32) {
    %c0_i32 = arith.constant 0 : i32
    %c0_i32_0 = arith.constant 0 : i32
    return %arg0, %c0_i32 : i32, i32
  }
  func.func @transform_3(%arg0: i32) -> (i32, i32) {
    %c0_i32 = arith.constant 0 : i32
    %c0_i32_0 = arith.constant 0 : i32
    return %arg0, %c0_i32 : i32, i32
  }
  func.func @transform_4(%arg0: i32) -> (i32, i32) {
    %c0_i32 = arith.constant 0 : i32
    %c0_i32_0 = arith.constant 0 : i32
    return %arg0, %c0_i32 : i32, i32
  }
}

</mosaic_0001>

<bundles_post_ra>
// kernel: tpu_custom_call.1
= control target key start
LH: loop header
LB: loop body
LE: loop exit
PB: predicated region body
PF: predicated region fallthrough
CT: control target
= control target key end

     0   :  { %10 = vsyncpa [#allocation3], 0  ;;  %s7605_s0 = inlined_call_operand.hbm [shape: f32[512,128], index: 0, kind: input, shape index: {}]   ;;  %s7606_s1 = inlined_call_operand.hbm [shape: f32[5,128], index: 1, kind: input, shape index: {}]   ;;  %s7607_s2 = inlined_call_operand.hbm [shape: f32[512,128], index: 2, kind: output, shape index: {0}]   ;;  %s7608_s3 = inlined_call_operand.hbm [shape: s8[512,128], index: 3, kind: output, shape index: {1}]   ;;  %s7609_s4 = inlined_call_operand.hbm [shape: f32[8,128], index: 4, kind: output, shape index: {2}]  }
   0x1   :  { %11 = vsyncpa [#allocation6], 0 }
   0x2   :  { %12 = vsyncpa [#allocation4], 0 }
   0x3   :  { %13 = vsyncpa [#allocation9], 0  ;;  %s18_s17 = sshll.u32 %s7605_s0, 4  ;;  %s2313_s18 = smov [#allocation2]   ;;  %s19_s17 = int_to_ptr.hbm [resolvable:$true] %s18_s17 }
   0x4   :  { %s20_s19 = sshll.u32 %s2313_s18, 4  ;;  %s32_s22 = sshll.u32 %s7606_s1, 4  ;;  %s21_s19 = int_to_ptr.vmem [resolvable:$true] %s20_s19  ;;  %s33_s22 = int_to_ptr.hbm [resolvable:$true] %s32_s22 }
   0x5   :  { %s2314_s23 = smov 128   ;;  %s2315_s24 = smov 8  }
   0x6   :  { %26 = dma.hbm_to_vmem [thread:$0]  %s19_s17, 8192, %s21_s19, [#allocation3], %s2314_s23, %s2314_s23, %s2315_s24  }
   0x7   :  { %s2316_s25 = smov [#allocation5]  }
   0x8   :  { %s34_s26 = sshll.u32 %s2316_s25, 4  ;;  %s35_s26 = int_to_ptr.vmem [resolvable:$true] %s34_s26 }
   0x9   :  { %37 = dma.hbm_to_vmem [thread:$0]  %s33_s22, 128, %s35_s26, [#allocation6]  }
   0xa   :  { %2305 = dma.done.wait [#allocation3], 8192  }
   0xb   :  { %2306 = vsyncadd [#allocation3], 4294959104 }
   0xc   :  { %2307 = dma.done.wait [#allocation6], 128  }
   0xd   :  { %2308 = vsyncadd [#allocation6], 4294967168  ;;  %v2355_v0 = vld [vmem:[#allocation2] sm:$0xff]  ;;  %v2357_v1 = vld [vmem:[#allocation2 + $0x8] sm:$0xff]  ;;  %v7619_v34 = vmov 0   ;;  %s2318_s0 = smov [#allocation8]  }
   0xe   :  { %v2359_v2 = vld [vmem:[#allocation2 + $0x10] sm:$0xff]  ;;  %v2361_v3 = vld [vmem:[#allocation2 + $0x18] sm:$0xff]  ;;  %v2363_v4 = vld [vmem:[#allocation5] ss:$0 sm:$0xff]  ;;  %s2057_s1 = sshll.u32 %s2318_s0, 4  ;;  %s2059_s29 = sshll.u32 %s7608_s3, 4  ;;  %s2058_s1 = int_to_ptr.vmem [resolvable:$true] %s2057_s1  ;;  %s2060_s29 = int_to_ptr.hbm [resolvable:$true] %s2059_s29 }
   0xf   :  { %v2365_v5 = vld [vmem:[#allocation5 + $0x1] ss:$0 sm:$0xff]  ;;  %v112_v6 = vsub.f32 %v2355_v0, %v2363_v4  ;;  %v113_v7 = vsub.f32 %v2357_v1, %v2363_v4  ;;  %v114_v8 = vsub.f32 %v2359_v2, %v2363_v4  ;;  %v115_v9 = vsub.f32 %v2361_v3, %v2363_v4  ;;  %v2375_v10 = vld [vmem:[#allocation5 + $0x2] ss:$0 sm:$0xff]  ;;  %v2417_v29 = vld [vmem:[#allocation5 + $0x3] ss:$0 sm:$0xff] }
  0x10   :  { %v242_v11 = vsub.f32 %v2355_v0, %v2365_v5  ;;  %v243_v12 = vsub.f32 %v2357_v1, %v2365_v5  ;;  %v244_v13 = vsub.f32 %v2359_v2, %v2365_v5  ;;  %v245_v14 = vsub.f32 %v2361_v3, %v2365_v5  ;;  %v2479_v43 = vld [vmem:[#allocation5 + $0x4] ss:$0 sm:$0xff]  ;;  %s2319_s3 = smov [#allocation7]   ;;  %s2046_s7 = sshll.u32 %s7607_s2, 4  ;;  %s2047_s7 = int_to_ptr.hbm [resolvable:$true] %s2046_s7 }
  0x11   :  { %v2385_v15 = vand.u32 2147483647, %v112_v6  ;;  %v2387_v16 = vand.u32 2147483647, %v113_v7  ;;  %v2389_v17 = vand.u32 2147483647, %v114_v8  ;;  %v628_v18 = vsub.f32 %v2355_v0, %v2375_v10 }
  0x12   :  { %v2393_v19 = vand.u32 2147483647, %v115_v9  ;;  %v2395_v20 = vand.u32 2147483647, %v242_v11  ;;  %v2397_v21 = vand.u32 2147483647, %v243_v12  ;;  %v629_v22 = vsub.f32 %v2357_v1, %v2375_v10 }
  0x13   :  { %v2401_v23 = vand.u32 2147483647, %v244_v13  ;;  %v2403_v24 = vand.u32 2147483647, %v245_v14  ;;  %v630_v25 = vsub.f32 %v2359_v2, %v2375_v10  ;;  %v631_v26 = vsub.f32 %v2361_v3, %v2375_v10  ;;  %v2595_v11 = vld [vmem:[#allocation2 + $0x30] sm:$0xff]  ;;  %s7571_s30 = sshll.u32 %s2319_s3, 4  ;;  %s2045_s30 = int_to_ptr.vmem [resolvable:$true] %s7571_s30 }
  0x14   :  { %vm370_vm0 = vcmp.lt.f32.partialorder %v2395_v20, %v2385_v15  ;;  %vm371_vm1 = vcmp.lt.f32.partialorder %v2397_v21, %v2387_v16  ;;  %v2413_v27 = vand.u32 2147483647, %v628_v18  ;;  %v2415_v28 = vand.u32 2147483647, %v629_v22  ;;  %v2611_v22 = vld [vmem:[#allocation2 + $0x38] sm:$0xff]  ;;  %s2320_s2 = smov [#allocation10]  }
  0x15   :  { %vm372_vm2 = vcmp.lt.f32.partialorder %v2401_v23, %v2389_v17  ;;  %vm373_vm3 = vcmp.lt.f32.partialorder %v2403_v24, %v2393_v19  ;;  %v2428_v30 = vsel %vm370_vm0, %v2395_v20, %v2385_v15  ;;  %v2435_v31 = vsel %vm371_vm1, %v2397_v21, %v2387_v16  ;;  %s2071_s8 = sshll.u32 %s2320_s2, 4  ;;  %s2073_s11 = sshll.u32 %s7609_s4, 4  ;;  %s2072_s8 = int_to_ptr.vmem [resolvable:$true] %s2071_s8  ;;  %s2074_s11 = int_to_ptr.hbm [resolvable:$true] %s2073_s11 }
  0x16   :  { %v2442_v32 = vsel %vm372_vm2, %v2401_v23, %v2389_v17  ;;  %v2449_v33 = vsel %vm373_vm3, %v2403_v24, %v2393_v19  ;;  %v498_v35 = vsel %vm370_vm0, 1, %v7619_v34  ;;  %v499_v36 = vsel %vm371_vm1, 1, %v7619_v34  ;;  %v2117_v19 = vld [vmem:[#allocation2 + $0x8] sm:$0xff] }
  0x17   :  { %8314 = vst [vmem:[#allocation15_spill] sm:$0xff] %v2449_v33  ;;  %v500_v37 = vsel %vm372_vm2, 1, %v7619_v34  ;;  %v501_v38 = vsel %vm373_vm3, 1, %v7619_v34  ;;  %v2467_v39 = vand.u32 2147483647, %v630_v25  ;;  %vm756_vm4 = vcmp.lt.f32.partialorder %v2413_v27, %v2428_v30 }
  0x18   :  { %v2469_v40 = vand.u32 2147483647, %v631_v26  ;;  %vm757_vm5 = vcmp.lt.f32.partialorder %v2415_v28, %v2435_v31  ;;  %v1014_v41 = vsub.f32 %v2355_v0, %v2417_v29  ;;  %v1015_v42 = vsub.f32 %v2357_v1, %v2417_v29 }
  0x19   :  { %vm758_vm6 = vcmp.lt.f32.partialorder %v2467_v39, %v2442_v32  ;;  %v2490_v44 = vsel %vm756_vm4, %v2413_v27, %v2428_v30  ;;  %v2497_v45 = vsel %vm757_vm5, %v2415_v28, %v2435_v31  ;;  %v884_v48 = vsel %vm756_vm4, 2, %v498_v35 }
  0x1a   :  { %vm7612_vm7 = vcmp.lt.f32.partialorder %v2469_v40, %v2449_v33  ;;  %v2504_v46 = vsel %vm758_vm6, %v2467_v39, %v2442_v32  ;;  %v885_v49 = vsel %vm757_vm5, 2, %v499_v36  ;;  %v886_v50 = vsel %vm758_vm6, 2, %v500_v37 }
  0x1b   :  { %v2511_v47 = vsel %vm7612_vm7, %v2469_v40, %v2449_v33  ;;  %v887_v51 = vsel %vm7612_vm7, 2, %v501_v38  ;;  %v1016_v52 = vsub.f32 %v2359_v2, %v2417_v29  ;;  %v1017_v53 = vsub.f32 %v2361_v3, %v2417_v29 }
  0x1c   :  { %8315 = vst [vmem:[#allocation16_spill] sm:$0xff] %v2511_v47  ;;  %v2529_v54 = vand.u32 2147483647, %v1014_v41  ;;  %v2531_v55 = vand.u32 2147483647, %v1015_v42  ;;  %v1400_v56 = vsub.f32 %v2355_v0, %v2479_v43  ;;  %v1401_v57 = vsub.f32 %v2357_v1, %v2479_v43 }
  0x1d   :  { %v2537_v58 = vand.u32 2147483647, %v1016_v52  ;;  %v2539_v59 = vand.u32 2147483647, %v1017_v53  ;;  %v1402_v60 = vsub.f32 %v2359_v2, %v2479_v43  ;;  %v1403_v61 = vsub.f32 %v2361_v3, %v2479_v43  ;;  %v2571_v2 = vld [vmem:[#allocation2 + $0x20] sm:$0xff]  ;;  %v2573_v3 = vld [vmem:[#allocation2 + $0x28] sm:$0xff] }
  0x1e   :  { %vm1142_vm8 = vcmp.lt.f32.partialorder %v2529_v54, %v2490_v44  ;;  %vm1143_vm9 = vcmp.lt.f32.partialorder %v2531_v55, %v2497_v45  ;;  %v2549_v62 = vand.u32 2147483647, %v1400_v56  ;;  %v2551_v63 = vand.u32 2147483647, %v1401_v57 }
  0x1f   :  { %8316 = vst [vmem:[#allocation17_spill] sm:$0xff] %v2539_v59  ;;  %vm1144_vm10 = vcmp.lt.f32.partialorder %v2537_v58, %v2504_v46  ;;  %vm7611_vm11 = vcmp.lt.f32.partialorder %v2539_v59, %v2511_v47  ;;  %v2562_v0 = vsel %vm1142_vm8, %v2529_v54, %v2490_v44  ;;  %v2569_v1 = vsel %vm1143_vm9, %v2531_v55, %v2497_v45 }
  0x20   :  { %v2580_v6 = vsel %vm1144_vm10, %v2537_v58, %v2504_v46  ;;  %v2587_v7 = vsel %vm7611_vm11, %v2539_v59, %v2511_v47  ;;  %v1270_v8 = vsel %vm1142_vm8, 3, %v884_v48  ;;  %v1271_v9 = vsel %vm1143_vm9, 3, %v885_v49  ;;  %v2865_v47 = vld [vmem:[#allocation2 + $0x58] sm:$0xff]  ;;  %v2118_v46 = vld [vmem:[#allocation2 + $0x10] sm:$0xff] }
  0x21   :  { %8317 = vst [vmem:[#allocation18_spill] sm:$0xff] %v2587_v7  ;;  %v1272_v12 = vsel %vm1144_vm10, 3, %v886_v50  ;;  %v1273_v13 = vsel %vm7611_vm11, 3, %v887_v51  ;;  %v2603_v14 = vand.u32 2147483647, %v1402_v60  ;;  %vm1528_vm12 = vcmp.lt.f32.partialorder %v2549_v62, %v2562_v0  ;;  %v8780_v58 = vld [vmem:[#allocation15_spill] sm:$0xff] }
  0x22   :  { %v2605_v18 = vand.u32 2147483647, %v1403_v61  ;;  %vm7614_vm13 = vcmp.lt.f32.partialorder %v2551_v63, %v2569_v1  ;;  %v116_v25 = vsub.f32 %v2571_v2, %v2363_v4  ;;  %v117_v26 = vsub.f32 %v2573_v3, %v2363_v4 }
  0x23   :  { %vm7613_vm14 = vcmp.lt.f32.partialorder %v2603_v14, %v2580_v6  ;;  %v1592_v35 = vsel %vm1528_vm12, 4, %v1270_v8  ;;  %v1593_v36 = vsel %vm7614_vm13, 4, %v1271_v9  ;;  %v118_v42 = vsub.f32 %v2595_v11, %v2363_v4 }
  0x24   :  { %8318 = vst [vmem:[#allocation19_spill] sm:$0xff] %v2605_v18  ;;  %vm7610_vm15 = vcmp.lt.f32.partialorder %v2605_v18, %v2587_v7  ;;  %v1594_v37 = vsel %vm7613_vm14, 4, %v1272_v12  ;;  %v1784_v41 = vpack.c.b16 %v1593_v36, %v1592_v35  ;;  %v119_v49 = vsub.f32 %v2611_v22, %v2363_v4 }
  0x25   :  { %v1595_v38 = vsel %vm7610_vm15, 4, %v1273_v13  ;;  %v2637_v50 = vand.u32 2147483647, %v116_v25  ;;  %v2639_v51 = vand.u32 2147483647, %v117_v26  ;;  %v246_v53 = vsub.f32 %v2571_v2, %v2365_v5 }
  0x26   :  { %v1785_v48 = vpack.c.b16 %v1595_v38, %v1594_v37  ;;  %v2641_v52 = vand.u32 2147483647, %v118_v42  ;;  %v247_v56 = vsub.f32 %v2573_v3, %v2365_v5  ;;  %v248_v57 = vsub.f32 %v2595_v11, %v2365_v5 }
  0x27   :  { %8319 = vst [vmem:[#allocation20_spill] sm:$0xff] %v2639_v51  ;;  %v2649_v61 = vand.u32 2147483647, %v119_v49  ;;  %v249_v8 = vsub.f32 %v2611_v22, %v2365_v5  ;;  %v632_v9 = vsub.f32 %v2571_v2, %v2375_v10  ;;  %v2655_v12 = vand.u32 2147483647, %v246_v53 }
  0x28   :  { %8320 = vst [vmem:[#allocation21_spill] sm:$0xff] %v2641_v52  ;;  %v1786_v60 = vpack.c.b8 %v1785_v48, %v1784_v41  ;;  %v2657_v13 = vand.u32 2147483647, %v247_v56  ;;  %v2659_v25 = vand.u32 2147483647, %v248_v57  ;;  %v633_v26 = vsub.f32 %v2573_v3, %v2375_v10 }
  0x29   :  { %8321 = vst [vmem:[#allocation22_spill] sm:$0xff] %v2649_v61  ;;  %v2663_v35 = vand.u32 2147483647, %v249_v8  ;;  %v634_v36 = vsub.f32 %v2595_v11, %v2375_v10  ;;  %v635_v37 = vsub.f32 %v2611_v22, %v2375_v10  ;;  %v2669_v38 = vand.u32 2147483647, %v632_v9 }
  0x2a   :  { %8322 = vst [vmem:[#allocation23_spill] sm:$0xff] %v2657_v13  ;;  %vm7643_vm15 = vcmp.lt.f32.partialorder %v2655_v12, %v2637_v50  ;;  %vm7615_vm11 = vcmp.lt.f32.partialorder %v2657_v13, %v2639_v51  ;;  %vm7618_vm7 = vcmp.lt.f32.partialorder %v2659_v25, %v2641_v52  ;;  %v2677_v41 = vand.u32 2147483647, %v633_v26 }
  0x2b   :  { %8323 = vst [vmem:[#allocation24_spill] sm:$0xff] %v2659_v25  ;;  %vm7617_vm14 = vcmp.lt.f32.partialorder %v2663_v35, %v2649_v61  ;;  %v2686_v42 = vsel %vm7643_vm15, %v2655_v12, %v2637_v50  ;;  %v2693_v48 = vsel %vm7615_vm11, %v2657_v13, %v2639_v51  ;;  %v2700_v49 = vsel %vm7618_vm7, %v2659_v25, %v2641_v52 }
  0x2c   :  { %1832 = vst [vmem:[#allocation8] sm:$0xff] %v1786_v60  ;;  %v2707_v53 = vsel %vm7617_vm14, %v2663_v35, %v2649_v61  ;;  %v502_v56 = vsel %vm7643_vm15, 1, %v7619_v34  ;;  %v503_v57 = vsel %vm7615_vm11, 1, %v7619_v34  ;;  %v504_v60 = vsel %vm7618_vm7, 1, %v7619_v34 }
  0x2d   :  { %8324 = vst [vmem:[#allocation25_spill] sm:$0xff] %v2663_v35  ;;  %v505_v8 = vsel %vm7617_vm14, 1, %v7619_v34  ;;  %v2725_v9 = vand.u32 2147483647, %v634_v36  ;;  %v2727_v26 = vand.u32 2147483647, %v635_v37  ;;  %vm7636_vm13 = vcmp.lt.f32.partialorder %v2669_v38, %v2686_v42 }
  0x2e   :  { %8325 = vst [vmem:[#allocation26_spill] sm:$0xff] %v2669_v38  ;;  %vm7635_vm11 = vcmp.lt.f32.partialorder %v2677_v41, %v2693_v48  ;;  %v2738_v7 = vsel %vm7636_vm13, %v2669_v38, %v2686_v42  ;;  %v888_v36 = vsel %vm7636_vm13, 2, %v502_v56  ;;  %v1018_v37 = vsub.f32 %v2571_v2, %v2417_v29 }
  0x2f   :  { %8326 = vst [vmem:[#allocation27_spill] sm:$0xff] %v2677_v41  ;;  %vm7634_vm14 = vcmp.lt.f32.partialorder %v2725_v9, %v2700_v49  ;;  %vm7633_vm7 = vcmp.lt.f32.partialorder %v2727_v26, %v2707_v53  ;;  %v2754_v34 = vsel %vm7635_vm11, %v2677_v41, %v2693_v48  ;;  %v889_v56 = vsel %vm7635_vm11, 2, %v503_v57 }
  0x30   :  { %8327 = vst [vmem:[#allocation28_spill] sm:$0xff] %v2686_v42  ;;  %v2764_v61 = vsel %vm7634_vm14, %v2725_v9, %v2700_v49  ;;  %v2771_v35 = vsel %vm7633_vm7, %v2727_v26, %v2707_v53  ;;  %v890_v18 = vsel %vm7634_vm14, 2, %v504_v60  ;;  %v891_v57 = vsel %vm7633_vm7, 2, %v505_v8 }
  0x31   :  { %8328 = vst [vmem:[#allocation29_spill] sm:$0xff] %v2693_v48  ;;  %v1019_v48 = vsub.f32 %v2573_v3, %v2417_v29  ;;  %v1020_v41 = vsub.f32 %v2595_v11, %v2417_v29  ;;  %v1021_v52 = vsub.f32 %v2611_v22, %v2417_v29  ;;  %v2785_v25 = vand.u32 2147483647, %v1018_v37 }
  0x32   :  { %8329 = vst [vmem:[#allocation30_spill] sm:$0xff] %v2700_v49  ;;  %v1404_v51 = vsub.f32 %v2571_v2, %v2479_v43  ;;  %v1405_v60 = vsub.f32 %v2573_v3, %v2479_v43  ;;  %v1406_v8 = vsub.f32 %v2595_v11, %v2479_v43 }
  0x33   :  { %8330 = vst [vmem:[#allocation31_spill] sm:$0xff] %v2707_v53  ;;  %v1407_v53 = vsub.f32 %v2611_v22, %v2479_v43  ;;  %v2797_v49 = vand.u32 2147483647, %v1020_v41  ;;  %vm7639_vm7 = vcmp.lt.f32.partialorder %v2785_v25, %v2738_v7  ;;  %v2825_v41 = vld [vmem:[#allocation2 + $0x40] sm:$0xff] }
  0x34   :  { %8331 = vst [vmem:[#allocation32_spill] sm:$0xff] %v2725_v9  ;;  %v2799_v9 = vand.u32 2147483647, %v1021_v52  ;;  %v2808_v2 = vsel %vm7639_vm7, %v2785_v25, %v2738_v7  ;;  %v1274_v3 = vsel %vm7639_vm7, 3, %v888_v36  ;;  %v2813_v11 = vand.u32 2147483647, %v1404_v51 }
  0x35   :  { %8332 = vst [vmem:[#allocation33_spill] sm:$0xff] %v2727_v26  ;;  %v2795_v26 = vand.u32 2147483647, %v1019_v48  ;;  %v2815_v22 = vand.u32 2147483647, %v1405_v60  ;;  %vm7657_vm11 = vcmp.lt.f32.partialorder %v2797_v49, %v2764_v61  ;;  %v2851_v60 = vld [vmem:[#allocation2 + $0x48] sm:$0xff] }
  0x36   :  { %8333 = vst [vmem:[#allocation34_spill] sm:$0xff] %v2738_v7  ;;  %vm7644_vm13 = vcmp.lt.f32.partialorder %v2799_v9, %v2771_v35  ;;  %v2823_v52 = vand.u32 2147483647, %v1406_v8  ;;  %v2839_v48 = vsel %vm7657_vm11, %v2797_v49, %v2764_v61  ;;  %v1276_v8 = vsel %vm7657_vm11, 3, %v890_v18 }
  0x37   :  { %8334 = vst [vmem:[#allocation35_spill] sm:$0xff] %v2754_v34  ;;  %vm7642_vm14 = vcmp.lt.f32.partialorder %v2795_v26, %v2754_v34  ;;  %v2846_v36 = vsel %vm7644_vm13, %v2799_v9, %v2771_v35  ;;  %v1277_v13 = vsel %vm7644_vm13, 3, %v891_v57  ;;  %v2859_v7 = vand.u32 2147483647, %v1407_v53 }
  0x38   :  { %8335 = vst [vmem:[#allocation36_spill] sm:$0xff] %v2764_v61  ;;  %v2832_v51 = vsel %vm7642_vm14, %v2795_v26, %v2754_v34  ;;  %v1275_v37 = vsel %vm7642_vm14, 3, %v889_v56  ;;  %vm7831_vm7 = vcmp.lt.f32.partialorder %v2813_v11, %v2808_v2  ;;  %vm7655_vm15 = vcmp.lt.f32.partialorder %v2823_v52, %v2839_v48 }
  0x39   :  { %8336 = vst [vmem:[#allocation37_spill] sm:$0xff] %v2771_v35  ;;  %vm7656_vm14 = vcmp.lt.f32.partialorder %v2815_v22, %v2832_v51  ;;  %v1596_v18 = vsel %vm7831_vm7, 4, %v1274_v3  ;;  %v120_v53 = vsub.f32 %v2825_v41, %v2363_v4  ;;  %vm7654_vm13 = vcmp.lt.f32.partialorder %v2859_v7, %v2846_v36 }
  0x3a   :  { %8337 = vst [vmem:[#allocation38_spill] sm:$0xff] %v2785_v25  ;;  %v2863_v25 = vld [vmem:[#allocation2 + $0x50] sm:$0xff]  ;;  %v1597_v56 = vsel %vm7656_vm14, 4, %v1275_v37  ;;  %v1598_v57 = vsel %vm7655_vm15, 4, %v1276_v8  ;;  %v121_v35 = vsub.f32 %v2851_v60, %v2363_v4  ;;  %v1599_v3 = vsel %vm7654_vm13, 4, %v1277_v13 }
  0x3b   :  { %8338 = vst [vmem:[#allocation39_spill] sm:$0xff] %v2795_v26  ;;  %v122_v61 = vsub.f32 %v2863_v25, %v2363_v4  ;;  %v2893_v37 = vand.u32 2147483647, %v120_v53  ;;  %v250_v8 = vsub.f32 %v2825_v41, %v2365_v5  ;;  %v251_v13 = vsub.f32 %v2851_v60, %v2365_v5 }
  0x3c   :  { %8339 = vst [vmem:[#allocation40_spill] sm:$0xff] %v2797_v49  ;;  %v123_v49 = vsub.f32 %v2865_v47, %v2363_v4  ;;  %v253_v53 = vsub.f32 %v2865_v47, %v2365_v5 }
  0x3d   :  { %8340 = vst [vmem:[#allocation41_spill] sm:$0xff] %v2799_v9  ;;  %v1787_v9 = vpack.c.b16 %v1597_v56, %v1596_v18  ;;  %v252_v18 = vsub.f32 %v2863_v25, %v2365_v5 }
  0x3e   :  { %8341 = vst [vmem:[#allocation42_spill] sm:$0xff] %v2808_v2  ;;  %v1022_v2 = vsub.f32 %v2825_v41, %v2417_v29 }
  0x3f   :  { %8342 = vst [vmem:[#allocation43_spill] sm:$0xff] %v2813_v11  ;;  %v1408_v11 = vsub.f32 %v2825_v41, %v2479_v43 }
  0x40   :  { %8343 = vst [vmem:[#allocation44_spill] sm:$0xff] %v2815_v22  ;;  %v2895_v22 = vand.u32 2147483647, %v121_v35  ;;  %v636_v35 = vsub.f32 %v2825_v41, %v2375_v10 }
  0x41   :  { %8344 = vst [vmem:[#allocation45_spill] sm:$0xff] %v2823_v52  ;;  %v2901_v52 = vand.u32 2147483647, %v123_v49  ;;  %v637_v49 = vsub.f32 %v2851_v60, %v2375_v10  ;;  %v3085_v41 = vand.u32 2147483647, %v1408_v11 }
  0x42   :  { %8345 = vst [vmem:[#allocation46_spill] sm:$0xff] %v2832_v51  ;;  %v1788_v51 = vpack.c.b16 %v1599_v3, %v1598_v57  ;;  %v2909_v57 = vand.u32 2147483647, %v250_v8  ;;  %v2913_v3 = vand.u32 2147483647, %v251_v13 }
  0x43   :  { %8346 = vst [vmem:[#allocation47_spill] sm:$0xff] %v2839_v48  ;;  %v2899_v48 = vand.u32 2147483647, %v122_v61  ;;  %v2915_v61 = vand.u32 2147483647, %v252_v18  ;;  %v8359_v18 = vmov 0  }
  0x44   :  { %8347 = vst [vmem:[#allocation48_spill] sm:$0xff] %v2846_v36  ;;  %v1789_v56 = vpack.c.b8 %v1788_v51, %v1787_v9  ;;  %v638_v36 = vsub.f32 %v2863_v25, %v2375_v10  ;;  %v2921_v9 = vand.u32 2147483647, %v253_v53  ;;  %vm7669_vm13 = vcmp.lt.f32.partialorder %v2909_v57, %v2893_v37 }
  0x45   :  { %8348 = vst [vmem:[#allocation49_spill] sm:$0xff] %v2859_v7  ;;  %v639_v51 = vsub.f32 %v2865_v47, %v2375_v10  ;;  %v2927_v8 = vand.u32 2147483647, %v636_v35  ;;  %vm7665_vm15 = vcmp.lt.f32.partialorder %v2913_v3, %v2895_v22  ;;  %vm7667_vm14 = vcmp.lt.f32.partialorder %v2915_v61, %v2899_v48 }
  0x46   :  { %8349 = vst [vmem:[#allocation50_spill] sm:$0xff] %v2893_v37  ;;  %v2938_v13 = vsel %vm7669_vm13, %v2909_v57, %v2893_v37  ;;  %vm7668_vm11 = vcmp.lt.f32.partialorder %v2921_v9, %v2901_v52  ;;  %v2951_v53 = vsel %vm7665_vm15, %v2913_v3, %v2895_v22  ;;  %v2958_v35 = vsel %vm7667_vm14, %v2915_v61, %v2899_v48 }
  0x47   :  { %8350 = vst [vmem:[#allocation51_spill] sm:$0xff] %v2895_v22  ;;  %v507_v7 = vsel %vm7665_vm15, 1, %v8359_v18  ;;  %v2969_v37 = vsel %vm7668_vm11, %v2921_v9, %v2901_v52  ;;  %v509_v34 = vsel %vm7668_vm11, 1, %v8359_v18  ;;  %v2979_v26 = vand.u32 2147483647, %v637_v49 }
  0x48   :  { %8351 = vst [vmem:[#allocation52_spill] sm:$0xff] %v2899_v48  ;;  %v2981_v22 = vand.u32 2147483647, %v638_v36  ;;  %vm7685_vm15 = vcmp.lt.f32.partialorder %v2927_v8, %v2938_v13  ;;  %v3041_v48 = vand.u32 2147483647, %v1022_v2 }
  0x49   :  { %8352 = vst [vmem:[#allocation53_spill] sm:$0xff] %v2901_v52  ;;  %v2996_v49 = vsel %vm7685_vm15, %v2927_v8, %v2938_v13 }
  0x4a   :  { %8353 = vst [vmem:[#allocation54_spill] sm:$0xff] %v2909_v57  ;;  %v508_v57 = vsel %vm7667_vm14, 1, %v8359_v18  ;;  %vm7684_vm14 = vcmp.lt.f32.partialorder %v2979_v26, %v2951_v53  ;;  %vm7683_vm11 = vcmp.lt.f32.partialorder %v2981_v22, %v2958_v35 }
  0x4b   :  { %8354 = vst [vmem:[#allocation55_spill] sm:$0xff] %v2913_v3  ;;  %v2983_v3 = vand.u32 2147483647, %v639_v51  ;;  %v1023_v51 = vsub.f32 %v2851_v60, %v2417_v29  ;;  %v3012_v52 = vsel %vm7684_vm14, %v2979_v26, %v2951_v53 }
  0x4c   :  { %8355 = vst [vmem:[#allocation56_spill] sm:$0xff] %v2915_v61 }
  0x4d   :  { %1833 = vst [vmem:[#allocation8 + $0x8] sm:$0xff] %v1789_v56  ;;  %v506_v56 = vsel %vm7669_vm13, 1, %v8359_v18  ;;  %vm7682_vm13 = vcmp.lt.f32.partialorder %v2983_v3, %v2969_v37  ;;  %v3043_v61 = vand.u32 2147483647, %v1023_v51  ;;  %v3091_v51 = vld [vmem:[#allocation2 + $0x68] sm:$0xff] }
  0x4e   :  { %8356 = vst [vmem:[#allocation57_spill] sm:$0xff] %v2921_v9  ;;  %v892_v36 = vsel %vm7685_vm15, 2, %v506_v56  ;;  %v893_v56 = vsel %vm7684_vm14, 2, %v507_v7  ;;  %v3022_v9 = vsel %vm7683_vm11, %v2981_v22, %v2958_v35  ;;  %v895_v7 = vsel %vm7682_vm13, 2, %v509_v34 }
  0x4f   :  { %8357 = vst [vmem:[#allocation58_spill] sm:$0xff] %v2927_v8  ;;  %v894_v8 = vsel %vm7683_vm11, 2, %v508_v57  ;;  %v1409_v57 = vsub.f32 %v2851_v60, %v2479_v43  ;;  %v1411_v34 = vsub.f32 %v2865_v47, %v2479_v43  ;;  %vm7689_vm11 = vcmp.lt.f32.partialorder %v3043_v61, %v3012_v52 }
  0x50   :  { %8358 = vst [vmem:[#allocation59_spill] sm:$0xff] %v2938_v13  ;;  %v3029_v13 = vsel %vm7682_vm13, %v2983_v3, %v2969_v37  ;;  %vm7690_vm13 = vcmp.lt.f32.partialorder %v3041_v48, %v2996_v49 }
  0x51   :  { %8360 = vst [vmem:[#allocation60_spill] sm:$0xff] %v2951_v53  ;;  %v1024_v53 = vsub.f32 %v2863_v25, %v2417_v29  ;;  %v3066_v2 = vsel %vm7690_vm13, %v3041_v48, %v2996_v49  ;;  %v3087_v60 = vand.u32 2147483647, %v1409_v57 }
  0x52   :  { %8361 = vst [vmem:[#allocation61_spill] sm:$0xff] %v2958_v35 }
  0x53   :  { %8362 = vst [vmem:[#allocation62_spill] sm:$0xff] %v2969_v37  ;;  %v1410_v37 = vsub.f32 %v2863_v25, %v2479_v43  ;;  %v1278_v25 = vsel %vm7690_vm13, 3, %v892_v36 }
  0x54   :  { %8363 = vst [vmem:[#allocation63_spill] sm:$0xff] %v2979_v26  ;;  %v1025_v26 = vsub.f32 %v2865_v47, %v2417_v29  ;;  %v3073_v47 = vsel %vm7689_vm11, %v3043_v61, %v3012_v52 }
  0x55   :  { %8364 = vst [vmem:[#allocation64_spill] sm:$0xff] %v2981_v22  ;;  %vm7706_vm13 = vcmp.lt.f32.partialorder %v3087_v60, %v3073_v47 }
  0x56   :  { %8365 = vst [vmem:[#allocation65_spill] sm:$0xff] %v2983_v3  ;;  %v3053_v3 = vand.u32 2147483647, %v1024_v53  ;;  %v3055_v35 = vand.u32 2147483647, %v1025_v26  ;;  %v1279_v26 = vsel %vm7689_vm11, 3, %v893_v56  ;;  %vm7707_vm11 = vcmp.lt.f32.partialorder %v3085_v41, %v3066_v2 }
  0x57   :  { %8366 = vst [vmem:[#allocation66_spill] sm:$0xff] %v2996_v49  ;;  %v3089_v53 = vld [vmem:[#allocation2 + $0x60] sm:$0xff]  ;;  %v3117_v49 = vand.u32 2147483647, %v1411_v34  ;;  %v125_v34 = vsub.f32 %v3091_v51, %v2363_v4 }
  0x58   :  { %8367 = vst [vmem:[#allocation67_spill] sm:$0xff] %v3012_v52  ;;  %vm7693_vm14 = vcmp.lt.f32.partialorder %v3053_v3, %v3022_v9  ;;  %vm7692_vm15 = vcmp.lt.f32.partialorder %v3055_v35, %v3029_v13  ;;  %v3113_v52 = vld [vmem:[#allocation2 + $0x70] sm:$0xff] }
  0x59   :  { %8368 = vst [vmem:[#allocation68_spill] sm:$0xff] %v3022_v9  ;;  %v3098_v36 = vsel %vm7693_vm14, %v3053_v3, %v3022_v9  ;;  %v3105_v11 = vsel %vm7692_vm15, %v3055_v35, %v3029_v13  ;;  %v1280_v56 = vsel %vm7693_vm14, 3, %v894_v8  ;;  %v1281_v57 = vsel %vm7692_vm15, 3, %v895_v7 }
  0x5a   :  { %8369 = vst [vmem:[#allocation69_spill] sm:$0xff] %v3029_v13  ;;  %v1600_v8 = vsel %vm7707_vm11, 4, %v1278_v25  ;;  %v1601_v7 = vsel %vm7706_vm13, 4, %v1279_v26  ;;  %vm7704_vm14 = vcmp.lt.f32.partialorder %v3117_v49, %v3105_v11  ;;  %v126_v25 = vsub.f32 %v3113_v52, %v2363_v4 }
  0x5b   :  { %8370 = vst [vmem:[#allocation70_spill] sm:$0xff] %v3041_v48  ;;  %v3123_v48 = vld [vmem:[#allocation2 + $0x78] sm:$0xff]  ;;  %v1790_v13 = vpack.c.b16 %v1601_v7, %v1600_v8  ;;  %v254_v7 = vsub.f32 %v3089_v53, %v2365_v5 }
  0x5c   :  { %8371 = vst [vmem:[#allocation71_spill] sm:$0xff] %v3043_v61  ;;  %v3115_v61 = vand.u32 2147483647, %v1410_v37  ;;  %v124_v37 = vsub.f32 %v3089_v53, %v2363_v4  ;;  %v3153_v8 = vand.u32 2147483647, %v126_v25  ;;  %v641_v25 = vsub.f32 %v3091_v51, %v2375_v10 }
  0x5d   :  { %8372 = vst [vmem:[#allocation72_spill] sm:$0xff] %v3053_v3 }
  0x5e   :  { %8373 = vst [vmem:[#allocation73_spill] sm:$0xff] %v3055_v35  ;;  %vm7705_vm15 = vcmp.lt.f32.partialorder %v3115_v61, %v3098_v36  ;;  %v1603_v35 = vsel %vm7704_vm14, 4, %v1281_v57  ;;  %v256_v57 = vsub.f32 %v3113_v52, %v2365_v5 }
  0x5f   :  { %8374 = vst [vmem:[#allocation74_spill] sm:$0xff] %v3066_v2  ;;  %v1602_v26 = vsel %vm7705_vm15, 4, %v1280_v56  ;;  %v255_v56 = vsub.f32 %v3091_v51, %v2365_v5 }
  0x60   :  { %8375 = vst [vmem:[#allocation75_spill] sm:$0xff] %v3073_v47  ;;  %v127_v47 = vsub.f32 %v3123_v48, %v2363_v4  ;;  %v1791_v2 = vpack.c.b16 %v1603_v35, %v1602_v26  ;;  %v3165_v35 = vand.u32 2147483647, %v254_v7  ;;  %v3173_v26 = vand.u32 2147483647, %v256_v57 }
  0x61   :  { %8376 = vst [vmem:[#allocation76_spill] sm:$0xff] %v3085_v41  ;;  %v3151_v41 = vand.u32 2147483647, %v125_v34  ;;  %v640_v34 = vsub.f32 %v3089_v53, %v2375_v10  ;;  %v3185_v7 = vand.u32 2147483647, %v641_v25 }
  0x62   :  { %8377 = vst [vmem:[#allocation77_spill] sm:$0xff] %v3087_v60  ;;  %v3149_v60 = vand.u32 2147483647, %v124_v37  ;;  %v3157_v9 = vand.u32 2147483647, %v127_v47  ;;  %v257_v37 = vsub.f32 %v3123_v48, %v2365_v5  ;;  %vm7715_vm13 = vcmp.lt.f32.partialorder %v3173_v26, %v3153_v8 }
  0x63   :  { %8378 = vst [vmem:[#allocation78_spill] sm:$0xff] %v3098_v36  ;;  %v3171_v47 = vand.u32 2147483647, %v255_v56  ;;  %v642_v36 = vsub.f32 %v3113_v52, %v2375_v10  ;;  %v3212_v57 = vsel %vm7715_vm13, %v3173_v26, %v3153_v8 }
  0x64   :  { %8379 = vst [vmem:[#allocation79_spill] sm:$0xff] %v3105_v11  ;;  %v1792_v11 = vpack.c.b8 %v1791_v2, %v1790_v13  ;;  %vm7712_vm14 = vcmp.lt.f32.partialorder %v3165_v35, %v3149_v60  ;;  %v643_v13 = vsub.f32 %v3123_v48, %v2375_v10  ;;  %v3183_v2 = vand.u32 2147483647, %v640_v34 }
  0x65   :  { %8380 = vst [vmem:[#allocation80_spill] sm:$0xff] %v3115_v61  ;;  %vm7713_vm15 = vcmp.lt.f32.partialorder %v3171_v47, %v3151_v41  ;;  %v510_v34 = vsel %vm7712_vm14, 1, %v8359_v18  ;;  %v512_v61 = vsel %vm7715_vm13, 1, %v8359_v18  ;;  %v3237_v22 = vand.u32 2147483647, %v642_v36 }
  0x66   :  { %8381 = vst [vmem:[#allocation81_spill] sm:$0xff] %v3117_v49  ;;  %v3175_v49 = vand.u32 2147483647, %v257_v37  ;;  %v3205_v56 = vsel %vm7713_vm15, %v3171_v47, %v3151_v41  ;;  %v511_v25 = vsel %vm7713_vm15, 1, %v8359_v18  ;;  %v3239_v59 = vand.u32 2147483647, %v643_v13 }
  0x67   :  { %8382 = vst [vmem:[#allocation82_spill] sm:$0xff] %v3149_v60  ;;  %vm7732_vm15 = vcmp.lt.f32.partialorder %v3185_v7, %v3205_v56  ;;  %vm7731_vm13 = vcmp.lt.f32.partialorder %v3237_v22, %v3212_v57 }
  0x68   :  { %8383 = vst [vmem:[#allocation83_spill] sm:$0xff] %v3151_v41  ;;  %vm7717_vm11 = vcmp.lt.f32.partialorder %v3175_v49, %v3157_v9  ;;  %v1026_v41 = vsub.f32 %v3089_v53, %v2417_v29  ;;  %v3261_v13 = vsel %vm7732_vm15, %v3185_v7, %v3205_v56 }
  0x69   :  { %8384 = vst [vmem:[#allocation84_spill] sm:$0xff] %v3153_v8  ;;  %v3219_v37 = vsel %vm7717_vm11, %v3175_v49, %v3157_v9  ;;  %v513_v3 = vsel %vm7717_vm11, 1, %v8359_v18  ;;  %v897_v8 = vsel %vm7732_vm15, 2, %v511_v25  ;;  %v1028_v25 = vsub.f32 %v3113_v52, %v2417_v29 }
  0x6a   :  { %8385 = vst [vmem:[#allocation85_spill] sm:$0xff] %v3157_v9  ;;  %vm7730_vm11 = vcmp.lt.f32.partialorder %v3239_v59, %v3219_v37 }
  0x6b   :  { %8386 = vst [vmem:[#allocation86_spill] sm:$0xff] %v3165_v35 }
  0x6c   :  { %8387 = vst [vmem:[#allocation87_spill] sm:$0xff] %v3171_v47 }
  0x6d   :  { %8388 = vst [vmem:[#allocation88_spill] sm:$0xff] %v3173_v26  ;;  %v898_v26 = vsel %vm7731_vm13, 2, %v512_v61  ;;  %v1029_v61 = vsub.f32 %v3123_v48, %v2417_v29 }
  0x6e   :  { %8389 = vst [vmem:[#allocation89_spill] sm:$0xff] %v3175_v49  ;;  %v3273_v49 = vsel %vm7731_vm13, %v3237_v22, %v3212_v57 }
  0x6f   :  { %1834 = vst [vmem:[#allocation8 + $0x10] sm:$0xff] %v1792_v11  ;;  %v3198_v11 = vsel %vm7712_vm14, %v3165_v35, %v3149_v60  ;;  %v3311_v47 = vand.u32 2147483647, %v1029_v61 }
  0x70   :  { %8390 = vst [vmem:[#allocation90_spill] sm:$0xff] %v3183_v2  ;;  %vm7733_vm14 = vcmp.lt.f32.partialorder %v3183_v2, %v3198_v11 }
  0x71   :  { %8391 = vst [vmem:[#allocation91_spill] sm:$0xff] %v3185_v7  ;;  %v3254_v36 = vsel %vm7733_vm14, %v3183_v2, %v3198_v11  ;;  %v896_v9 = vsel %vm7733_vm14, 2, %v510_v34  ;;  %v3286_v34 = vsel %vm7730_vm11, %v3239_v59, %v3219_v37  ;;  %v1027_v2 = vsub.f32 %v3091_v51, %v2417_v29 }
  0x72   :  { %8392 = vst [vmem:[#allocation92_spill] sm:$0xff] %v3198_v11  ;;  %v899_v11 = vsel %vm7730_vm11, 2, %v513_v3  ;;  %v3305_v3 = vand.u32 2147483647, %v1028_v25  ;;  %vm7740_vm14 = vcmp.lt.f32.partialorder %v3311_v47, %v3286_v34 }
  0x73   :  { %8393 = vst [vmem:[#allocation93_spill] sm:$0xff] %v3205_v56  ;;  %v1413_v56 = vsub.f32 %v3091_v51, %v2479_v43  ;;  %v3303_v7 = vand.u32 2147483647, %v1027_v2  ;;  %v3361_v25 = vsel %vm7740_vm14, %v3311_v47, %v3286_v34 }
  0x74   :  { %8394 = vst [vmem:[#allocation94_spill] sm:$0xff] %v3212_v57  ;;  %v3297_v57 = vand.u32 2147483647, %v1026_v41  ;;  %vm7741_vm15 = vcmp.lt.f32.partialorder %v3305_v3, %v3273_v49 }
  0x75   :  { %8395 = vst [vmem:[#allocation95_spill] sm:$0xff] %v3219_v37  ;;  %v1414_v37 = vsub.f32 %v3113_v52, %v2479_v43  ;;  %vm7737_vm13 = vcmp.lt.f32.partialorder %v3303_v7, %v3261_v13  ;;  %v3349_v2 = vsel %vm7741_vm15, %v3305_v3, %v3273_v49  ;;  %v1284_v61 = vsel %vm7741_vm15, 3, %v898_v26 }
  0x76   :  { %8396 = vst [vmem:[#allocation96_spill] sm:$0xff] %v3237_v22  ;;  %v1412_v22 = vsub.f32 %v3089_v53, %v2479_v43  ;;  %vm7738_vm11 = vcmp.lt.f32.partialorder %v3297_v57, %v3254_v36  ;;  %v3317_v53 = vand.u32 2147483647, %v1413_v56  ;;  %v3342_v51 = vsel %vm7737_vm13, %v3303_v7, %v3261_v13  ;;  %v3354_v56 = vld [vmem:[#allocation2 + $0x88] sm:$0xff] }
  0x77   :  { %8397 = vst [vmem:[#allocation97_spill] sm:$0xff] %v3239_v59  ;;  %v1415_v59 = vsub.f32 %v3123_v48, %v2479_v43  ;;  %v3328_v52 = vsel %vm7738_vm11, %v3297_v57, %v3254_v36  ;;  %v3333_v48 = vld [vmem:[#allocation2 + $0x80] sm:$0xff] }
  0x78   :  { %8398 = vst [vmem:[#allocation98_spill] sm:$0xff] %v3254_v36  ;;  %v3315_v41 = vand.u32 2147483647, %v1412_v22  ;;  %v1282_v22 = vsel %vm7738_vm11, 3, %v896_v9  ;;  %v1283_v9 = vsel %vm7737_vm13, 3, %v897_v8  ;;  %v1285_v36 = vsel %vm7740_vm14, 3, %v899_v11 }
  0x79   :  { %8399 = vst [vmem:[#allocation99_spill] sm:$0xff] %v3261_v13  ;;  %v3371_v8 = vld [vmem:[#allocation2 + $0x90] sm:$0xff]  ;;  %v3373_v13 = vand.u32 2147483647, %v1415_v59  ;;  %vm7755_vm11 = vcmp.lt.f32.partialorder %v3317_v53, %v3342_v51  ;;  %v128_v26 = vsub.f32 %v3333_v48, %v2363_v4 }
  0x7a   :  { %8400 = vst [vmem:[#allocation100_spill] sm:$0xff] %v3273_v49  ;;  %vm7756_vm13 = vcmp.lt.f32.partialorder %v3315_v41, %v3328_v52  ;;  %v1605_v59 = vsel %vm7755_vm11, 4, %v1283_v9  ;;  %v130_v49 = vsub.f32 %v3371_v8, %v2363_v4  ;;  %v1032_v42 = vsub.f32 %v3371_v8, %v2417_v29 }
  0x7b   :  { %8401 = vst [vmem:[#allocation101_spill] sm:$0xff] %v3286_v34  ;;  %v1604_v11 = vsel %vm7756_vm13, 4, %v1282_v22  ;;  %vm7753_vm15 = vcmp.lt.f32.partialorder %v3373_v13, %v3361_v25 }
  0x7c   :  { %8402 = vst [vmem:[#allocation102_spill] sm:$0xff] %v3297_v57  ;;  %v3369_v57 = vand.u32 2147483647, %v1414_v37  ;;  %v129_v37 = vsub.f32 %v3354_v56, %v2363_v4  ;;  %v1607_v22 = vsel %vm7753_vm15, 4, %v1285_v36  ;;  %v260_v36 = vsub.f32 %v3371_v8, %v2365_v5 }
  0x7d   :  { %8403 = vst [vmem:[#allocation103_spill] sm:$0xff] %v3303_v7  ;;  %v3379_v7 = vld [vmem:[#allocation2 + $0x98] sm:$0xff] }
  0x7e   :  { %8404 = vst [vmem:[#allocation104_spill] sm:$0xff] %v3305_v3  ;;  %vm7754_vm14 = vcmp.lt.f32.partialorder %v3369_v57, %v3349_v2  ;;  %v131_v9 = vsub.f32 %v3379_v7, %v2363_v4  ;;  %v3405_v3 = vand.u32 2147483647, %v128_v26  ;;  %v261_v26 = vsub.f32 %v3379_v7, %v2365_v5 }
  0x7f   :  { %8405 = vst [vmem:[#allocation105_spill] sm:$0xff] %v3311_v47  ;;  %v1606_v34 = vsel %vm7754_vm14, 4, %v1284_v61  ;;  %v1793_v47 = vpack.c.b16 %v1605_v59, %v1604_v11  ;;  %v258_v61 = vsub.f32 %v3333_v48, %v2365_v5  ;;  %v259_v11 = vsub.f32 %v3354_v56, %v2365_v5 }
  0x80   :  { %8406 = vst [vmem:[#allocation106_spill] sm:$0xff] %v3315_v41  ;;  %v3415_v59 = vand.u32 2147483647, %v131_v9  ;;  %v3431_v9 = vand.u32 2147483647, %v261_v26  ;;  %v1033_v38 = vsub.f32 %v3379_v7, %v2417_v29 }
  0x81   :  { %8407 = vst [vmem:[#allocation107_spill] sm:$0xff] %v3317_v53  ;;  %v1794_v53 = vpack.c.b16 %v1607_v22, %v1606_v34  ;;  %v3425_v22 = vand.u32 2147483647, %v259_v11 }
  0x82   :  { %8408 = vst [vmem:[#allocation108_spill] sm:$0xff] %v3328_v52  ;;  %v3409_v52 = vand.u32 2147483647, %v130_v49  ;;  %v3423_v49 = vand.u32 2147483647, %v258_v61  ;;  %vm7765_vm13 = vcmp.lt.f32.partialorder %v3431_v9, %v3415_v59 }
  0x83   :  { %8409 = vst [vmem:[#allocation109_spill] sm:$0xff] %v3342_v51  ;;  %v3407_v51 = vand.u32 2147483647, %v129_v37  ;;  %v644_v37 = vsub.f32 %v3333_v48, %v2375_v10  ;;  %v1795_v34 = vpack.c.b8 %v1794_v53, %v1793_v47  ;;  %v517_v41 = vsel %vm7765_vm13, 1, %v8359_v18 }
  0x84   :  { %8410 = vst [vmem:[#allocation110_spill] sm:$0xff] %v3349_v2  ;;  %v646_v2 = vsub.f32 %v3371_v8, %v2375_v10  ;;  %vm7760_vm15 = vcmp.lt.f32.partialorder %v3423_v49, %v3405_v3 }
  0x85   :  { %8411 = vst [vmem:[#allocation111_spill] sm:$0xff] %v3361_v25  ;;  %v645_v25 = vsub.f32 %v3354_v56, %v2375_v10  ;;  %vm7761_vm14 = vcmp.lt.f32.partialorder %v3425_v22, %v3407_v51  ;;  %v3441_v47 = vand.u32 2147483647, %v644_v37  ;;  %v3454_v61 = vsel %vm7760_vm15, %v3423_v49, %v3405_v3 }
  0x86   :  { %8412 = vst [vmem:[#allocation112_spill] sm:$0xff] %v3369_v57  ;;  %v647_v57 = vsub.f32 %v3379_v7, %v2375_v10  ;;  %v514_v26 = vsel %vm7760_vm15, 1, %v8359_v18  ;;  %v515_v37 = vsel %vm7761_vm14, 1, %v8359_v18  ;;  %v3493_v60 = vand.u32 2147483647, %v646_v2 }
  0x87   :  { %8413 = vst [vmem:[#allocation113_spill] sm:$0xff] %v3373_v13  ;;  %v3429_v13 = vand.u32 2147483647, %v260_v36  ;;  %v3443_v53 = vand.u32 2147483647, %v645_v25  ;;  %v3461_v25 = vsel %vm7761_vm14, %v3425_v22, %v3407_v51  ;;  %v3475_v36 = vsel %vm7765_vm13, %v3431_v9, %v3415_v59 }
  0x88   :  { %8414 = vst [vmem:[#allocation114_spill] sm:$0xff] %v3405_v3  ;;  %v3495_v35 = vand.u32 2147483647, %v647_v57  ;;  %vm7781_vm15 = vcmp.lt.f32.partialorder %v3441_v47, %v3454_v61 }
  0x89   :  { %8415 = vst [vmem:[#allocation115_spill] sm:$0xff] %v3407_v51  ;;  %vm7764_vm11 = vcmp.lt.f32.partialorder %v3429_v13, %v3409_v52  ;;  %vm7780_vm14 = vcmp.lt.f32.partialorder %v3443_v53, %v3461_v25  ;;  %v1030_v51 = vsub.f32 %v3333_v48, %v2417_v29  ;;  %v3514_v57 = vsel %vm7781_vm15, %v3441_v47, %v3454_v61 }
  0x8a   :  { %8416 = vst [vmem:[#allocation116_spill] sm:$0xff] %v3409_v52  ;;  %v3468_v11 = vsel %vm7764_vm11, %v3429_v13, %v3409_v52  ;;  %v1031_v52 = vsub.f32 %v3354_v56, %v2417_v29  ;;  %vm7778_vm13 = vcmp.lt.f32.partialorder %v3495_v35, %v3475_v36  ;;  %v3521_v2 = vsel %vm7780_vm14, %v3443_v53, %v3461_v25 }
  0x8b   :  { %8417 = vst [vmem:[#allocation117_spill] sm:$0xff] %v3415_v59 }
  0x8c   :  { %8418 = vst [vmem:[#allocation118_spill] sm:$0xff] %v3423_v49  ;;  %v903_v49 = vsel %vm7778_vm13, 2, %v517_v41  ;;  %v1418_v41 = vsub.f32 %v3371_v8, %v2479_v43 }
  0x8d   :  { %8419 = vst [vmem:[#allocation119_spill] sm:$0xff] %v3425_v22  ;;  %v901_v22 = vsel %vm7780_vm14, 2, %v515_v37  ;;  %v1416_v37 = vsub.f32 %v3333_v48, %v2479_v43 }
  0x8e   :  { %8420 = vst [vmem:[#allocation120_spill] sm:$0xff] %v3429_v13  ;;  %v900_v13 = vsel %vm7781_vm15, 2, %v514_v26  ;;  %v3555_v26 = vand.u32 2147483647, %v1031_v52 }
  0x8f   :  { %8421 = vst [vmem:[#allocation121_spill] sm:$0xff] %v3431_v9  ;;  %v3535_v9 = vsel %vm7778_vm13, %v3495_v35, %v3475_v36  ;;  %v3573_v52 = vand.u32 2147483647, %v1416_v37 }
  0x90   :  { %1835 = vst [vmem:[#allocation8 + $0x18] sm:$0xff] %v1795_v34  ;;  %v516_v34 = vsel %vm7764_vm11, 1, %v8359_v18  ;;  %vm7779_vm11 = vcmp.lt.f32.partialorder %v3493_v60, %v3468_v11 }
  0x91   :  { %8422 = vst [vmem:[#allocation122_spill] sm:$0xff] %v3441_v47  ;;  %v3528_v59 = vsel %vm7779_vm11, %v3493_v60, %v3468_v11  ;;  %v902_v3 = vsel %vm7779_vm11, 2, %v516_v34  ;;  %v1417_v34 = vsub.f32 %v3354_v56, %v2479_v43  ;;  %vm7788_vm11 = vcmp.lt.f32.partialorder %v3555_v26, %v3521_v2 }
  0x92   :  { %8423 = vst [vmem:[#allocation123_spill] sm:$0xff] %v3443_v53  ;;  %v3627_v47 = vand.u32 2147483647, %v1418_v41 }
  0x93   :  { %8424 = vst [vmem:[#allocation124_spill] sm:$0xff] %v3454_v61  ;;  %v3553_v61 = vand.u32 2147483647, %v1030_v51  ;;  %v3575_v48 = vand.u32 2147483647, %v1417_v34  ;;  %v3597_v51 = vld [vmem:[#allocation2 + $0xa8] sm:$0xff] }
  0x94   :  { %8425 = vst [vmem:[#allocation125_spill] sm:$0xff] %v3461_v25  ;;  %v1287_v34 = vsel %vm7788_vm11, 3, %v901_v22 }
  0x95   :  { %8426 = vst [vmem:[#allocation126_spill] sm:$0xff] %v3468_v11  ;;  %v3561_v11 = vand.u32 2147483647, %v1032_v42  ;;  %vm7787_vm13 = vcmp.lt.f32.partialorder %v3553_v61, %v3514_v57  ;;  %v3593_v42 = vsel %vm7788_vm11, %v3555_v26, %v3521_v2 }
  0x96   :  { %8427 = vst [vmem:[#allocation127_spill] sm:$0xff] %v3475_v36  ;;  %v3563_v36 = vand.u32 2147483647, %v1033_v38  ;;  %v3586_v38 = vsel %vm7787_vm13, %v3553_v61, %v3514_v57  ;;  %v1286_v37 = vsel %vm7787_vm13, 3, %v900_v13  ;;  %vm7801_vm11 = vcmp.lt.f32.partialorder %v3575_v48, %v3593_v42  ;;  %v3635_v13 = vld [vmem:[#allocation2 + $0xb8] sm:$0xff] }
  0x97   :  { %8428 = vst [vmem:[#allocation128_spill] sm:$0xff] %v3493_v60  ;;  %vm7790_vm14 = vcmp.lt.f32.partialorder %v3561_v11, %v3528_v59  ;;  %v3619_v60 = vld [vmem:[#allocation2 + $0xb0] sm:$0xff]  ;;  %vm7802_vm13 = vcmp.lt.f32.partialorder %v3573_v52, %v3586_v38 }
  0x98   :  { %8429 = vst [vmem:[#allocation129_spill] sm:$0xff] %v3495_v35  ;;  %v1419_v35 = vsub.f32 %v3379_v7, %v2479_v43  ;;  %vm7789_vm15 = vcmp.lt.f32.partialorder %v3563_v36, %v3535_v9  ;;  %v3595_v7 = vld [vmem:[#allocation2 + $0xa0] sm:$0xff]  ;;  %v3604_v56 = vsel %vm7790_vm14, %v3561_v11, %v3528_v59  ;;  %v1288_v25 = vsel %vm7790_vm14, 3, %v902_v3 }
  0x99   :  { %8430 = vst [vmem:[#allocation130_spill] sm:$0xff] %v3514_v57  ;;  %v3611_v8 = vsel %vm7789_vm15, %v3563_v36, %v3535_v9  ;;  %v1289_v53 = vsel %vm7789_vm15, 3, %v903_v49  ;;  %v132_v22 = vsub.f32 %v3595_v7, %v2363_v4  ;;  %v133_v3 = vsub.f32 %v3597_v51, %v2363_v4 }
  0x9a   :  { %8431 = vst [vmem:[#allocation131_spill] sm:$0xff] %v3521_v2  ;;  %v3629_v33 = vand.u32 2147483647, %v1419_v35  ;;  %vm7800_vm15 = vcmp.lt.f32.partialorder %v3627_v47, %v3604_v56  ;;  %v1608_v35 = vsel %vm7802_vm13, 4, %v1286_v37  ;;  %v1609_v49 = vsel %vm7801_vm11, 4, %v1287_v34 }
  0x9b   :  { %8432 = vst [vmem:[#allocation132_spill] sm:$0xff] %v3528_v59  ;;  %v1610_v41 = vsel %vm7800_vm15, 4, %v1288_v25  ;;  %v134_v59 = vsub.f32 %v3619_v60, %v2363_v4  ;;  %v135_v37 = vsub.f32 %v3635_v13, %v2363_v4  ;;  %v262_v25 = vsub.f32 %v3595_v7, %v2365_v5 }
  0x9c   :  { %8433 = vst [vmem:[#allocation133_spill] sm:$0xff] %v3535_v9  ;;  %vm7799_vm14 = vcmp.lt.f32.partialorder %v3629_v33, %v3611_v8  ;;  %v265_v4 = vsub.f32 %v3635_v13, %v2365_v5 }
  0x9d   :  { %8434 = vst [vmem:[#allocation134_spill] sm:$0xff] %v3553_v61  ;;  %v1611_v9 = vsel %vm7799_vm14, 4, %v1289_v53  ;;  %v3665_v34 = vand.u32 2147483647, %v134_v59  ;;  %v263_v53 = vsub.f32 %v3597_v51, %v2365_v5  ;;  %v3679_v59 = vand.u32 2147483647, %v262_v25 }
  0x9e   :  { %8435 = vst [vmem:[#allocation135_spill] sm:$0xff] %v3555_v26 }
  0x9f   :  { %8436 = vst [vmem:[#allocation136_spill] sm:$0xff] %v3561_v11  ;;  %v1797_v11 = vpack.c.b16 %v1611_v9, %v1610_v41  ;;  %v3673_v9 = vand.u32 2147483647, %v135_v37 }
  0xa0   :  { %8437 = vst [vmem:[#allocation137_spill] sm:$0xff] %v3563_v36  ;;  %v1796_v36 = vpack.c.b16 %v1609_v49, %v1608_v35  ;;  %v264_v35 = vsub.f32 %v3619_v60, %v2365_v5  ;;  %v651_v5 = vsub.f32 %v3635_v13, %v2375_v10 }
  0xa1   :  { %8438 = vst [vmem:[#allocation138_spill] sm:$0xff] %v3573_v52 }
  0xa2   :  { %8439 = vst [vmem:[#allocation139_spill] sm:$0xff] %v3575_v48  ;;  %v1798_v49 = vpack.c.b8 %v1797_v11, %v1796_v36  ;;  %v3683_v41 = vand.u32 2147483647, %v264_v35  ;;  %v650_v11 = vsub.f32 %v3619_v60, %v2375_v10  ;;  %v4077_v48 = vld [vmem:[#allocation5 + $0x4] ss:$0 sm:$0xff] }
  0xa3   :  { %8440 = vst [vmem:[#allocation140_spill] sm:$0xff] %v3586_v38  ;;  %v3661_v38 = vand.u32 2147483647, %v132_v22  ;;  %v648_v22 = vsub.f32 %v3595_v7, %v2375_v10 }
  0xa4   :  { %8441 = vst [vmem:[#allocation141_spill] sm:$0xff] %v3593_v42  ;;  %v3663_v42 = vand.u32 2147483647, %v133_v3  ;;  %v3681_v3 = vand.u32 2147483647, %v263_v53  ;;  %vm7809_vm11 = vcmp.lt.f32.partialorder %v3683_v41, %v3665_v34 }
  0xa5   :  { %8442 = vst [vmem:[#allocation142_spill] sm:$0xff] %v3604_v56  ;;  %v3693_v36 = vand.u32 2147483647, %v648_v22  ;;  %vm7805_vm14 = vcmp.lt.f32.partialorder %v3679_v59, %v3661_v38  ;;  %v3749_v56 = vand.u32 2147483647, %v650_v11 }
  0xa6   :  { %8443 = vst [vmem:[#allocation143_spill] sm:$0xff] %v3611_v8  ;;  %v649_v8 = vsub.f32 %v3597_v51, %v2375_v10  ;;  %vm7806_vm15 = vcmp.lt.f32.partialorder %v3681_v3, %v3663_v42  ;;  %v3710_v10 = vsel %vm7805_vm14, %v3679_v59, %v3661_v38  ;;  %v518_v35 = vsel %vm7805_vm14, 1, %v8359_v18 }
  0xa7   :  { %8444 = vst [vmem:[#allocation144_spill] sm:$0xff] %v3627_v47  ;;  %v3717_v25 = vsel %vm7806_vm15, %v3681_v3, %v3663_v42  ;;  %v3751_v47 = vand.u32 2147483647, %v651_v5  ;;  %vm7826_vm14 = vcmp.lt.f32.partialorder %v3693_v36, %v3710_v10  ;;  %v1034_v5 = vsub.f32 %v3595_v7, %v2417_v29 }
  0xa8   :  { %8445 = vst [vmem:[#allocation145_spill] sm:$0xff] %v3629_v33  ;;  %v3687_v33 = vand.u32 2147483647, %v265_v4  ;;  %v3701_v37 = vand.u32 2147483647, %v649_v8  ;;  %v3724_v8 = vsel %vm7809_vm11, %v3683_v41, %v3665_v34  ;;  %v520_v4 = vsel %vm7809_vm11, 1, %v8359_v18 }
  0xa9   :  { %8446 = vst [vmem:[#allocation146_spill] sm:$0xff] %v3661_v38  ;;  %v904_v11 = vsel %vm7826_vm14, 2, %v518_v35  ;;  %v4017_v38 = vld [vmem:[#allocation5 + $0x3] ss:$0 sm:$0xff] }
  0xaa   :  { %8447 = vst [vmem:[#allocation147_spill] sm:$0xff] %v3663_v42  ;;  %vm7808_vm13 = vcmp.lt.f32.partialorder %v3687_v33, %v3673_v9  ;;  %v3809_v42 = vand.u32 2147483647, %v1034_v5 }
  0xab   :  { %8448 = vst [vmem:[#allocation148_spill] sm:$0xff] %v3665_v34  ;;  %v3731_v53 = vsel %vm7808_vm13, %v3687_v33, %v3673_v9  ;;  %v521_v22 = vsel %vm7808_vm13, 1, %v8359_v18  ;;  %v3762_v34 = vsel %vm7826_vm14, %v3693_v36, %v3710_v10  ;;  %vm7824_vm13 = vcmp.lt.f32.partialorder %v3749_v56, %v3724_v8 }
  0xac   :  { %8449 = vst [vmem:[#allocation149_spill] sm:$0xff] %v3673_v9  ;;  %vm7823_vm11 = vcmp.lt.f32.partialorder %v3751_v47, %v3731_v53 }
  0xad   :  { %8450 = vst [vmem:[#allocation150_spill] sm:$0xff] %v3679_v59 }
  0xae   :  { %8451 = vst [vmem:[#allocation151_spill] sm:$0xff] %v3681_v3  ;;  %v1420_v3 = vsub.f32 %v3595_v7, %v2479_v43 }
  0xaf   :  { %8452 = vst [vmem:[#allocation152_spill] sm:$0xff] %v3683_v41  ;;  %v3795_v41 = vsel %vm7823_vm11, %v3751_v47, %v3731_v53 }
  0xb0   :  { %1836 = vst [vmem:[#allocation8 + $0x20] sm:$0xff] %v1798_v49  ;;  %v519_v49 = vsel %vm7806_vm15, 1, %v8359_v18  ;;  %vm7825_vm15 = vcmp.lt.f32.partialorder %v3701_v37, %v3717_v25 }
  0xb1   :  { %8453 = vst [vmem:[#allocation153_spill] sm:$0xff] %v3687_v33  ;;  %v3778_v9 = vsel %vm7825_vm15, %v3701_v37, %v3717_v25  ;;  %v905_v35 = vsel %vm7825_vm15, 2, %v519_v49  ;;  %v3788_v33 = vsel %vm7824_vm13, %v3749_v56, %v3724_v8  ;;  %v907_v49 = vsel %vm7823_vm11, 2, %v521_v22 }
  0xb2   :  { %8454 = vst [vmem:[#allocation154_spill] sm:$0xff] %v3693_v36  ;;  %v1037_v36 = vsub.f32 %v3635_v13, %v2417_v29  ;;  %v1422_v22 = vsub.f32 %v3619_v60, %v2479_v43  ;;  %vm7827_vm11 = vcmp.lt.f32.partialorder %v3809_v42, %v3762_v34 }
  0xb3   :  { %8455 = vst [vmem:[#allocation155_spill] sm:$0xff] %v3701_v37  ;;  %v1036_v37 = vsub.f32 %v3619_v60, %v2417_v29  ;;  %v3837_v60 = vand.u32 2147483647, %v1420_v3 }
  0xb4   :  { %8456 = vst [vmem:[#allocation156_spill] sm:$0xff] %v3710_v10  ;;  %v906_v10 = vsel %vm7824_vm13, 2, %v520_v4  ;;  %v1421_v4 = vsub.f32 %v3597_v51, %v2479_v43 }
  0xb5   :  { %8457 = vst [vmem:[#allocation157_spill] sm:$0xff] %v3717_v25  ;;  %v1035_v25 = vsub.f32 %v3597_v51, %v2417_v29  ;;  %v3832_v29 = vsel %vm7827_vm11, %v3809_v42, %v3762_v34  ;;  %v3847_v51 = vand.u32 2147483647, %v1422_v22 }
  0xb6   :  { %8458 = vst [vmem:[#allocation158_spill] sm:$0xff] %v3724_v8  ;;  %v3821_v8 = vand.u32 2147483647, %v1036_v37  ;;  %v3839_v7 = vand.u32 2147483647, %v1421_v4 }
  0xb7   :  { %8459 = vst [vmem:[#allocation159_spill] sm:$0xff] %v3731_v53  ;;  %v1423_v53 = vsub.f32 %v3635_v13, %v2479_v43  ;;  %v1290_v43 = vsel %vm7827_vm11, 3, %v904_v11  ;;  %v3849_v13 = vld [vmem:[#allocation2 + $0xc0] sm:$0xff]  ;;  %v3875_v11 = vld [vmem:[#allocation2 + $0xc8] sm:$0xff]  ;;  %vm8028_vm11 = vcmp.lt.f32.partialorder %v3837_v60, %v3832_v29 }
  0xb8   :  { %8460 = vst [vmem:[#allocation160_spill] sm:$0xff] %v3749_v56  ;;  %v3823_v56 = vand.u32 2147483647, %v1037_v36  ;;  %vm7847_vm15 = vcmp.lt.f32.partialorder %v3821_v8, %v3788_v33 }
  0xb9   :  { %8461 = vst [vmem:[#allocation161_spill] sm:$0xff] %v3751_v47  ;;  %v3819_v47 = vand.u32 2147483647, %v1035_v25  ;;  %v3863_v36 = vsel %vm7847_vm15, %v3821_v8, %v3788_v33  ;;  %v1292_v5 = vsel %vm7847_vm15, 3, %v906_v10  ;;  %v3883_v22 = vand.u32 2147483647, %v1423_v53 }
  0xba   :  { %8462 = vst [vmem:[#allocation162_spill] sm:$0xff] %v3762_v34  ;;  %vm7832_vm14 = vcmp.lt.f32.partialorder %v3823_v56, %v3795_v41  ;;  %v3887_v34 = vld [vmem:[#allocation2 + $0xd0] sm:$0xff]  ;;  %vm7846_vm7 = vcmp.lt.f32.partialorder %v3847_v51, %v3863_v36  ;;  %v1612_v10 = vsel %vm8028_vm11, 4, %v1290_v43 }
  0xbb   :  { %8463 = vst [vmem:[#allocation163_spill] sm:$0xff] %v3778_v9  ;;  %vm7830_vm13 = vcmp.lt.f32.partialorder %v3819_v47, %v3778_v9  ;;  %v3870_v37 = vsel %vm7832_vm14, %v3823_v56, %v3795_v41  ;;  %v1293_v4 = vsel %vm7832_vm14, 3, %v907_v49 }
  0xbc   :  { %8464 = vst [vmem:[#allocation164_spill] sm:$0xff] %v3788_v33  ;;  %v3856_v3 = vsel %vm7830_vm13, %v3819_v47, %v3778_v9  ;;  %v1291_v25 = vsel %vm7830_vm13, 3, %v905_v35  ;;  %v3898_v35 = vld [vmem:[#allocation5] ss:$0 sm:$0xff]  ;;  %vm7844_vm14 = vcmp.lt.f32.partialorder %v3883_v22, %v3870_v37 }
  0xbd   :  { %8465 = vst [vmem:[#allocation165_spill] sm:$0xff] %v3795_v41  ;;  %vm7848_vm13 = vcmp.lt.f32.partialorder %v3839_v7, %v3856_v3  ;;  %v136_v53 = vsub.f32 %v3849_v13, %v3898_v35  ;;  %v1614_v41 = vsel %vm7846_vm7, 4, %v1292_v5  ;;  %v1615_v43 = vsel %vm7844_vm14, 4, %v1293_v4  ;;  %v3923_v5 = vld [vmem:[#allocation5 + $0x1] ss:$0 sm:$0xff] }
  0xbe   :  { %8466 = vst [vmem:[#allocation166_spill] sm:$0xff] %v3809_v42  ;;  %v3889_v42 = vld [vmem:[#allocation2 + $0xd8] sm:$0xff]  ;;  %v1613_v49 = vsel %vm7848_vm13, 4, %v1291_v25 }
  0xbf   :  { %8467 = vst [vmem:[#allocation167_spill] sm:$0xff] %v3819_v47  ;;  %v1799_v33 = vpack.c.b16 %v1613_v49, %v1612_v10  ;;  %v139_v9 = vsub.f32 %v3889_v42, %v3898_v35  ;;  %v3919_v25 = vand.u32 2147483647, %v136_v53  ;;  %v267_v10 = vsub.f32 %v3875_v11, %v3923_v5 }
  0xc0   :  { %8468 = vst [vmem:[#allocation168_spill] sm:$0xff] %v3821_v8  ;;  %v138_v8 = vsub.f32 %v3887_v34, %v3898_v35  ;;  %v268_v49 = vsub.f32 %v3887_v34, %v3923_v5 }
  0xc1   :  { %8469 = vst [vmem:[#allocation169_spill] sm:$0xff] %v3823_v56  ;;  %v137_v56 = vsub.f32 %v3875_v11, %v3898_v35  ;;  %v3929_v4 = vand.u32 2147483647, %v139_v9 }
  0xc2   :  { %8470 = vst [vmem:[#allocation170_spill] sm:$0xff] %v3832_v29  ;;  %v3945_v9 = vand.u32 2147483647, %v268_v49 }
  0xc3   :  { %8471 = vst [vmem:[#allocation171_spill] sm:$0xff] %v3837_v60 }
  0xc4   :  { %8472 = vst [vmem:[#allocation172_spill] sm:$0xff] %v3839_v7  ;;  %v3921_v7 = vand.u32 2147483647, %v137_v56  ;;  %v269_v56 = vsub.f32 %v3889_v42, %v3923_v5 }
  0xc5   :  { %8473 = vst [vmem:[#allocation173_spill] sm:$0xff] %v3847_v51  ;;  %v3927_v51 = vand.u32 2147483647, %v138_v8 }
  0xc6   :  { %8474 = vst [vmem:[#allocation174_spill] sm:$0xff] %v3856_v3  ;;  %v1800_v3 = vpack.c.b16 %v1615_v43, %v1614_v41  ;;  %v3939_v43 = vld [vmem:[#allocation5 + $0x2] ss:$0 sm:$0xff] }
  0xc7   :  { %8475 = vst [vmem:[#allocation175_spill] sm:$0xff] %v3863_v36  ;;  %v266_v36 = vsub.f32 %v3849_v13, %v3923_v5  ;;  %v652_v8 = vsub.f32 %v3849_v13, %v3939_v43  ;;  %vm7858_vm15 = vcmp.lt.f32.partialorder %v3945_v9, %v3927_v51 }
  0xc8   :  { %8476 = vst [vmem:[#allocation176_spill] sm:$0xff] %v3870_v37  ;;  %v1801_v41 = vpack.c.b8 %v1800_v3, %v1799_v33  ;;  %v3943_v37 = vand.u32 2147483647, %v267_v10  ;;  %v654_v33 = vsub.f32 %v3887_v34, %v3939_v43  ;;  %v3951_v3 = vand.u32 2147483647, %v269_v56 }
  0xc9   :  { %8477 = vst [vmem:[#allocation177_spill] sm:$0xff] %v3883_v22  ;;  %v3937_v53 = vand.u32 2147483647, %v266_v36  ;;  %v653_v22 = vsub.f32 %v3875_v11, %v3939_v43  ;;  %v655_v36 = vsub.f32 %v3889_v42, %v3939_v43  ;;  %v3957_v47 = vand.u32 2147483647, %v652_v8 }
  0xca   :  { %8478 = vst [vmem:[#allocation178_spill] sm:$0xff] %v3919_v25  ;;  %vm7855_vm7 = vcmp.lt.f32.partialorder %v3943_v37, %v3921_v7  ;;  %vm7859_vm13 = vcmp.lt.f32.partialorder %v3951_v3, %v3929_v4  ;;  %v3988_v56 = vsel %vm7858_vm15, %v3945_v9, %v3927_v51 }
  0xcb   :  { %8479 = vst [vmem:[#allocation179_spill] sm:$0xff] %v3921_v7  ;;  %vm7860_vm14 = vcmp.lt.f32.partialorder %v3937_v53, %v3919_v25  ;;  %v523_v8 = vsel %vm7855_vm7, 1, %v8359_v18  ;;  %v525_v29 = vsel %vm7859_vm13, 1, %v8359_v18  ;;  %v4009_v60 = vand.u32 2147483647, %v653_v22 }
  0xcc   :  { %8480 = vst [vmem:[#allocation180_spill] sm:$0xff] %v3927_v51  ;;  %v3968_v10 = vsel %vm7860_vm14, %v3937_v53, %v3919_v25  ;;  %v522_v49 = vsel %vm7860_vm14, 1, %v8359_v18  ;;  %v3999_v25 = vsel %vm7859_vm13, %v3951_v3, %v3929_v4  ;;  %v1038_v51 = vsub.f32 %v3849_v13, %v4017_v38 }
  0xcd   :  { %8481 = vst [vmem:[#allocation181_spill] sm:$0xff] %v3929_v4 }
  0xce   :  { %8482 = vst [vmem:[#allocation182_spill] sm:$0xff] %v3937_v53  ;;  %v524_v53 = vsel %vm7858_vm15, 1, %v8359_v18 }
  0xcf   :  { %8483 = vst [vmem:[#allocation183_spill] sm:$0xff] %v3943_v37 }
  0xd0   :  { %8484 = vst [vmem:[#allocation184_spill] sm:$0xff] %v3945_v9 }
  0xd1   :  { %1837 = vst [vmem:[#allocation8 + $0x28] sm:$0xff] %v1801_v41  ;;  %v3981_v41 = vsel %vm7855_vm7, %v3943_v37, %v3921_v7  ;;  %v4011_v7 = vand.u32 2147483647, %v654_v33  ;;  %v4013_v37 = vand.u32 2147483647, %v655_v36  ;;  %vm7876_vm7 = vcmp.lt.f32.partialorder %v3957_v47, %v3968_v10 }
  0xd2   :  { %8485 = vst [vmem:[#allocation185_spill] sm:$0xff] %v3951_v3  ;;  %vm7875_vm15 = vcmp.lt.f32.partialorder %v4009_v60, %v3981_v41  ;;  %v4028_v22 = vsel %vm7876_vm7, %v3957_v47, %v3968_v10  ;;  %v908_v33 = vsel %vm7876_vm7, 2, %v522_v49  ;;  %v1039_v36 = vsub.f32 %v3875_v11, %v4017_v38 }
  0xd3   :  { %8486 = vst [vmem:[#allocation186_spill] sm:$0xff] %v3957_v47  ;;  %vm7874_vm13 = vcmp.lt.f32.partialorder %v4011_v7, %v3988_v56  ;;  %vm7873_vm14 = vcmp.lt.f32.partialorder %v4013_v37, %v3999_v25  ;;  %v4044_v4 = vsel %vm7875_vm15, %v4009_v60, %v3981_v41  ;;  %v909_v49 = vsel %vm7875_vm15, 2, %v523_v8 }
  0xd4   :  { %8487 = vst [vmem:[#allocation187_spill] sm:$0xff] %v3968_v10  ;;  %v4054_v3 = vsel %vm7874_vm13, %v4011_v7, %v3988_v56  ;;  %v4061_v9 = vsel %vm7873_vm14, %v4013_v37, %v3999_v25  ;;  %v910_v10 = vsel %vm7874_vm13, 2, %v524_v53  ;;  %v911_v8 = vsel %vm7873_vm14, 2, %v525_v29 }
  0xd5   :  { %8488 = vst [vmem:[#allocation188_spill] sm:$0xff] %v3981_v41  ;;  %v1040_v41 = vsub.f32 %v3887_v34, %v4017_v38  ;;  %v4073_v47 = vand.u32 2147483647, %v1038_v51  ;;  %v4075_v59 = vand.u32 2147483647, %v1039_v36  ;;  %v1425_v53 = vsub.f32 %v3875_v11, %v4077_v48  ;;  %v4123_v36 = vld [vmem:[#allocation2 + $0xe0] sm:$0xff] }
  0xd6   :  { %8489 = vst [vmem:[#allocation189_spill] sm:$0xff] %v3988_v56  ;;  %v1424_v56 = vsub.f32 %v3849_v13, %v4077_v48  ;;  %v1426_v29 = vsub.f32 %v3887_v34, %v4077_v48 }
  0xd7   :  { %8490 = vst [vmem:[#allocation190_spill] sm:$0xff] %v3999_v25  ;;  %v1427_v25 = vsub.f32 %v3889_v42, %v4077_v48  ;;  %vm7882_vm14 = vcmp.lt.f32.partialorder %v4073_v47, %v4028_v22  ;;  %vm7881_vm13 = vcmp.lt.f32.partialorder %v4075_v59, %v4044_v4 }
  0xd8   :  { %8491 = vst [vmem:[#allocation191_spill] sm:$0xff] %v4009_v60  ;;  %v1041_v60 = vsub.f32 %v3889_v42, %v4017_v38  ;;  %v4100_v13 = vsel %vm7882_vm14, %v4073_v47, %v4028_v22  ;;  %v4107_v42 = vsel %vm7881_vm13, %v4075_v59, %v4044_v4  ;;  %v1294_v34 = vsel %vm7882_vm14, 3, %v908_v33 }
  0xd9   :  { %8492 = vst [vmem:[#allocation192_spill] sm:$0xff] %v4011_v7  ;;  %v4119_v11 = vand.u32 2147483647, %v1424_v56  ;;  %v4125_v7 = vld [vmem:[#allocation2 + $0xe8] sm:$0xff] }
  0xda   :  { %8493 = vst [vmem:[#allocation193_spill] sm:$0xff] %v4013_v37  ;;  %v4087_v37 = vand.u32 2147483647, %v1040_v41  ;;  %v4089_v51 = vand.u32 2147483647, %v1041_v60  ;;  %v1295_v60 = vsel %vm7881_vm13, 3, %v909_v49 }
  0xdb   :  { %8494 = vst [vmem:[#allocation194_spill] sm:$0xff] %v4028_v22  ;;  %v4121_v41 = vand.u32 2147483647, %v1425_v53  ;;  %v4151_v22 = vand.u32 2147483647, %v1427_v25  ;;  %vm7899_vm13 = vcmp.lt.f32.partialorder %v4119_v11, %v4100_v13  ;;  %v140_v25 = vsub.f32 %v4123_v36, %v3898_v35 }
  0xdc   :  { %8495 = vst [vmem:[#allocation195_spill] sm:$0xff] %v4044_v4  ;;  %vm7885_vm15 = vcmp.lt.f32.partialorder %v4087_v37, %v4054_v3  ;;  %vm7884_vm7 = vcmp.lt.f32.partialorder %v4089_v51, %v4061_v9  ;;  %v4147_v4 = vld [vmem:[#allocation2 + $0xf0] sm:$0xff] }
  0xdd   :  { %8496 = vst [vmem:[#allocation196_spill] sm:$0xff] %v4054_v3  ;;  %v4132_v33 = vsel %vm7885_vm15, %v4087_v37, %v4054_v3  ;;  %v4139_v56 = vsel %vm7884_vm7, %v4089_v51, %v4061_v9  ;;  %v1296_v49 = vsel %vm7885_vm15, 3, %v910_v10  ;;  %v1297_v53 = vsel %vm7884_vm7, 3, %v911_v8 }
  0xde   :  { %8497 = vst [vmem:[#allocation197_spill] sm:$0xff] %v4061_v9  ;;  %vm7898_vm14 = vcmp.lt.f32.partialorder %v4121_v41, %v4107_v42  ;;  %v1616_v10 = vsel %vm7899_vm13, 4, %v1294_v34  ;;  %vm7896_vm15 = vcmp.lt.f32.partialorder %v4151_v22, %v4139_v56  ;;  %v142_v34 = vsub.f32 %v4147_v4, %v3898_v35 }
  0xdf   :  { %8498 = vst [vmem:[#allocation198_spill] sm:$0xff] %v4073_v47  ;;  %v4157_v47 = vld [vmem:[#allocation2 + $0xf8] sm:$0xff]  ;;  %v1617_v8 = vsel %vm7898_vm14, 4, %v1295_v60 }
  0xe0   :  { %8499 = vst [vmem:[#allocation199_spill] sm:$0xff] %v4075_v59  ;;  %v4149_v59 = vand.u32 2147483647, %v1426_v29  ;;  %v141_v29 = vsub.f32 %v4125_v7, %v3898_v35  ;;  %v1802_v9 = vpack.c.b16 %v1617_v8, %v1616_v10  ;;  %v4187_v10 = vand.u32 2147483647, %v142_v34 }
  0xe1   :  { %8500 = vst [vmem:[#allocation200_spill] sm:$0xff] %v4087_v37  ;;  %v270_v8 = vsub.f32 %v4123_v36, %v3923_v5  ;;  %v657_v34 = vsub.f32 %v4125_v7, %v3939_v43 }
  0xe2   :  { %8501 = vst [vmem:[#allocation201_spill] sm:$0xff] %v4089_v51  ;;  %vm7897_vm7 = vcmp.lt.f32.partialorder %v4149_v59, %v4132_v33  ;;  %v4183_v51 = vand.u32 2147483647, %v140_v25  ;;  %v4185_v37 = vand.u32 2147483647, %v141_v29  ;;  %v273_v25 = vsub.f32 %v4157_v47, %v3923_v5 }
  0xe3   :  { %8502 = vst [vmem:[#allocation202_spill] sm:$0xff] %v4100_v13  ;;  %v1618_v60 = vsel %vm7897_vm7, 4, %v1296_v49  ;;  %v271_v49 = vsub.f32 %v4125_v7, %v3923_v5  ;;  %v656_v29 = vsub.f32 %v4123_v36, %v3939_v43 }
  0xe4   :  { %8503 = vst [vmem:[#allocation203_spill] sm:$0xff] %v4107_v42  ;;  %v1619_v42 = vsel %vm7896_vm15, 4, %v1297_v53  ;;  %v272_v53 = vsub.f32 %v4147_v4, %v3923_v5 }
  0xe5   :  { %8504 = vst [vmem:[#allocation204_spill] sm:$0xff] %v4119_v11  ;;  %v1803_v3 = vpack.c.b16 %v1619_v42, %v1618_v60  ;;  %v4199_v42 = vand.u32 2147483647, %v270_v8  ;;  %v4219_v8 = vand.u32 2147483647, %v657_v34 }
  0xe6   :  { %8505 = vst [vmem:[#allocation205_spill] sm:$0xff] %v4121_v41  ;;  %v143_v41 = vsub.f32 %v4157_v47, %v3898_v35  ;;  %v4207_v60 = vand.u32 2147483647, %v272_v53 }
  0xe7   :  { %8506 = vst [vmem:[#allocation206_spill] sm:$0xff] %v4132_v33  ;;  %v658_v33 = vsub.f32 %v4147_v4, %v3939_v43  ;;  %vm7904_vm15 = vcmp.lt.f32.partialorder %v4199_v42, %v4183_v51 }
  0xe8   :  { %8507 = vst [vmem:[#allocation207_spill] sm:$0xff] %v4139_v56  ;;  %v4191_v13 = vand.u32 2147483647, %v143_v41  ;;  %v1804_v56 = vpack.c.b8 %v1803_v3, %v1802_v9  ;;  %v4205_v41 = vand.u32 2147483647, %v271_v49  ;;  %v659_v9 = vsub.f32 %v4157_v47, %v3939_v43 }
  0xe9   :  { %8508 = vst [vmem:[#allocation208_spill] sm:$0xff] %v4149_v59  ;;  %v4217_v3 = vand.u32 2147483647, %v656_v29  ;;  %vm7907_vm14 = vcmp.lt.f32.partialorder %v4207_v60, %v4187_v10  ;;  %v526_v29 = vsel %vm7904_vm15, 1, %v8359_v18  ;;  %v4271_v52 = vand.u32 2147483647, %v658_v33 }
  0xea   :  { %8509 = vst [vmem:[#allocation209_spill] sm:$0xff] %v4151_v22  ;;  %v4209_v22 = vand.u32 2147483647, %v273_v25  ;;  %vm7905_vm7 = vcmp.lt.f32.partialorder %v4205_v41, %v4185_v37  ;;  %v4246_v53 = vsel %vm7907_vm14, %v4207_v60, %v4187_v10  ;;  %v528_v59 = vsel %vm7907_vm14, 1, %v8359_v18 }
  0xeb   :  { %8510 = vst [vmem:[#allocation210_spill] sm:$0xff] %v4183_v51  ;;  %v4239_v49 = vsel %vm7905_vm7, %v4205_v41, %v4185_v37  ;;  %v527_v34 = vsel %vm7905_vm7, 1, %v8359_v18  ;;  %v4273_v2 = vand.u32 2147483647, %v659_v9  ;;  %vm7923_vm14 = vcmp.lt.f32.partialorder %v4271_v52, %v4246_v53 }
  0xec   :  { %8511 = vst [vmem:[#allocation211_spill] sm:$0xff] %v4185_v37  ;;  %vm7909_vm13 = vcmp.lt.f32.partialorder %v4209_v22, %v4191_v13  ;;  %vm7924_vm7 = vcmp.lt.f32.partialorder %v4219_v8, %v4239_v49  ;;  %v1042_v37 = vsub.f32 %v4123_v36, %v4017_v38 }
  0xed   :  { %8512 = vst [vmem:[#allocation212_spill] sm:$0xff] %v4187_v10  ;;  %v4253_v25 = vsel %vm7909_vm13, %v4209_v22, %v4191_v13  ;;  %v529_v11 = vsel %vm7909_vm13, 1, %v8359_v18  ;;  %v4295_v9 = vsel %vm7924_vm7, %v4219_v8, %v4239_v49  ;;  %v913_v10 = vsel %vm7924_vm7, 2, %v527_v34 }
  0xee   :  { %8513 = vst [vmem:[#allocation213_spill] sm:$0xff] %v4191_v13  ;;  %vm7922_vm13 = vcmp.lt.f32.partialorder %v4273_v2, %v4253_v25  ;;  %v1044_v34 = vsub.f32 %v4147_v4, %v4017_v38 }
  0xef   :  { %8514 = vst [vmem:[#allocation214_spill] sm:$0xff] %v4199_v42 }
  0xf0   :  { %8515 = vst [vmem:[#allocation215_spill] sm:$0xff] %v4205_v41  ;;  %v915_v41 = vsel %vm7922_vm13, 2, %v529_v11  ;;  %v4339_v11 = vand.u32 2147483647, %v1044_v34 }
  0xf1   :  { %8516 = vst [vmem:[#allocation216_spill] sm:$0xff] %v4207_v60  ;;  %v914_v60 = vsel %vm7923_vm14, 2, %v528_v59  ;;  %v1045_v59 = vsub.f32 %v4157_v47, %v4017_v38 }
  0xf2   :  { %8517 = vst [vmem:[#allocation217_spill] sm:$0xff] %v4209_v22  ;;  %v4307_v22 = vsel %vm7923_vm14, %v4271_v52, %v4246_v53 }
  0xf3   :  { %1838 = vst [vmem:[#allocation8 + $0x30] sm:$0xff] %v1804_v56  ;;  %v4232_v56 = vsel %vm7904_vm15, %v4199_v42, %v4183_v51  ;;  %vm7933_vm7 = vcmp.lt.f32.partialorder %v4339_v11, %v4307_v22 }
  0xf4   :  { %8518 = vst [vmem:[#allocation218_spill] sm:$0xff] %v4217_v3  ;;  %vm7925_vm15 = vcmp.lt.f32.partialorder %v4217_v3, %v4232_v56 }
  0xf5   :  { %8519 = vst [vmem:[#allocation219_spill] sm:$0xff] %v4219_v8  ;;  %v4288_v33 = vsel %vm7925_vm15, %v4217_v3, %v4232_v56  ;;  %v912_v13 = vsel %vm7925_vm15, 2, %v526_v29  ;;  %v4320_v29 = vsel %vm7922_vm13, %v4273_v2, %v4253_v25  ;;  %v4345_v3 = vand.u32 2147483647, %v1045_v59 }
  0xf6   :  { %8520 = vst [vmem:[#allocation220_spill] sm:$0xff] %v4232_v56  ;;  %v1043_v56 = vsub.f32 %v4125_v7, %v4017_v38  ;;  %v1300_v59 = vsel %vm7933_vm7, 3, %v914_v60 }
  0xf7   :  { %8521 = vst [vmem:[#allocation221_spill] sm:$0xff] %v4239_v49  ;;  %v1429_v49 = vsub.f32 %v4125_v7, %v4077_v48  ;;  %v4367_v7 = vld [vmem:[#allocation2 + $0x100] sm:$0xff]  ;;  %vm7932_vm15 = vcmp.lt.f32.partialorder %v4345_v3, %v4320_v29 }
  0xf8   :  { %8522 = vst [vmem:[#allocation222_spill] sm:$0xff] %v4246_v53  ;;  %v4331_v53 = vand.u32 2147483647, %v1042_v37  ;;  %v4337_v8 = vand.u32 2147483647, %v1043_v56  ;;  %v4383_v56 = vsel %vm7933_vm7, %v4339_v11, %v4307_v22  ;;  %v4395_v34 = vsel %vm7932_vm15, %v4345_v3, %v4320_v29 }
  0xf9   :  { %8523 = vst [vmem:[#allocation223_spill] sm:$0xff] %v4253_v25  ;;  %v1430_v25 = vsub.f32 %v4147_v4, %v4077_v48  ;;  %v144_v60 = vsub.f32 %v4367_v7, %v3898_v35 }
  0xfa   :  { %8524 = vst [vmem:[#allocation224_spill] sm:$0xff] %v4271_v52  ;;  %v1428_v52 = vsub.f32 %v4123_v36, %v4077_v48  ;;  %vm7930_vm13 = vcmp.lt.f32.partialorder %v4331_v53, %v4288_v33  ;;  %v4351_v36 = vand.u32 2147483647, %v1429_v49  ;;  %vm7929_vm14 = vcmp.lt.f32.partialorder %v4337_v8, %v4295_v9  ;;  %v4388_v49 = vld [vmem:[#allocation2 + $0x108] sm:$0xff] }
  0xfb   :  { %8525 = vst [vmem:[#allocation225_spill] sm:$0xff] %v4273_v2  ;;  %v1431_v2 = vsub.f32 %v4157_v47, %v4077_v48  ;;  %v4362_v47 = vsel %vm7930_vm13, %v4331_v53, %v4288_v33  ;;  %v4376_v4 = vsel %vm7929_vm14, %v4337_v8, %v4295_v9 }
  0xfc   :  { %8526 = vst [vmem:[#allocation226_spill] sm:$0xff] %v4288_v33  ;;  %v4349_v37 = vand.u32 2147483647, %v1428_v52  ;;  %v1298_v52 = vsel %vm7930_vm13, 3, %v912_v13  ;;  %v1299_v13 = vsel %vm7929_vm14, 3, %v913_v10  ;;  %v1301_v33 = vsel %vm7932_vm15, 3, %v915_v41 }
  0xfd   :  { %8527 = vst [vmem:[#allocation227_spill] sm:$0xff] %v4295_v9  ;;  %v4405_v10 = vld [vmem:[#allocation2 + $0x110] sm:$0xff]  ;;  %v4407_v9 = vand.u32 2147483647, %v1431_v2  ;;  %vm7947_vm13 = vcmp.lt.f32.partialorder %v4351_v36, %v4376_v4 }
  0xfe   :  { %8528 = vst [vmem:[#allocation228_spill] sm:$0xff] %v4307_v22  ;;  %vm7948_vm14 = vcmp.lt.f32.partialorder %v4349_v37, %v4362_v47  ;;  %v1621_v2 = vsel %vm7947_vm13, 4, %v1299_v13  ;;  %v146_v22 = vsub.f32 %v4405_v10, %v3898_v35  ;;  %v1048_v26 = vsub.f32 %v4405_v10, %v4017_v38 }
  0xff   :  { %8529 = vst [vmem:[#allocation229_spill] sm:$0xff] %v4320_v29  ;;  %v1620_v41 = vsel %vm7948_vm14, 4, %v1298_v52  ;;  %vm7945_vm7 = vcmp.lt.f32.partialorder %v4407_v9, %v4395_v34 }
 0x100   :  { %8530 = vst [vmem:[#allocation230_spill] sm:$0xff] %v4331_v53  ;;  %v4403_v53 = vand.u32 2147483647, %v1430_v25  ;;  %v145_v25 = vsub.f32 %v4388_v49, %v3898_v35  ;;  %v1623_v52 = vsel %vm7945_vm7, 4, %v1301_v33  ;;  %v276_v33 = vsub.f32 %v4405_v10, %v3923_v5 }
 0x101   :  { %8531 = vst [vmem:[#allocation231_spill] sm:$0xff] %v4337_v8  ;;  %v4413_v8 = vld [vmem:[#allocation2 + $0x118] sm:$0xff] }
 0x102   :  { %8532 = vst [vmem:[#allocation232_spill] sm:$0xff] %v4339_v11  ;;  %vm7946_vm15 = vcmp.lt.f32.partialorder %v4403_v53, %v4383_v56  ;;  %v147_v13 = vsub.f32 %v4413_v8, %v3898_v35  ;;  %v1049_v57 = vsub.f32 %v4413_v8, %v4017_v38 }
 0x103   :  { %8533 = vst [vmem:[#allocation233_spill] sm:$0xff] %v4345_v3  ;;  %v1622_v29 = vsel %vm7946_vm15, 4, %v1300_v59  ;;  %v1805_v3 = vpack.c.b16 %v1621_v2, %v1620_v41  ;;  %v274_v59 = vsub.f32 %v4367_v7, %v3923_v5  ;;  %v275_v41 = vsub.f32 %v4388_v49, %v3923_v5 }
 0x104   :  { %8534 = vst [vmem:[#allocation234_spill] sm:$0xff] %v4349_v37  ;;  %v1806_v11 = vpack.c.b16 %v1623_v52, %v1622_v29  ;;  %v4449_v2 = vand.u32 2147483647, %v147_v13 }
 0x105   :  { %8535 = vst [vmem:[#allocation235_spill] sm:$0xff] %v4351_v36  ;;  %v4441_v36 = vand.u32 2147483647, %v145_v25  ;;  %v660_v25 = vsub.f32 %v4367_v7, %v3939_v43  ;;  %v4459_v52 = vand.u32 2147483647, %v275_v41 }
 0x106   :  { %8536 = vst [vmem:[#allocation236_spill] sm:$0xff] %v4362_v47  ;;  %v4443_v47 = vand.u32 2147483647, %v146_v22  ;;  %v1807_v29 = vpack.c.b8 %v1806_v11, %v1805_v3  ;;  %v4457_v22 = vand.u32 2147483647, %v274_v59 }
 0x107   :  { %8537 = vst [vmem:[#allocation237_spill] sm:$0xff] %v4376_v4  ;;  %v4439_v4 = vand.u32 2147483647, %v144_v60  ;;  %v277_v60 = vsub.f32 %v4413_v8, %v3923_v5  ;;  %vm7953_vm15 = vcmp.lt.f32.partialorder %v4459_v52, %v4441_v36  ;;  %v4475_v3 = vand.u32 2147483647, %v660_v25 }
 0x108   :  { %8538 = vst [vmem:[#allocation238_spill] sm:$0xff] %v4383_v56  ;;  %v662_v56 = vsub.f32 %v4405_v10, %v3939_v43  ;;  %v531_v25 = vsel %vm7953_vm15, 1, %v8359_v18 }
 0x109   :  { %8539 = vst [vmem:[#allocation239_spill] sm:$0xff] %v4395_v34  ;;  %v661_v34 = vsub.f32 %v4388_v49, %v3939_v43  ;;  %v4465_v13 = vand.u32 2147483647, %v277_v60  ;;  %vm7952_vm7 = vcmp.lt.f32.partialorder %v4457_v22, %v4439_v4 }
 0x10a   :  { %8540 = vst [vmem:[#allocation240_spill] sm:$0xff] %v4403_v53  ;;  %v663_v53 = vsub.f32 %v4413_v8, %v3939_v43  ;;  %v4488_v59 = vsel %vm7952_vm7, %v4457_v22, %v4439_v4  ;;  %v530_v60 = vsel %vm7952_vm7, 1, %v8359_v18  ;;  %v4527_v51 = vand.u32 2147483647, %v662_v56 }
 0x10b   :  { %8541 = vst [vmem:[#allocation241_spill] sm:$0xff] %v4407_v9  ;;  %v4463_v9 = vand.u32 2147483647, %v276_v33  ;;  %v4477_v11 = vand.u32 2147483647, %v661_v34  ;;  %vm7957_vm14 = vcmp.lt.f32.partialorder %v4465_v13, %v4449_v2  ;;  %v4495_v34 = vsel %vm7953_vm15, %v4459_v52, %v4441_v36 }
 0x10c   :  { %8542 = vst [vmem:[#allocation242_spill] sm:$0xff] %v4439_v4  ;;  %v4509_v33 = vsel %vm7957_vm14, %v4465_v13, %v4449_v2  ;;  %v533_v37 = vsel %vm7957_vm14, 1, %v8359_v18  ;;  %v4529_v42 = vand.u32 2147483647, %v663_v53  ;;  %vm7973_vm7 = vcmp.lt.f32.partialorder %v4475_v3, %v4488_v59 }
 0x10d   :  { %8543 = vst [vmem:[#allocation243_spill] sm:$0xff] %v4441_v36  ;;  %vm7956_vm13 = vcmp.lt.f32.partialorder %v4463_v9, %v4443_v47  ;;  %vm7972_vm15 = vcmp.lt.f32.partialorder %v4477_v11, %v4495_v34  ;;  %v1046_v36 = vsub.f32 %v4367_v7, %v4017_v38  ;;  %v4548_v53 = vsel %vm7973_vm7, %v4475_v3, %v4488_v59 }
 0x10e   :  { %8544 = vst [vmem:[#allocation244_spill] sm:$0xff] %v4443_v47  ;;  %v4502_v41 = vsel %vm7956_vm13, %v4463_v9, %v4443_v47  ;;  %v1047_v47 = vsub.f32 %v4388_v49, %v4017_v38  ;;  %vm7970_vm14 = vcmp.lt.f32.partialorder %v4529_v42, %v4509_v33  ;;  %v4555_v56 = vsel %vm7972_vm15, %v4477_v11, %v4495_v34 }
 0x10f   :  { %8545 = vst [vmem:[#allocation245_spill] sm:$0xff] %v4449_v2 }
 0x110   :  { %8546 = vst [vmem:[#allocation246_spill] sm:$0xff] %v4457_v22  ;;  %v919_v22 = vsel %vm7970_vm14, 2, %v533_v37  ;;  %v1434_v37 = vsub.f32 %v4405_v10, %v4077_v48 }
 0x111   :  { %8547 = vst [vmem:[#allocation247_spill] sm:$0xff] %v4459_v52  ;;  %v917_v52 = vsel %vm7972_vm15, 2, %v531_v25  ;;  %v1432_v25 = vsub.f32 %v4367_v7, %v4077_v48  ;;  %v4631_v7 = vld [vmem:[#allocation2 + $0x128] sm:$0xff] }
 0x112   :  { %8548 = vst [vmem:[#allocation248_spill] sm:$0xff] %v4463_v9  ;;  %v916_v9 = vsel %vm7973_vm7, 2, %v530_v60  ;;  %v4589_v60 = vand.u32 2147483647, %v1047_v47 }
 0x113   :  { %8549 = vst [vmem:[#allocation249_spill] sm:$0xff] %v4465_v13  ;;  %v4569_v13 = vsel %vm7970_vm14, %v4529_v42, %v4509_v33 }
 0x114   :  { %1839 = vst [vmem:[#allocation8 + $0x38] sm:$0xff] %v1807_v29  ;;  %v532_v29 = vsel %vm7956_vm13, 1, %v8359_v18  ;;  %vm7971_vm13 = vcmp.lt.f32.partialorder %v4527_v51, %v4502_v41 }
 0x115   :  { %8550 = vst [vmem:[#allocation250_spill] sm:$0xff] %v4475_v3  ;;  %v4562_v2 = vsel %vm7971_vm13, %v4527_v51, %v4502_v41  ;;  %v918_v4 = vsel %vm7971_vm13, 2, %v532_v29  ;;  %v1433_v29 = vsub.f32 %v4388_v49, %v4077_v48  ;;  %vm7980_vm13 = vcmp.lt.f32.partialorder %v4589_v60, %v4555_v56 }
 0x116   :  { %8551 = vst [vmem:[#allocation251_spill] sm:$0xff] %v4477_v11  ;;  %v4661_v3 = vand.u32 2147483647, %v1434_v37 }
 0x117   :  { %8552 = vst [vmem:[#allocation252_spill] sm:$0xff] %v4488_v59  ;;  %v4587_v59 = vand.u32 2147483647, %v1046_v36  ;;  %v4607_v36 = vand.u32 2147483647, %v1432_v25 }
 0x118   :  { %8553 = vst [vmem:[#allocation253_spill] sm:$0xff] %v4495_v34  ;;  %v4609_v47 = vand.u32 2147483647, %v1433_v29  ;;  %v1303_v29 = vsel %vm7980_vm13, 3, %v917_v52 }
 0x119   :  { %8554 = vst [vmem:[#allocation254_spill] sm:$0xff] %v4502_v41  ;;  %v4595_v41 = vand.u32 2147483647, %v1048_v26  ;;  %vm7979_vm14 = vcmp.lt.f32.partialorder %v4587_v59, %v4548_v53  ;;  %v4627_v26 = vsel %vm7980_vm13, %v4589_v60, %v4555_v56 }
 0x11a   :  { %8555 = vst [vmem:[#allocation255_spill] sm:$0xff] %v4509_v33  ;;  %v4597_v33 = vand.u32 2147483647, %v1049_v57  ;;  %v4620_v57 = vsel %vm7979_vm14, %v4587_v59, %v4548_v53  ;;  %v1302_v25 = vsel %vm7979_vm14, 3, %v916_v9  ;;  %vm7994_vm13 = vcmp.lt.f32.partialorder %v4609_v47, %v4627_v26  ;;  %v4669_v9 = vld [vmem:[#allocation2 + $0x138] sm:$0xff] }
 0x11b   :  { %8556 = vst [vmem:[#allocation256_spill] sm:$0xff] %v4527_v51  ;;  %vm7982_vm15 = vcmp.lt.f32.partialorder %v4595_v41, %v4562_v2  ;;  %v4653_v51 = vld [vmem:[#allocation2 + $0x130] sm:$0xff]  ;;  %vm7995_vm14 = vcmp.lt.f32.partialorder %v4607_v36, %v4620_v57 }
 0x11c   :  { %8557 = vst [vmem:[#allocation257_spill] sm:$0xff] %v4529_v42  ;;  %v1435_v42 = vsub.f32 %v4413_v8, %v4077_v48  ;;  %vm7981_vm7 = vcmp.lt.f32.partialorder %v4597_v33, %v4569_v13  ;;  %v4629_v8 = vld [vmem:[#allocation2 + $0x120] sm:$0xff]  ;;  %v4638_v49 = vsel %vm7982_vm15, %v4595_v41, %v4562_v2  ;;  %v1304_v34 = vsel %vm7982_vm15, 3, %v918_v4 }
 0x11d   :  { %8558 = vst [vmem:[#allocation258_spill] sm:$0xff] %v4548_v53  ;;  %v4645_v10 = vsel %vm7981_vm7, %v4597_v33, %v4569_v13  ;;  %v1305_v11 = vsel %vm7981_vm7, 3, %v919_v22  ;;  %v148_v52 = vsub.f32 %v4629_v8, %v3898_v35  ;;  %v149_v4 = vsub.f32 %v4631_v7, %v3898_v35 }
 0x11e   :  { %8559 = vst [vmem:[#allocation259_spill] sm:$0xff] %v4555_v56  ;;  %v4663_v61 = vand.u32 2147483647, %v1435_v42  ;;  %vm7993_vm7 = vcmp.lt.f32.partialorder %v4661_v3, %v4638_v49  ;;  %v1624_v42 = vsel %vm7995_vm14, 4, %v1302_v25  ;;  %v1625_v22 = vsel %vm7994_vm13, 4, %v1303_v29 }
 0x11f   :  { %8560 = vst [vmem:[#allocation260_spill] sm:$0xff] %v4562_v2  ;;  %v1626_v37 = vsel %vm7993_vm7, 4, %v1304_v34  ;;  %v150_v2 = vsub.f32 %v4653_v51, %v3898_v35  ;;  %v151_v25 = vsub.f32 %v4669_v9, %v3898_v35  ;;  %v278_v34 = vsub.f32 %v4629_v8, %v3923_v5 }
 0x120   :  { %8561 = vst [vmem:[#allocation261_spill] sm:$0xff] %v4569_v13  ;;  %vm7992_vm15 = vcmp.lt.f32.partialorder %v4663_v61, %v4645_v10 }
 0x121   :  { %8562 = vst [vmem:[#allocation262_spill] sm:$0xff] %v4587_v59  ;;  %v1627_v13 = vsel %vm7992_vm15, 4, %v1305_v11  ;;  %v4699_v29 = vand.u32 2147483647, %v150_v2  ;;  %v279_v11 = vsub.f32 %v4631_v7, %v3923_v5  ;;  %v4713_v2 = vand.u32 2147483647, %v278_v34 }
 0x122   :  { %8563 = vst [vmem:[#allocation263_spill] sm:$0xff] %v4589_v60 }
 0x123   :  { %8564 = vst [vmem:[#allocation264_spill] sm:$0xff] %v4595_v41  ;;  %v1809_v41 = vpack.c.b16 %v1627_v13, %v1626_v37  ;;  %v4707_v13 = vand.u32 2147483647, %v151_v25  ;;  %v4715_v37 = vand.u32 2147483647, %v279_v11 }
 0x124   :  { %8565 = vst [vmem:[#allocation265_spill] sm:$0xff] %v4597_v33  ;;  %v1808_v33 = vpack.c.b16 %v1625_v22, %v1624_v42  ;;  %v280_v42 = vsub.f32 %v4653_v51, %v3923_v5 }
 0x125   :  { %8566 = vst [vmem:[#allocation266_spill] sm:$0xff] %v4607_v36 }
 0x126   :  { %8567 = vst [vmem:[#allocation267_spill] sm:$0xff] %v4609_v47  ;;  %v1810_v22 = vpack.c.b8 %v1809_v41, %v1808_v33  ;;  %v666_v41 = vsub.f32 %v4653_v51, %v3939_v43  ;;  %v667_v33 = vsub.f32 %v4669_v9, %v3939_v43 }
 0x127   :  { %8568 = vst [vmem:[#allocation268_spill] sm:$0xff] %v4620_v57  ;;  %v4695_v57 = vand.u32 2147483647, %v148_v52  ;;  %v281_v52 = vsub.f32 %v4669_v9, %v3923_v5 }
 0x128   :  { %8569 = vst [vmem:[#allocation269_spill] sm:$0xff] %v4627_v26  ;;  %v4697_v26 = vand.u32 2147483647, %v149_v4  ;;  %v664_v4 = vsub.f32 %v4629_v8, %v3939_v43  ;;  %v4783_v36 = vand.u32 2147483647, %v666_v41 }
 0x129   :  { %8570 = vst [vmem:[#allocation270_spill] sm:$0xff] %v4638_v49  ;;  %v4721_v49 = vand.u32 2147483647, %v281_v52  ;;  %vm8000_vm15 = vcmp.lt.f32.partialorder %v4713_v2, %v4695_v57  ;;  %v4785_v56 = vand.u32 2147483647, %v667_v33  ;;  %v1050_v33 = vsub.f32 %v4629_v8, %v4017_v38 }
 0x12a   :  { %8571 = vst [vmem:[#allocation271_spill] sm:$0xff] %v4645_v10  ;;  %v4717_v10 = vand.u32 2147483647, %v280_v42  ;;  %v4727_v25 = vand.u32 2147483647, %v664_v4  ;;  %vm8001_vm7 = vcmp.lt.f32.partialorder %v4715_v37, %v4697_v26  ;;  %v4744_v11 = vsel %vm8000_vm15, %v4713_v2, %v4695_v57 }
 0x12b   :  { %8572 = vst [vmem:[#allocation272_spill] sm:$0xff] %v4661_v3  ;;  %vm8003_vm14 = vcmp.lt.f32.partialorder %v4721_v49, %v4707_v13  ;;  %v4751_v42 = vsel %vm8001_vm7, %v4715_v37, %v4697_v26  ;;  %v534_v52 = vsel %vm8000_vm15, 1, %v8359_v18  ;;  %v535_v4 = vsel %vm8001_vm7, 1, %v8359_v18 }
 0x12c   :  { %8573 = vst [vmem:[#allocation273_spill] sm:$0xff] %v4663_v61  ;;  %v665_v61 = vsub.f32 %v4631_v7, %v3939_v43  ;;  %vm8004_vm13 = vcmp.lt.f32.partialorder %v4717_v10, %v4699_v29  ;;  %v537_v47 = vsel %vm8003_vm14, 1, %v8359_v18  ;;  %vm8021_vm15 = vcmp.lt.f32.partialorder %v4727_v25, %v4744_v11 }
 0x12d   :  { %8574 = vst [vmem:[#allocation274_spill] sm:$0xff] %v4695_v57  ;;  %v536_v3 = vsel %vm8004_vm13, 1, %v8359_v18  ;;  %v920_v41 = vsel %vm8021_vm15, 2, %v534_v52  ;;  %v4921_v57 = vld [vmem:[#allocation2 + $0x150] sm:$0xff] }
 0x12e   :  { %8575 = vst [vmem:[#allocation275_spill] sm:$0xff] %v4697_v26  ;;  %v4735_v34 = vand.u32 2147483647, %v665_v61  ;;  %v4758_v61 = vsel %vm8004_vm13, %v4717_v10, %v4699_v29  ;;  %v4843_v26 = vand.u32 2147483647, %v1050_v33 }
 0x12f   :  { %8576 = vst [vmem:[#allocation276_spill] sm:$0xff] %v4699_v29  ;;  %v4796_v29 = vsel %vm8021_vm15, %v4727_v25, %v4744_v11 }
 0x130   :  { %8577 = vst [vmem:[#allocation277_spill] sm:$0xff] %v4707_v13  ;;  %vm8020_vm7 = vcmp.lt.f32.partialorder %v4735_v34, %v4751_v42 }
 0x131   :  { %8578 = vst [vmem:[#allocation278_spill] sm:$0xff] %v4713_v2  ;;  %v921_v52 = vsel %vm8020_vm7, 2, %v535_v4  ;;  %v4923_v2 = vld [vmem:[#allocation2 + $0x158] sm:$0xff] }
 0x132   :  { %8579 = vst [vmem:[#allocation279_spill] sm:$0xff] %v4715_v37  ;;  %v1436_v37 = vsub.f32 %v4629_v8, %v4077_v48 }
 0x133   :  { %8580 = vst [vmem:[#allocation280_spill] sm:$0xff] %v4717_v10  ;;  %v1053_v10 = vsub.f32 %v4669_v9, %v4017_v38 }
 0x134   :  { %1840 = vst [vmem:[#allocation8 + $0x40] sm:$0xff] %v1810_v22  ;;  %v4765_v22 = vsel %vm8003_vm14, %v4721_v49, %v4707_v13  ;;  %vm8019_vm14 = vcmp.lt.f32.partialorder %v4783_v36, %v4758_v61  ;;  %v4812_v13 = vsel %vm8020_vm7, %v4735_v34, %v4751_v42 }
 0x135   :  { %8581 = vst [vmem:[#allocation281_spill] sm:$0xff] %v4721_v49  ;;  %vm8018_vm13 = vcmp.lt.f32.partialorder %v4785_v56, %v4765_v22  ;;  %v4822_v49 = vsel %vm8019_vm14, %v4783_v36, %v4758_v61 }
 0x136   :  { %8582 = vst [vmem:[#allocation282_spill] sm:$0xff] %v4727_v25  ;;  %v922_v25 = vsel %vm8019_vm14, 2, %v536_v3  ;;  %v923_v4 = vsel %vm8018_vm13, 2, %v537_v47  ;;  %v1437_v3 = vsub.f32 %v4631_v7, %v4077_v48  ;;  %v1438_v47 = vsub.f32 %v4653_v51, %v4077_v48 }
 0x137   :  { %8583 = vst [vmem:[#allocation283_spill] sm:$0xff] %v4735_v34  ;;  %v1052_v34 = vsub.f32 %v4653_v51, %v4017_v38 }
 0x138   :  { %8584 = vst [vmem:[#allocation284_spill] sm:$0xff] %v4744_v11  ;;  %v4829_v11 = vsel %vm8018_vm13, %v4785_v56, %v4765_v22  ;;  %vm8024_vm13 = vcmp.lt.f32.partialorder %v4843_v26, %v4796_v29 }
 0x139   :  { %8585 = vst [vmem:[#allocation285_spill] sm:$0xff] %v4751_v42  ;;  %v1051_v42 = vsub.f32 %v4631_v7, %v4017_v38  ;;  %v4866_v8 = vsel %vm8024_vm13, %v4843_v26, %v4796_v29  ;;  %v1306_v51 = vsel %vm8024_vm13, 3, %v920_v41  ;;  %v4871_v7 = vand.u32 2147483647, %v1436_v37 }
 0x13a   :  { %8586 = vst [vmem:[#allocation286_spill] sm:$0xff] %v4758_v61  ;;  %v4855_v61 = vand.u32 2147483647, %v1052_v34  ;;  %v4883_v34 = vld [vmem:[#allocation2 + $0x140] sm:$0xff] }
 0x13b   :  { %8587 = vst [vmem:[#allocation287_spill] sm:$0xff] %v4765_v22  ;;  %v1439_v22 = vsub.f32 %v4669_v9, %v4077_v48  ;;  %v4873_v9 = vand.u32 2147483647, %v1437_v3  ;;  %v4909_v3 = vld [vmem:[#allocation2 + $0x148] sm:$0xff]  ;;  %vm8042_vm13 = vcmp.lt.f32.partialorder %v4871_v7, %v4866_v8 }
 0x13c   :  { %8588 = vst [vmem:[#allocation288_spill] sm:$0xff] %v4783_v36  ;;  %v4857_v36 = vand.u32 2147483647, %v1053_v10  ;;  %vm8220_vm7 = vcmp.lt.f32.partialorder %v4855_v61, %v4822_v49  ;;  %v4881_v10 = vand.u32 2147483647, %v1438_v47 }
 0x13d   :  { %8589 = vst [vmem:[#allocation289_spill] sm:$0xff] %v4785_v56  ;;  %v4853_v56 = vand.u32 2147483647, %v1051_v42  ;;  %v4897_v42 = vsel %vm8220_vm7, %v4855_v61, %v4822_v49  ;;  %v1308_v47 = vsel %vm8220_vm7, 3, %v922_v25  ;;  %v1628_v25 = vsel %vm8042_vm13, 4, %v1306_v51 }
 0x13e   :  { %8590 = vst [vmem:[#allocation290_spill] sm:$0xff] %v4796_v29  ;;  %vm8029_vm15 = vcmp.lt.f32.partialorder %v4857_v36, %v4829_v11  ;;  %vm8040_vm11 = vcmp.lt.f32.partialorder %v4881_v10, %v4897_v42 }
 0x13f   :  { %8591 = vst [vmem:[#allocation291_spill] sm:$0xff] %v4812_v13  ;;  %vm8027_vm14 = vcmp.lt.f32.partialorder %v4853_v56, %v4812_v13  ;;  %v4904_v41 = vsel %vm8029_vm15, %v4857_v36, %v4829_v11  ;;  %v1309_v29 = vsel %vm8029_vm15, 3, %v923_v4  ;;  %v1630_v4 = vsel %vm8040_vm11, 4, %v1308_v47 }
 0x140   :  { %8592 = vst [vmem:[#allocation292_spill] sm:$0xff] %v4822_v49  ;;  %v4890_v37 = vsel %vm8027_vm14, %v4853_v56, %v4812_v13  ;;  %v1307_v33 = vsel %vm8027_vm14, 3, %v921_v52  ;;  %v282_v47 = vsub.f32 %v4883_v34, %v3923_v5  ;;  %v1440_v13 = vsub.f32 %v4883_v34, %v4077_v48 }
 0x141   :  { %8593 = vst [vmem:[#allocation293_spill] sm:$0xff] %v4829_v11  ;;  %vm8041_vm14 = vcmp.lt.f32.partialorder %v4873_v9, %v4890_v37  ;;  %v153_v11 = vsub.f32 %v4909_v3, %v3898_v35 }
 0x142   :  { %8594 = vst [vmem:[#allocation294_spill] sm:$0xff] %v4843_v26  ;;  %v4917_v26 = vand.u32 2147483647, %v1439_v22  ;;  %v152_v22 = vsub.f32 %v4883_v34, %v3898_v35  ;;  %v1629_v52 = vsel %vm8041_vm14, 4, %v1307_v33 }
 0x143   :  { %8595 = vst [vmem:[#allocation295_spill] sm:$0xff] %v4853_v56 }
 0x144   :  { %8596 = vst [vmem:[#allocation296_spill] sm:$0xff] %v4855_v61  ;;  %vm8039_vm15 = vcmp.lt.f32.partialorder %v4917_v26, %v4904_v41  ;;  %v4951_v33 = vand.u32 2147483647, %v152_v22  ;;  %v285_v22 = vsub.f32 %v4923_v2, %v3923_v5  ;;  %v1054_v61 = vsub.f32 %v4883_v34, %v4017_v38 }
 0x145   :  { %8597 = vst [vmem:[#allocation297_spill] sm:$0xff] %v4857_v36  ;;  %v1631_v51 = vsel %vm8039_vm15, 4, %v1309_v29  ;;  %v1811_v36 = vpack.c.b16 %v1629_v52, %v1628_v25  ;;  %v283_v29 = vsub.f32 %v4909_v3, %v3923_v5  ;;  %v284_v25 = vsub.f32 %v4921_v57, %v3923_v5 }
 0x146   :  { %8598 = vst [vmem:[#allocation298_spill] sm:$0xff] %v4866_v8  ;;  %v154_v8 = vsub.f32 %v4921_v57, %v3898_v35 }
 0x147   :  { %8599 = vst [vmem:[#allocation299_spill] sm:$0xff] %v4871_v7  ;;  %v155_v7 = vsub.f32 %v4923_v2, %v3898_v35 }
 0x148   :  { %8600 = vst [vmem:[#allocation300_spill] sm:$0xff] %v4873_v9  ;;  %v4953_v9 = vand.u32 2147483647, %v153_v11  ;;  %v668_v11 = vsub.f32 %v4883_v34, %v3939_v43  ;;  %v5143_v34 = vand.u32 2147483647, %v1440_v13 }
 0x149   :  { %8601 = vst [vmem:[#allocation301_spill] sm:$0xff] %v4881_v10  ;;  %v4959_v10 = vand.u32 2147483647, %v155_v7  ;;  %v669_v7 = vsub.f32 %v4909_v3, %v3939_v43 }
 0x14a   :  { %8602 = vst [vmem:[#allocation302_spill] sm:$0xff] %v4890_v37  ;;  %v1812_v37 = vpack.c.b16 %v1631_v51, %v1630_v4  ;;  %v4967_v4 = vand.u32 2147483647, %v282_v47  ;;  %v4971_v51 = vand.u32 2147483647, %v283_v29 }
 0x14b   :  { %8603 = vst [vmem:[#allocation303_spill] sm:$0xff] %v4897_v42  ;;  %v4957_v42 = vand.u32 2147483647, %v154_v8  ;;  %v4973_v8 = vand.u32 2147483647, %v284_v25 }
 0x14c   :  { %8604 = vst [vmem:[#allocation304_spill] sm:$0xff] %v4904_v41  ;;  %v1813_v52 = vpack.c.b8 %v1812_v37, %v1811_v36  ;;  %v670_v41 = vsub.f32 %v4921_v57, %v3939_v43  ;;  %v4979_v36 = vand.u32 2147483647, %v285_v22  ;;  %vm8053_vm15 = vcmp.lt.f32.partialorder %v4967_v4, %v4951_v33 }
 0x14d   :  { %8605 = vst [vmem:[#allocation305_spill] sm:$0xff] %v4917_v26  ;;  %v671_v37 = vsub.f32 %v4923_v2, %v3939_v43  ;;  %v4985_v47 = vand.u32 2147483647, %v668_v11  ;;  %vm8049_vm11 = vcmp.lt.f32.partialorder %v4971_v51, %v4953_v9  ;;  %vm8051_vm14 = vcmp.lt.f32.partialorder %v4973_v8, %v4957_v42 }
 0x14e   :  { %8606 = vst [vmem:[#allocation306_spill] sm:$0xff] %v4951_v33  ;;  %v4996_v29 = vsel %vm8053_vm15, %v4967_v4, %v4951_v33  ;;  %v538_v25 = vsel %vm8053_vm15, 1, %v8359_v18  ;;  %vm8052_vm13 = vcmp.lt.f32.partialorder %v4979_v36, %v4959_v10  ;;  %v5016_v22 = vsel %vm8051_vm14, %v4973_v8, %v4957_v42 }
 0x14f   :  { %8607 = vst [vmem:[#allocation307_spill] sm:$0xff] %v4953_v9  ;;  %v539_v11 = vsel %vm8049_vm11, 1, %v8359_v18  ;;  %v5027_v26 = vsel %vm8052_vm13, %v4979_v36, %v4959_v10  ;;  %v540_v33 = vsel %vm8051_vm14, 1, %v8359_v18  ;;  %v5037_v49 = vand.u32 2147483647, %v669_v7 }
 0x150   :  { %8608 = vst [vmem:[#allocation308_spill] sm:$0xff] %v4957_v42  ;;  %v5099_v42 = vand.u32 2147483647, %v1054_v61 }
 0x151   :  { %8609 = vst [vmem:[#allocation309_spill] sm:$0xff] %v4959_v10 }
 0x152   :  { %8610 = vst [vmem:[#allocation310_spill] sm:$0xff] %v4967_v4  ;;  %v541_v4 = vsel %vm8052_vm13, 1, %v8359_v18 }
 0x153   :  { %8611 = vst [vmem:[#allocation311_spill] sm:$0xff] %v4971_v51 }
 0x154   :  { %8612 = vst [vmem:[#allocation312_spill] sm:$0xff] %v4973_v8 }
 0x155   :  { %1841 = vst [vmem:[#allocation8 + $0x48] sm:$0xff] %v1813_v52  ;;  %v5009_v52 = vsel %vm8049_vm11, %v4971_v51, %v4953_v9  ;;  %v5039_v9 = vand.u32 2147483647, %v670_v41  ;;  %v5041_v51 = vand.u32 2147483647, %v671_v37  ;;  %vm8069_vm11 = vcmp.lt.f32.partialorder %v4985_v47, %v4996_v29 }
 0x156   :  { %8613 = vst [vmem:[#allocation313_spill] sm:$0xff] %v4979_v36  ;;  %vm8068_vm14 = vcmp.lt.f32.partialorder %v5037_v49, %v5009_v52  ;;  %v5054_v7 = vsel %vm8069_vm11, %v4985_v47, %v4996_v29  ;;  %v924_v41 = vsel %vm8069_vm11, 2, %v538_v25  ;;  %v1055_v37 = vsub.f32 %v4909_v3, %v4017_v38 }
 0x157   :  { %8614 = vst [vmem:[#allocation314_spill] sm:$0xff] %v4985_v47  ;;  %vm8067_vm13 = vcmp.lt.f32.partialorder %v5039_v9, %v5016_v22  ;;  %vm8066_vm15 = vcmp.lt.f32.partialorder %v5041_v51, %v5027_v26  ;;  %v5070_v10 = vsel %vm8068_vm14, %v5037_v49, %v5009_v52  ;;  %v925_v25 = vsel %vm8068_vm14, 2, %v539_v11 }
 0x158   :  { %8615 = vst [vmem:[#allocation315_spill] sm:$0xff] %v4996_v29  ;;  %v5080_v36 = vsel %vm8067_vm13, %v5039_v9, %v5016_v22  ;;  %v5087_v29 = vsel %vm8066_vm15, %v5041_v51, %v5027_v26  ;;  %v926_v47 = vsel %vm8067_vm13, 2, %v540_v33  ;;  %v927_v11 = vsel %vm8066_vm15, 2, %v541_v4 }
 0x159   :  { %8616 = vst [vmem:[#allocation316_spill] sm:$0xff] %v5009_v52  ;;  %v1056_v52 = vsub.f32 %v4921_v57, %v4017_v38  ;;  %v5101_v8 = vand.u32 2147483647, %v1055_v37  ;;  %v1441_v33 = vsub.f32 %v4909_v3, %v4077_v48  ;;  %v1443_v4 = vsub.f32 %v4923_v2, %v4077_v48  ;;  %v5149_v37 = vld [vmem:[#allocation2 + $0x168] sm:$0xff] }
 0x15a   :  { %8617 = vst [vmem:[#allocation317_spill] sm:$0xff] %v5016_v22  ;;  %vm8074_vm15 = vcmp.lt.f32.partialorder %v5099_v42, %v5054_v7 }
 0x15b   :  { %8618 = vst [vmem:[#allocation318_spill] sm:$0xff] %v5027_v26  ;;  %v1442_v26 = vsub.f32 %v4921_v57, %v4077_v48  ;;  %vm8073_vm13 = vcmp.lt.f32.partialorder %v5101_v8, %v5070_v10  ;;  %v5124_v61 = vsel %vm8074_vm15, %v5099_v42, %v5054_v7  ;;  %v5145_v3 = vand.u32 2147483647, %v1441_v33 }
 0x15c   :  { %8619 = vst [vmem:[#allocation319_spill] sm:$0xff] %v5037_v49  ;;  %v1057_v49 = vsub.f32 %v4923_v2, %v4017_v38  ;;  %v5131_v57 = vsel %vm8073_vm13, %v5101_v8, %v5070_v10  ;;  %v1311_v2 = vsel %vm8073_vm13, 3, %v925_v25  ;;  %vm8090_vm13 = vcmp.lt.f32.partialorder %v5143_v34, %v5124_v61 }
 0x15d   :  { %8620 = vst [vmem:[#allocation320_spill] sm:$0xff] %v5039_v9 }
 0x15e   :  { %8621 = vst [vmem:[#allocation321_spill] sm:$0xff] %v5041_v51  ;;  %v5111_v51 = vand.u32 2147483647, %v1056_v52  ;;  %v5113_v22 = vand.u32 2147483647, %v1057_v49  ;;  %v1310_v49 = vsel %vm8074_vm15, 3, %v924_v41  ;;  %vm8089_vm15 = vcmp.lt.f32.partialorder %v5145_v3, %v5131_v57 }
 0x15f   :  { %8622 = vst [vmem:[#allocation322_spill] sm:$0xff] %v5054_v7  ;;  %v5147_v52 = vld [vmem:[#allocation2 + $0x160] sm:$0xff]  ;;  %v5175_v7 = vand.u32 2147483647, %v1443_v4  ;;  %v157_v4 = vsub.f32 %v5149_v37, %v3898_v35 }
 0x160   :  { %8623 = vst [vmem:[#allocation323_spill] sm:$0xff] %v5070_v10  ;;  %vm8077_vm14 = vcmp.lt.f32.partialorder %v5111_v51, %v5080_v36  ;;  %vm8076_vm11 = vcmp.lt.f32.partialorder %v5113_v22, %v5087_v29  ;;  %v5171_v10 = vld [vmem:[#allocation2 + $0x170] sm:$0xff] }
 0x161   :  { %8624 = vst [vmem:[#allocation324_spill] sm:$0xff] %v5080_v36  ;;  %v5156_v41 = vsel %vm8077_vm14, %v5111_v51, %v5080_v36  ;;  %v5163_v13 = vsel %vm8076_vm11, %v5113_v22, %v5087_v29  ;;  %v1312_v25 = vsel %vm8077_vm14, 3, %v926_v47  ;;  %v1313_v33 = vsel %vm8076_vm11, 3, %v927_v11 }
 0x162   :  { %8625 = vst [vmem:[#allocation325_spill] sm:$0xff] %v5087_v29  ;;  %v1632_v47 = vsel %vm8090_vm13, 4, %v1310_v49  ;;  %v1633_v11 = vsel %vm8089_vm15, 4, %v1311_v2  ;;  %vm8087_vm14 = vcmp.lt.f32.partialorder %v5175_v7, %v5163_v13  ;;  %v158_v49 = vsub.f32 %v5171_v10, %v3898_v35 }
 0x163   :  { %8626 = vst [vmem:[#allocation326_spill] sm:$0xff] %v5099_v42  ;;  %v5181_v42 = vld [vmem:[#allocation2 + $0x178] sm:$0xff]  ;;  %v1814_v29 = vpack.c.b16 %v1633_v11, %v1632_v47  ;;  %v286_v11 = vsub.f32 %v5147_v52, %v3923_v5 }
 0x164   :  { %8627 = vst [vmem:[#allocation327_spill] sm:$0xff] %v5101_v8  ;;  %v5173_v8 = vand.u32 2147483647, %v1442_v26  ;;  %v156_v26 = vsub.f32 %v5147_v52, %v3898_v35  ;;  %v5211_v47 = vand.u32 2147483647, %v158_v49  ;;  %v673_v49 = vsub.f32 %v5149_v37, %v3939_v43 }
 0x165   :  { %8628 = vst [vmem:[#allocation328_spill] sm:$0xff] %v5111_v51 }
 0x166   :  { %8629 = vst [vmem:[#allocation329_spill] sm:$0xff] %v5113_v22  ;;  %vm8088_vm11 = vcmp.lt.f32.partialorder %v5173_v8, %v5156_v41  ;;  %v1635_v22 = vsel %vm8087_vm14, 4, %v1313_v33  ;;  %v288_v33 = vsub.f32 %v5171_v10, %v3923_v5 }
 0x167   :  { %8630 = vst [vmem:[#allocation330_spill] sm:$0xff] %v5124_v61  ;;  %v1634_v2 = vsel %vm8088_vm11, 4, %v1312_v25  ;;  %v287_v25 = vsub.f32 %v5149_v37, %v3923_v5 }
 0x168   :  { %8631 = vst [vmem:[#allocation331_spill] sm:$0xff] %v5131_v57  ;;  %v159_v57 = vsub.f32 %v5181_v42, %v3898_v35  ;;  %v1815_v61 = vpack.c.b16 %v1635_v22, %v1634_v2  ;;  %v289_v35 = vsub.f32 %v5181_v42, %v3923_v5  ;;  %v5223_v22 = vand.u32 2147483647, %v286_v11 }
 0x169   :  { %8632 = vst [vmem:[#allocation332_spill] sm:$0xff] %v5143_v34  ;;  %v5209_v34 = vand.u32 2147483647, %v157_v4  ;;  %v672_v4 = vsub.f32 %v5147_v52, %v3939_v43  ;;  %v5231_v2 = vand.u32 2147483647, %v288_v33  ;;  %v675_v5 = vsub.f32 %v5181_v42, %v3939_v43 }
 0x16a   :  { %8633 = vst [vmem:[#allocation333_spill] sm:$0xff] %v5145_v3  ;;  %v5207_v3 = vand.u32 2147483647, %v156_v26  ;;  %v5215_v36 = vand.u32 2147483647, %v159_v57  ;;  %v1816_v26 = vpack.c.b8 %v1815_v61, %v1814_v29 }
 0x16b   :  { %8634 = vst [vmem:[#allocation334_spill] sm:$0xff] %v5156_v41  ;;  %v5229_v57 = vand.u32 2147483647, %v287_v25  ;;  %v5241_v29 = vand.u32 2147483647, %v672_v4  ;;  %vm8096_vm15 = vcmp.lt.f32.partialorder %v5231_v2, %v5211_v47 }
 0x16c   :  { %8635 = vst [vmem:[#allocation335_spill] sm:$0xff] %v5163_v13  ;;  %v5233_v13 = vand.u32 2147483647, %v289_v35  ;;  %vm8093_vm14 = vcmp.lt.f32.partialorder %v5223_v22, %v5207_v3  ;;  %v5243_v61 = vand.u32 2147483647, %v673_v49  ;;  %v5270_v25 = vsel %vm8096_vm15, %v5231_v2, %v5211_v47 }
 0x16d   :  { %8636 = vst [vmem:[#allocation336_spill] sm:$0xff] %v5173_v8  ;;  %vm8094_vm11 = vcmp.lt.f32.partialorder %v5229_v57, %v5209_v34  ;;  %v5256_v11 = vsel %vm8093_vm14, %v5223_v22, %v5207_v3  ;;  %v542_v35 = vsel %vm8093_vm14, 1, %v8359_v18  ;;  %v544_v4 = vsel %vm8096_vm15, 1, %v8359_v18 }
 0x16e   :  { %8637 = vst [vmem:[#allocation337_spill] sm:$0xff] %v5175_v7  ;;  %v674_v7 = vsub.f32 %v5171_v10, %v3939_v43  ;;  %vm8098_vm13 = vcmp.lt.f32.partialorder %v5233_v13, %v5215_v36  ;;  %v5263_v43 = vsel %vm8094_vm11, %v5229_v57, %v5209_v34  ;;  %v5297_v8 = vand.u32 2147483647, %v675_v5 }
 0x16f   :  { %8638 = vst [vmem:[#allocation338_spill] sm:$0xff] %v5207_v3  ;;  %v5277_v33 = vsel %vm8098_vm13, %v5233_v13, %v5215_v36  ;;  %v545_v49 = vsel %vm8098_vm13, 1, %v8359_v18  ;;  %vm8114_vm14 = vcmp.lt.f32.partialorder %v5241_v29, %v5256_v11 }
 0x170   :  { %8639 = vst [vmem:[#allocation339_spill] sm:$0xff] %v5209_v34  ;;  %v5295_v41 = vand.u32 2147483647, %v674_v7  ;;  %v1058_v34 = vsub.f32 %v5147_v52, %v4017_v38  ;;  %v5312_v7 = vsel %vm8114_vm14, %v5241_v29, %v5256_v11  ;;  %vm8111_vm13 = vcmp.lt.f32.partialorder %v5297_v8, %v5277_v33 }
 0x171   :  { %8640 = vst [vmem:[#allocation340_spill] sm:$0xff] %v5211_v47 }
 0x172   :  { %8641 = vst [vmem:[#allocation341_spill] sm:$0xff] %v5215_v36  ;;  %vm8112_vm15 = vcmp.lt.f32.partialorder %v5295_v41, %v5270_v25  ;;  %v928_v36 = vsel %vm8114_vm14, 2, %v542_v35  ;;  %v5344_v35 = vsel %vm8111_vm13, %v5297_v8, %v5277_v33 }
 0x173   :  { %8642 = vst [vmem:[#allocation342_spill] sm:$0xff] %v5223_v22 }
 0x174   :  { %8643 = vst [vmem:[#allocation343_spill] sm:$0xff] %v5229_v57 }
 0x175   :  { %8644 = vst [vmem:[#allocation344_spill] sm:$0xff] %v5231_v2  ;;  %v930_v2 = vsel %vm8112_vm15, 2, %v544_v4  ;;  %v1061_v4 = vsub.f32 %v5181_v42, %v4017_v38 }
 0x176   :  { %8645 = vst [vmem:[#allocation345_spill] sm:$0xff] %v5233_v13  ;;  %v5331_v13 = vsel %vm8112_vm15, %v5295_v41, %v5270_v25 }
 0x177   :  { %1842 = vst [vmem:[#allocation8 + $0x50] sm:$0xff] %v1816_v26  ;;  %v543_v26 = vsel %vm8094_vm11, 1, %v8359_v18  ;;  %vm8113_vm11 = vcmp.lt.f32.partialorder %v5243_v61, %v5263_v43  ;;  %v5369_v57 = vand.u32 2147483647, %v1061_v4 }
 0x178   :  { %8646 = vst [vmem:[#allocation346_spill] sm:$0xff] %v5241_v29  ;;  %v5319_v5 = vsel %vm8113_vm11, %v5243_v61, %v5263_v43  ;;  %v929_v47 = vsel %vm8113_vm11, 2, %v543_v26  ;;  %v1059_v29 = vsub.f32 %v5149_v37, %v4017_v38  ;;  %v1060_v26 = vsub.f32 %v5171_v10, %v4017_v38 }
 0x179   :  { %8647 = vst [vmem:[#allocation347_spill] sm:$0xff] %v5243_v61  ;;  %vm8120_vm14 = vcmp.lt.f32.partialorder %v5369_v57, %v5344_v35 }
 0x17a   :  { %8648 = vst [vmem:[#allocation348_spill] sm:$0xff] %v5256_v11  ;;  %v931_v11 = vsel %vm8111_vm13, 2, %v545_v49  ;;  %v5361_v61 = vand.u32 2147483647, %v1059_v29  ;;  %v5363_v49 = vand.u32 2147483647, %v1060_v26  ;;  %v5419_v29 = vsel %vm8120_vm14, %v5369_v57, %v5344_v35 }
 0x17b   :  { %8649 = vst [vmem:[#allocation349_spill] sm:$0xff] %v5263_v43  ;;  %v1445_v43 = vsub.f32 %v5149_v37, %v4077_v48  ;;  %v1317_v26 = vsel %vm8120_vm14, 3, %v931_v11 }
 0x17c   :  { %8650 = vst [vmem:[#allocation350_spill] sm:$0xff] %v5270_v25  ;;  %v5355_v25 = vand.u32 2147483647, %v1058_v34  ;;  %vm8116_vm15 = vcmp.lt.f32.partialorder %v5361_v61, %v5319_v5  ;;  %vm8121_vm11 = vcmp.lt.f32.partialorder %v5363_v49, %v5331_v13 }
 0x17d   :  { %8651 = vst [vmem:[#allocation351_spill] sm:$0xff] %v5277_v33  ;;  %v1446_v33 = vsub.f32 %v5171_v10, %v4077_v48  ;;  %v5375_v34 = vand.u32 2147483647, %v1445_v43  ;;  %v5407_v37 = vsel %vm8121_vm11, %v5363_v49, %v5331_v13  ;;  %v1316_v43 = vsel %vm8121_vm11, 3, %v930_v2 }
 0x17e   :  { %8652 = vst [vmem:[#allocation352_spill] sm:$0xff] %v5295_v41  ;;  %v1444_v41 = vsub.f32 %v5147_v52, %v4077_v48  ;;  %vm8117_vm13 = vcmp.lt.f32.partialorder %v5355_v25, %v5312_v7  ;;  %v5400_v52 = vsel %vm8116_vm15, %v5361_v61, %v5319_v5 }
 0x17f   :  { %8653 = vst [vmem:[#allocation353_spill] sm:$0xff] %v5297_v8  ;;  %v1447_v8 = vsub.f32 %v5181_v42, %v4077_v48  ;;  %v5386_v48 = vsel %vm8117_vm13, %v5355_v25, %v5312_v7  ;;  %v1314_v10 = vsel %vm8117_vm13, 3, %v928_v36  ;;  %v5391_v42 = vld [vmem:[#allocation2 + $0x180] sm:$0xff]  ;;  %v1315_v36 = vsel %vm8116_vm15, 3, %v929_v47  ;;  %v5429_v47 = vld [vmem:[#allocation2 + $0x190] sm:$0xff] }
 0x180   :  { %8654 = vst [vmem:[#allocation354_spill] sm:$0xff] %v5312_v7  ;;  %v5373_v38 = vand.u32 2147483647, %v1444_v41  ;;  %v5412_v41 = vld [vmem:[#allocation2 + $0x188] sm:$0xff]  ;;  %v5427_v4 = vand.u32 2147483647, %v1446_v33  ;;  %vm8137_vm13 = vcmp.lt.f32.partialorder %v5375_v34, %v5400_v52 }
 0x181   :  { %8655 = vst [vmem:[#allocation355_spill] sm:$0xff] %v5319_v5  ;;  %v5431_v5 = vand.u32 2147483647, %v1447_v8  ;;  %v1637_v11 = vsel %vm8137_vm13, 4, %v1315_v36 }
 0x182   :  { %8656 = vst [vmem:[#allocation356_spill] sm:$0xff] %v5331_v13  ;;  %vm8138_vm15 = vcmp.lt.f32.partialorder %v5373_v38, %v5386_v48  ;;  %v5439_v13 = vld [vmem:[#allocation5] ss:$0 sm:$0xff]  ;;  %vm8136_vm14 = vcmp.lt.f32.partialorder %v5427_v4, %v5407_v37 }
 0x183   :  { %8657 = vst [vmem:[#allocation357_spill] sm:$0xff] %v5344_v35  ;;  %v160_v2 = vsub.f32 %v5391_v42, %v5439_v13  ;;  %v1636_v8 = vsel %vm8138_vm15, 4, %v1314_v10  ;;  %v161_v33 = vsub.f32 %v5412_v41, %v5439_v13  ;;  %vm8135_vm11 = vcmp.lt.f32.partialorder %v5431_v5, %v5419_v29 }
 0x184   :  { %8658 = vst [vmem:[#allocation358_spill] sm:$0xff] %v5355_v25  ;;  %v1638_v35 = vsel %vm8136_vm14, 4, %v1316_v43  ;;  %v1639_v10 = vsel %vm8135_vm11, 4, %v1317_v26 }
 0x185   :  { %8659 = vst [vmem:[#allocation359_spill] sm:$0xff] %v5361_v61  ;;  %v5437_v61 = vld [vmem:[#allocation2 + $0x198] sm:$0xff] }
 0x186   :  { %8660 = vst [vmem:[#allocation360_spill] sm:$0xff] %v5363_v49  ;;  %v162_v49 = vsub.f32 %v5429_v47, %v5439_v13  ;;  %v163_v36 = vsub.f32 %v5437_v61, %v5439_v13 }
 0x187   :  { %8661 = vst [vmem:[#allocation361_spill] sm:$0xff] %v5369_v57  ;;  %v1817_v57 = vpack.c.b16 %v1637_v11, %v1636_v8 }
 0x188   :  { %8662 = vst [vmem:[#allocation362_spill] sm:$0xff] %v5373_v38  ;;  %v5469_v38 = vand.u32 2147483647, %v162_v49  ;;  %v5477_v11 = vand.u32 2147483647, %v163_v36 }
 0x189   :  { %8663 = vst [vmem:[#allocation363_spill] sm:$0xff] %v5375_v34  ;;  %v5467_v34 = vand.u32 2147483647, %v161_v33  ;;  %v5483_v33 = vld [vmem:[#allocation5 + $0x2] ss:$0 sm:$0xff] }
 0x18a   :  { %8664 = vst [vmem:[#allocation364_spill] sm:$0xff] %v5386_v48  ;;  %v1818_v48 = vpack.c.b16 %v1639_v10, %v1638_v35  ;;  %v676_v35 = vsub.f32 %v5391_v42, %v5483_v33  ;;  %v677_v36 = vsub.f32 %v5412_v41, %v5483_v33  ;;  %v678_v7 = vsub.f32 %v5429_v47, %v5483_v33 }
 0x18b   :  { %8665 = vst [vmem:[#allocation365_spill] sm:$0xff] %v5400_v52  ;;  %v5465_v52 = vand.u32 2147483647, %v160_v2  ;;  %v679_v25 = vsub.f32 %v5437_v61, %v5483_v33 }
 0x18c   :  { %8666 = vst [vmem:[#allocation366_spill] sm:$0xff] %v5407_v37  ;;  %v5471_v37 = vld [vmem:[#allocation5 + $0x1] ss:$0 sm:$0xff]  ;;  %v1819_v49 = vpack.c.b8 %v1818_v48, %v1817_v57  ;;  %v5505_v57 = vand.u32 2147483647, %v676_v35 }
 0x18d   :  { %8667 = vst [vmem:[#allocation367_spill] sm:$0xff] %v5419_v29  ;;  %v290_v43 = vsub.f32 %v5391_v42, %v5471_v37  ;;  %v291_v8 = vsub.f32 %v5412_v41, %v5471_v37  ;;  %v292_v26 = vsub.f32 %v5429_v47, %v5471_v37  ;;  %v293_v2 = vsub.f32 %v5437_v61, %v5471_v37 }
 0x18e   :  { %8668 = vst [vmem:[#allocation368_spill] sm:$0xff] %v5427_v4  ;;  %v5507_v48 = vand.u32 2147483647, %v677_v36  ;;  %v5557_v22 = vand.u32 2147483647, %v678_v7  ;;  %v563_v30 = vsel %vm371_vm1, %v5471_v37, %v5439_v13  ;;  %v564_v44 = vsel %vm372_vm2, %v5471_v37, %v5439_v13 }
 0x18f   :  { %8669 = vst [vmem:[#allocation369_spill] sm:$0xff] %v5431_v5  ;;  %v5487_v10 = vand.u32 2147483647, %v290_v43  ;;  %v5489_v29 = vand.u32 2147483647, %v291_v8  ;;  %v949_v62 = vsel %vm757_vm5, %v5483_v33, %v563_v30  ;;  %v950_v16 = vsel %vm758_vm6, %v5483_v33, %v564_v44  ;;  %v8797_v30 = vld [vmem:[#allocation19_spill] sm:$0xff] }
 0x190   :  { %8670 = vst [vmem:[#allocation370_spill] sm:$0xff] %v5465_v52  ;;  %v5493_v5 = vand.u32 2147483647, %v292_v26  ;;  %v5495_v4 = vand.u32 2147483647, %v293_v2  ;;  %v565_v23 = vsel %vm373_vm3, %v5471_v37, %v5439_v13  ;;  %vm8778_vm1 = vcmp.lt.f32.partialorder %v2551_v63, %v2569_v1  ;;  %v8785_v1 = vld [vmem:[#allocation17_spill] sm:$0xff] }
 0x191   :  { %8671 = vst [vmem:[#allocation371_spill] sm:$0xff] %v5467_v34  ;;  %vm8142_vm11 = vcmp.lt.f32.partialorder %v5487_v10, %v5465_v52  ;;  %vm8143_vm14 = vcmp.lt.f32.partialorder %v5489_v29, %v5467_v34  ;;  %v5559_v51 = vand.u32 2147483647, %v679_v25  ;;  %vm8779_vm2 = vcmp.lt.f32.partialorder %v2603_v14, %v2580_v6  ;;  %v8786_v6 = vld [vmem:[#allocation16_spill] sm:$0xff]  ;;  %v8798_v44 = vld [vmem:[#allocation18_spill] sm:$0xff] }
 0x192   :  { %8672 = vst [vmem:[#allocation372_spill] sm:$0xff] %v5469_v38  ;;  %vm8148_vm13 = vcmp.lt.f32.partialorder %v5493_v5, %v5469_v38  ;;  %vm8147_vm15 = vcmp.lt.f32.partialorder %v5495_v4, %v5477_v11  ;;  %v5518_v43 = vsel %vm8142_vm11, %v5487_v10, %v5465_v52  ;;  %v5525_v8 = vsel %vm8143_vm14, %v5489_v29, %v5467_v34  ;;  %v5565_v34 = vld [vmem:[#allocation5 + $0x3] ss:$0 sm:$0xff] }
 0x193   :  { %8673 = vst [vmem:[#allocation373_spill] sm:$0xff] %v5477_v11  ;;  %v5532_v26 = vsel %vm8148_vm13, %v5493_v5, %v5469_v38  ;;  %v5539_v2 = vsel %vm8147_vm15, %v5495_v4, %v5477_v11  ;;  %v546_v35 = vsel %vm8142_vm11, 1, %v8359_v18  ;;  %v548_v36 = vsel %vm8148_vm13, 1, %v8359_v18 }
 0x194   :  { %8674 = vst [vmem:[#allocation374_spill] sm:$0xff] %v5487_v10  ;;  %v549_v3 = vsel %vm8147_vm15, 1, %v8359_v18  ;;  %vm8164_vm11 = vcmp.lt.f32.partialorder %v5505_v57, %v5518_v43  ;;  %v1062_v38 = vsub.f32 %v5391_v42, %v5565_v34  ;;  %vm8162_vm15 = vcmp.lt.f32.partialorder %v5557_v22, %v5532_v26 }
 0x195   :  { %8675 = vst [vmem:[#allocation375_spill] sm:$0xff] %v5489_v29  ;;  %vm8161_vm13 = vcmp.lt.f32.partialorder %v5559_v51, %v5539_v2  ;;  %v5580_v25 = vsel %vm8164_vm11, %v5505_v57, %v5518_v43  ;;  %v5594_v11 = vsel %vm8162_vm15, %v5557_v22, %v5532_v26  ;;  %v932_v29 = vsel %vm8164_vm11, 2, %v546_v35 }
 0x196   :  { %8676 = vst [vmem:[#allocation376_spill] sm:$0xff] %v5493_v5  ;;  %v1063_v5 = vsub.f32 %v5412_v41, %v5565_v34  ;;  %v934_v10 = vsel %vm8162_vm15, 2, %v548_v36  ;;  %v935_v9 = vsel %vm8161_vm13, 2, %v549_v3  ;;  %v1064_v56 = vsub.f32 %v5429_v47, %v5565_v34 }
 0x197   :  { %8677 = vst [vmem:[#allocation377_spill] sm:$0xff] %v5495_v4  ;;  %v5601_v4 = vsel %vm8161_vm13, %v5559_v51, %v5539_v2  ;;  %v1065_v60 = vsub.f32 %v5437_v61, %v5565_v34  ;;  %v1335_v17 = vsel %vm1143_vm9, %v5565_v34, %v949_v62  ;;  %v1336_v21 = vsel %vm1144_vm10, %v5565_v34, %v950_v16  ;;  %v2119_v16 = vld [vmem:[#allocation2 + $0x18] sm:$0xff] }
 0x198   :  { %1843 = vst [vmem:[#allocation8 + $0x58] sm:$0xff] %v1819_v49  ;;  %v547_v49 = vsel %vm8143_vm14, 1, %v8359_v18  ;;  %vm8163_vm14 = vcmp.lt.f32.partialorder %v5507_v48, %v5525_v8  ;;  %v5621_v35 = vand.u32 2147483647, %v1063_v5  ;;  %vm8781_vm3 = vcmp.lt.f32.partialorder %v2469_v40, %v8780_v58  ;;  %v8788_v40 = vld [vmem:[#allocation38_spill] sm:$0xff]  ;;  %v8810_v58 = vld [vmem:[#allocation35_spill] sm:$0xff] }
 0x199   :  { %8678 = vst [vmem:[#allocation378_spill] sm:$0xff] %v5505_v57  ;;  %v5587_v7 = vsel %vm8163_vm14, %v5507_v48, %v5525_v8  ;;  %v933_v52 = vsel %vm8163_vm14, 2, %v547_v49  ;;  %v5631_v3 = vand.u32 2147483647, %v1065_v60  ;;  %v951_v0 = vsel %vm8781_vm3, %v5483_v33, %v565_v23 }
 0x19a   :  { %8679 = vst [vmem:[#allocation379_spill] sm:$0xff] %v5507_v48  ;;  %vm8172_vm15 = vcmp.lt.f32.partialorder %v5621_v35, %v5587_v7  ;;  %vm8787_vm5 = vcmp.lt.f32.partialorder %v8785_v1, %v8786_v6  ;;  %vm8799_vm10 = vcmp.lt.f32.partialorder %v8797_v30, %v8798_v44  ;;  %v8815_v1 = vld [vmem:[#allocation25_spill] sm:$0xff]  ;;  %v8816_v6 = vld [vmem:[#allocation22_spill] sm:$0xff]  ;;  %v2122_v30 = vld [vmem:[#allocation2 + $0x30] sm:$0xff] }
 0x19b   :  { %8680 = vst [vmem:[#allocation380_spill] sm:$0xff] %v5518_v43  ;;  %v5619_v43 = vand.u32 2147483647, %v1062_v38  ;;  %vm8173_vm11 = vcmp.lt.f32.partialorder %v5631_v3, %v5601_v4  ;;  %v5661_v60 = vsel %vm8172_vm15, %v5621_v35, %v5587_v7  ;;  %v1337_v14 = vsel %vm8787_vm5, %v5565_v34, %v951_v0 }
 0x19c   :  { %8681 = vst [vmem:[#allocation381_spill] sm:$0xff] %v5525_v8  ;;  %v5623_v8 = vld [vmem:[#allocation5 + $0x4] ss:$0 sm:$0xff]  ;;  %v1321_v57 = vsel %vm8173_vm11, 3, %v935_v9 }
 0x19d   :  { %8682 = vst [vmem:[#allocation382_spill] sm:$0xff] %v5532_v26  ;;  %v1448_v49 = vsub.f32 %v5391_v42, %v5623_v8  ;;  %v1449_v36 = vsub.f32 %v5412_v41, %v5623_v8  ;;  %v1451_v38 = vsub.f32 %v5437_v61, %v5623_v8  ;;  %vm8171_vm13 = vcmp.lt.f32.partialorder %v5619_v43, %v5580_v25  ;;  %v5663_v61 = vld [vmem:[#allocation2 + $0x1a0] sm:$0xff]  ;;  %v5665_v41 = vld [vmem:[#allocation2 + $0x1a8] sm:$0xff] }
 0x19e   :  { %8683 = vst [vmem:[#allocation383_spill] sm:$0xff] %v5539_v2  ;;  %v5629_v2 = vand.u32 2147483647, %v1064_v56  ;;  %v5654_v56 = vsel %vm8171_vm13, %v5619_v43, %v5580_v25  ;;  %v1319_v26 = vsel %vm8172_vm15, 3, %v933_v52  ;;  %v5703_v52 = vld [vmem:[#allocation2 + $0x1b8] sm:$0xff]  ;;  %v1657_v39 = vsel %vm8778_vm1, %v5623_v8, %v1335_v17 }
 0x19f   :  { %8684 = vst [vmem:[#allocation384_spill] sm:$0xff] %v5557_v22  ;;  %v5641_v5 = vand.u32 2147483647, %v1448_v49  ;;  %v5643_v42 = vand.u32 2147483647, %v1449_v36  ;;  %v5679_v49 = vsel %vm8173_vm11, %v5631_v3, %v5601_v4  ;;  %v1318_v36 = vsel %vm8171_vm13, 3, %v932_v29 }
 0x1a0   :  { %8685 = vst [vmem:[#allocation385_spill] sm:$0xff] %v5559_v51  ;;  %v1450_v51 = vsub.f32 %v5429_v47, %v5623_v8  ;;  %vm8174_vm14 = vcmp.lt.f32.partialorder %v5629_v2, %v5594_v11  ;;  %v5687_v22 = vld [vmem:[#allocation2 + $0x1b0] sm:$0xff]  ;;  %v5697_v59 = vand.u32 2147483647, %v1451_v38  ;;  %v164_v29 = vsub.f32 %v5663_v61, %v5439_v13 }
 0x1a1   :  { %8686 = vst [vmem:[#allocation386_spill] sm:$0xff] %v5587_v7  ;;  %v5672_v47 = vsel %vm8174_vm14, %v5629_v2, %v5594_v11  ;;  %v1320_v48 = vsel %vm8174_vm14, 3, %v934_v10  ;;  %vm8187_vm13 = vcmp.lt.f32.partialorder %v5641_v5, %v5654_v56  ;;  %vm8186_vm15 = vcmp.lt.f32.partialorder %v5643_v42, %v5661_v60 }
 0x1a2   :  { %8687 = vst [vmem:[#allocation387_spill] sm:$0xff] %v5594_v11  ;;  %v5695_v53 = vand.u32 2147483647, %v1450_v51  ;;  %v165_v10 = vsub.f32 %v5665_v41, %v5439_v13  ;;  %vm8184_vm14 = vcmp.lt.f32.partialorder %v5697_v59, %v5679_v49  ;;  %v1640_v9 = vsel %vm8187_vm13, 4, %v1318_v36 }
 0x1a3   :  { %8688 = vst [vmem:[#allocation388_spill] sm:$0xff] %v5601_v4  ;;  %v1641_v51 = vsel %vm8186_vm15, 4, %v1319_v26  ;;  %v1643_v4 = vsel %vm8184_vm14, 4, %v1321_v57  ;;  %v166_v11 = vsub.f32 %v5687_v22, %v5439_v13  ;;  %v167_v36 = vsub.f32 %v5703_v52, %v5439_v13 }
 0x1a4   :  { %8689 = vst [vmem:[#allocation389_spill] sm:$0xff] %v5629_v2  ;;  %vm8185_vm11 = vcmp.lt.f32.partialorder %v5695_v53, %v5672_v47  ;;  %v295_v57 = vsub.f32 %v5665_v41, %v5471_v37  ;;  %v1658_v45 = vsel %vm8779_vm2, %v5623_v8, %v1336_v21  ;;  %v1849_v24 = vsub.f32 %v1657_v39, %v2117_v19  ;;  %v2120_v21 = vld [vmem:[#allocation2 + $0x20] sm:$0xff]  ;;  %v8807_v19 = vld [vmem:[#allocation30_spill] sm:$0xff] }
 0x1a5   :  { %8690 = vst [vmem:[#allocation390_spill] sm:$0xff] %v5631_v3  ;;  %v1642_v38 = vsel %vm8185_vm11, 4, %v1320_v48  ;;  %v1820_v3 = vpack.c.b16 %v1641_v51, %v1640_v9  ;;  %v5733_v26 = vand.u32 2147483647, %v166_v11  ;;  %v294_v48 = vsub.f32 %v5663_v61, %v5471_v37 }
 0x1a6   :  { %8691 = vst [vmem:[#allocation391_spill] sm:$0xff] %v5641_v5  ;;  %v1821_v2 = vpack.c.b16 %v1643_v4, %v1642_v38  ;;  %v296_v9 = vsub.f32 %v5687_v22, %v5471_v37  ;;  %v5741_v4 = vand.u32 2147483647, %v167_v36  ;;  %v5749_v38 = vand.u32 2147483647, %v295_v57 }
 0x1a7   :  { %8692 = vst [vmem:[#allocation392_spill] sm:$0xff] %v5643_v42  ;;  %v5747_v11 = vand.u32 2147483647, %v294_v48  ;;  %v1850_v55 = vsub.f32 %v1658_v45, %v2118_v46 }
 0x1a8   :  { %8693 = vst [vmem:[#allocation393_spill] sm:$0xff] %v5654_v56  ;;  %v5729_v56 = vand.u32 2147483647, %v164_v29  ;;  %v1822_v51 = vpack.c.b8 %v1821_v2, %v1820_v3  ;;  %v297_v29 = vsub.f32 %v5703_v52, %v5471_v37  ;;  %v682_v2 = vsub.f32 %v5687_v22, %v5483_v33 }
 0x1a9   :  { %8694 = vst [vmem:[#allocation394_spill] sm:$0xff] %v5661_v60  ;;  %v5731_v60 = vand.u32 2147483647, %v165_v10  ;;  %v680_v10 = vsub.f32 %v5663_v61, %v5483_v33  ;;  %v683_v3 = vsub.f32 %v5703_v52, %v5483_v33 }
 0x1aa   :  { %8695 = vst [vmem:[#allocation395_spill] sm:$0xff] %v5672_v47  ;;  %v5755_v47 = vand.u32 2147483647, %v297_v29  ;;  %vm8192_vm14 = vcmp.lt.f32.partialorder %v5747_v11, %v5729_v56  ;;  %v5817_v5 = vand.u32 2147483647, %v682_v2 }
 0x1ab   :  { %8696 = vst [vmem:[#allocation396_spill] sm:$0xff] %v5679_v49  ;;  %v5751_v49 = vand.u32 2147483647, %v296_v9  ;;  %v5761_v36 = vand.u32 2147483647, %v680_v10  ;;  %vm8193_vm11 = vcmp.lt.f32.partialorder %v5749_v38, %v5731_v60  ;;  %v5778_v57 = vsel %vm8192_vm14, %v5747_v11, %v5729_v56 }
 0x1ac   :  { %8697 = vst [vmem:[#allocation397_spill] sm:$0xff] %v5695_v53  ;;  %vm8195_vm13 = vcmp.lt.f32.partialorder %v5755_v47, %v5741_v4  ;;  %v5785_v9 = vsel %vm8193_vm11, %v5749_v38, %v5731_v60  ;;  %v550_v29 = vsel %vm8192_vm14, 1, %v8359_v18  ;;  %v551_v10 = vsel %vm8193_vm11, 1, %v8359_v18 }
 0x1ad   :  { %8698 = vst [vmem:[#allocation398_spill] sm:$0xff] %v5697_v59  ;;  %v681_v59 = vsub.f32 %v5665_v41, %v5483_v33  ;;  %vm8196_vm15 = vcmp.lt.f32.partialorder %v5751_v49, %v5733_v26  ;;  %v553_v42 = vsel %vm8195_vm13, 1, %v8359_v18  ;;  %v5819_v7 = vand.u32 2147483647, %v683_v3 }
 0x1ae   :  { %8699 = vst [vmem:[#allocation399_spill] sm:$0xff] %v5729_v56  ;;  %v552_v53 = vsel %vm8196_vm15, 1, %v8359_v18  ;;  %vm8213_vm14 = vcmp.lt.f32.partialorder %v5761_v36, %v5778_v57  ;;  %v1066_v3 = vsub.f32 %v5663_v61, %v5565_v34  ;;  %v5955_v56 = vld [vmem:[#allocation2 + $0x1d0] sm:$0xff] }
 0x1af   :  { %8700 = vst [vmem:[#allocation400_spill] sm:$0xff] %v5731_v60  ;;  %v5769_v48 = vand.u32 2147483647, %v681_v59  ;;  %v5792_v59 = vsel %vm8196_vm15, %v5751_v49, %v5733_v26  ;;  %v936_v2 = vsel %vm8213_vm14, 2, %v550_v29 }
 0x1b0   :  { %8701 = vst [vmem:[#allocation401_spill] sm:$0xff] %v5733_v26  ;;  %v5830_v26 = vsel %vm8213_vm14, %v5761_v36, %v5778_v57 }
 0x1b1   :  { %8702 = vst [vmem:[#allocation402_spill] sm:$0xff] %v5741_v4  ;;  %vm8212_vm11 = vcmp.lt.f32.partialorder %v5769_v48, %v5785_v9 }
 0x1b2   :  { %8703 = vst [vmem:[#allocation403_spill] sm:$0xff] %v5747_v11  ;;  %v937_v29 = vsel %vm8212_vm11, 2, %v551_v10  ;;  %v5957_v11 = vld [vmem:[#allocation2 + $0x1d8] sm:$0xff] }
 0x1b3   :  { %8704 = vst [vmem:[#allocation404_spill] sm:$0xff] %v5749_v38  ;;  %v1069_v38 = vsub.f32 %v5703_v52, %v5565_v34 }
 0x1b4   :  { %8705 = vst [vmem:[#allocation405_spill] sm:$0xff] %v5751_v49 }
 0x1b5   :  { %1844 = vst [vmem:[#allocation8 + $0x60] sm:$0xff] %v1822_v51  ;;  %v5799_v51 = vsel %vm8195_vm13, %v5755_v47, %v5741_v4  ;;  %vm8211_vm13 = vcmp.lt.f32.partialorder %v5817_v5, %v5792_v59  ;;  %v5846_v4 = vsel %vm8212_vm11, %v5769_v48, %v5785_v9 }
 0x1b6   :  { %8706 = vst [vmem:[#allocation406_spill] sm:$0xff] %v5755_v47  ;;  %vm8210_vm15 = vcmp.lt.f32.partialorder %v5819_v7, %v5799_v51  ;;  %v5856_v47 = vsel %vm8211_vm13, %v5817_v5, %v5792_v59  ;;  %v938_v60 = vsel %vm8211_vm13, 2, %v552_v53  ;;  %v1453_v53 = vsub.f32 %v5665_v41, %v5623_v8 }
 0x1b7   :  { %8707 = vst [vmem:[#allocation407_spill] sm:$0xff] %v5761_v36  ;;  %v5863_v49 = vsel %vm8210_vm15, %v5819_v7, %v5799_v51  ;;  %v939_v10 = vsel %vm8210_vm15, 2, %v553_v42  ;;  %v1452_v36 = vsub.f32 %v5663_v61, %v5623_v8  ;;  %v1454_v42 = vsub.f32 %v5687_v22, %v5623_v8 }
 0x1b8   :  { %8708 = vst [vmem:[#allocation408_spill] sm:$0xff] %v5769_v48  ;;  %v1068_v48 = vsub.f32 %v5687_v22, %v5565_v34 }
 0x1b9   :  { %8709 = vst [vmem:[#allocation409_spill] sm:$0xff] %v5778_v57  ;;  %v5877_v57 = vand.u32 2147483647, %v1066_v3 }
 0x1ba   :  { %8710 = vst [vmem:[#allocation410_spill] sm:$0xff] %v5785_v9  ;;  %v1067_v9 = vsub.f32 %v5665_v41, %v5565_v34  ;;  %v5905_v41 = vand.u32 2147483647, %v1452_v36 }
 0x1bb   :  { %8711 = vst [vmem:[#allocation411_spill] sm:$0xff] %v5792_v59  ;;  %v5889_v59 = vand.u32 2147483647, %v1068_v48  ;;  %vm8216_vm15 = vcmp.lt.f32.partialorder %v5877_v57, %v5830_v26  ;;  %v5917_v48 = vld [vmem:[#allocation2 + $0x1c0] sm:$0xff] }
 0x1bc   :  { %8712 = vst [vmem:[#allocation412_spill] sm:$0xff] %v5799_v51  ;;  %v1455_v51 = vsub.f32 %v5703_v52, %v5623_v8  ;;  %v5900_v61 = vsel %vm8216_vm15, %v5877_v57, %v5830_v26  ;;  %v1322_v22 = vsel %vm8216_vm15, 3, %v936_v2  ;;  %v5907_v52 = vand.u32 2147483647, %v1453_v53  ;;  %v5943_v53 = vld [vmem:[#allocation2 + $0x1c8] sm:$0xff] }
 0x1bd   :  { %8713 = vst [vmem:[#allocation413_spill] sm:$0xff] %v5817_v5  ;;  %v5891_v5 = vand.u32 2147483647, %v1069_v38  ;;  %vm8234_vm11 = vcmp.lt.f32.partialorder %v5889_v59, %v5856_v47  ;;  %v5915_v38 = vand.u32 2147483647, %v1454_v42  ;;  %vm1580_vm15 = vcmp.lt.f32.partialorder %v5905_v41, %v5900_v61 }
 0x1be   :  { %8714 = vst [vmem:[#allocation414_spill] sm:$0xff] %v5819_v7  ;;  %v5887_v7 = vand.u32 2147483647, %v1067_v9  ;;  %v5931_v9 = vsel %vm8234_vm11, %v5889_v59, %v5856_v47  ;;  %v1324_v42 = vsel %vm8234_vm11, 3, %v938_v60  ;;  %v1644_v60 = vsel %vm1580_vm15, 4, %v1322_v22 }
 0x1bf   :  { %8715 = vst [vmem:[#allocation415_spill] sm:$0xff] %v5830_v26  ;;  %vm8221_vm14 = vcmp.lt.f32.partialorder %v5891_v5, %v5863_v49  ;;  %vm8232_vm7 = vcmp.lt.f32.partialorder %v5915_v38, %v5931_v9 }
 0x1c0   :  { %8716 = vst [vmem:[#allocation416_spill] sm:$0xff] %v5846_v4  ;;  %vm8219_vm13 = vcmp.lt.f32.partialorder %v5887_v7, %v5846_v4  ;;  %v5938_v2 = vsel %vm8221_vm14, %v5891_v5, %v5863_v49  ;;  %v1325_v26 = vsel %vm8221_vm14, 3, %v939_v10  ;;  %v1646_v10 = vsel %vm8232_vm7, 4, %v1324_v42 }
 0x1c1   :  { %8717 = vst [vmem:[#allocation417_spill] sm:$0xff] %v5856_v47  ;;  %v5924_v36 = vsel %vm8219_vm13, %v5887_v7, %v5846_v4  ;;  %v1323_v3 = vsel %vm8219_vm13, 3, %v937_v29  ;;  %v170_v47 = vsub.f32 %v5955_v56, %v5439_v13  ;;  %v298_v42 = vsub.f32 %v5917_v48, %v5471_v37 }
 0x1c2   :  { %8718 = vst [vmem:[#allocation418_spill] sm:$0xff] %v5863_v49  ;;  %vm8233_vm13 = vcmp.lt.f32.partialorder %v5907_v52, %v5924_v36  ;;  %v169_v49 = vsub.f32 %v5943_v53, %v5439_v13 }
 0x1c3   :  { %8719 = vst [vmem:[#allocation419_spill] sm:$0xff] %v5877_v57  ;;  %v5951_v57 = vand.u32 2147483647, %v1455_v51  ;;  %v168_v51 = vsub.f32 %v5917_v48, %v5439_v13  ;;  %v1645_v29 = vsel %vm8233_vm13, 4, %v1323_v3 }
 0x1c4   :  { %8720 = vst [vmem:[#allocation420_spill] sm:$0xff] %v5887_v7 }
 0x1c5   :  { %8721 = vst [vmem:[#allocation421_spill] sm:$0xff] %v5889_v59  ;;  %vm8231_vm14 = vcmp.lt.f32.partialorder %v5951_v57, %v5938_v2  ;;  %v171_v59 = vsub.f32 %v5957_v11, %v5439_v13  ;;  %v5985_v3 = vand.u32 2147483647, %v168_v51  ;;  %v301_v51 = vsub.f32 %v5957_v11, %v5471_v37 }
 0x1c6   :  { %8722 = vst [vmem:[#allocation422_spill] sm:$0xff] %v5891_v5  ;;  %v1647_v22 = vsel %vm8231_vm14, 4, %v1325_v26  ;;  %v1823_v5 = vpack.c.b16 %v1645_v29, %v1644_v60  ;;  %v299_v26 = vsub.f32 %v5943_v53, %v5471_v37  ;;  %v300_v60 = vsub.f32 %v5955_v56, %v5471_v37 }
 0x1c7   :  { %8723 = vst [vmem:[#allocation423_spill] sm:$0xff] %v5900_v61  ;;  %v1456_v61 = vsub.f32 %v5917_v48, %v5623_v8 }
 0x1c8   :  { %8724 = vst [vmem:[#allocation424_spill] sm:$0xff] %v5905_v41 }
 0x1c9   :  { %8725 = vst [vmem:[#allocation425_spill] sm:$0xff] %v5907_v52  ;;  %v5987_v52 = vand.u32 2147483647, %v169_v49  ;;  %v684_v49 = vsub.f32 %v5917_v48, %v5483_v33 }
 0x1ca   :  { %8726 = vst [vmem:[#allocation426_spill] sm:$0xff] %v5915_v38  ;;  %v5993_v38 = vand.u32 2147483647, %v171_v59  ;;  %v685_v59 = vsub.f32 %v5943_v53, %v5483_v33 }
 0x1cb   :  { %8727 = vst [vmem:[#allocation427_spill] sm:$0xff] %v5924_v36  ;;  %v1824_v36 = vpack.c.b16 %v1647_v22, %v1646_v10  ;;  %v6001_v10 = vand.u32 2147483647, %v298_v42  ;;  %v6005_v22 = vand.u32 2147483647, %v299_v26 }
 0x1cc   :  { %8728 = vst [vmem:[#allocation428_spill] sm:$0xff] %v5931_v9  ;;  %v5991_v9 = vand.u32 2147483647, %v170_v47  ;;  %v6007_v47 = vand.u32 2147483647, %v300_v60 }
 0x1cd   :  { %8729 = vst [vmem:[#allocation429_spill] sm:$0xff] %v5938_v2  ;;  %v1825_v29 = vpack.c.b8 %v1824_v36, %v1823_v5  ;;  %v686_v2 = vsub.f32 %v5955_v56, %v5483_v33  ;;  %v6013_v5 = vand.u32 2147483647, %v301_v51  ;;  %vm8245_vm14 = vcmp.lt.f32.partialorder %v6001_v10, %v5985_v3 }
 0x1ce   :  { %8730 = vst [vmem:[#allocation430_spill] sm:$0xff] %v5951_v57  ;;  %v687_v36 = vsub.f32 %v5957_v11, %v5483_v33  ;;  %v6019_v42 = vand.u32 2147483647, %v684_v49  ;;  %vm8241_vm7 = vcmp.lt.f32.partialorder %v6005_v22, %v5987_v52  ;;  %vm8243_vm13 = vcmp.lt.f32.partialorder %v6007_v47, %v5991_v9 }
 0x1cf   :  { %8731 = vst [vmem:[#allocation431_spill] sm:$0xff] %v5985_v3  ;;  %v6030_v26 = vsel %vm8245_vm14, %v6001_v10, %v5985_v3  ;;  %v554_v60 = vsel %vm8245_vm14, 1, %v8359_v18  ;;  %vm8244_vm11 = vcmp.lt.f32.partialorder %v6013_v5, %v5993_v38  ;;  %v6050_v51 = vsel %vm8243_vm13, %v6007_v47, %v5991_v9 }
 0x1d0   :  { %8732 = vst [vmem:[#allocation432_spill] sm:$0xff] %v5987_v52  ;;  %v555_v49 = vsel %vm8241_vm7, 1, %v8359_v18  ;;  %v6061_v57 = vsel %vm8244_vm11, %v6013_v5, %v5993_v38  ;;  %v556_v4 = vsel %vm8243_vm13, 1, %v8359_v18  ;;  %v557_v7 = vsel %vm8244_vm11, 1, %v8359_v18 }
 0x1d1   :  { %8733 = vst [vmem:[#allocation433_spill] sm:$0xff] %v5991_v9  ;;  %v6071_v3 = vand.u32 2147483647, %v685_v59 }
 0x1d2   :  { %8734 = vst [vmem:[#allocation434_spill] sm:$0xff] %v5993_v38 }
 0x1d3   :  { %8735 = vst [vmem:[#allocation435_spill] sm:$0xff] %v6001_v10  ;;  %v1070_v10 = vsub.f32 %v5917_v48, %v5565_v34 }
 0x1d4   :  { %8736 = vst [vmem:[#allocation436_spill] sm:$0xff] %v6005_v22 }
 0x1d5   :  { %8737 = vst [vmem:[#allocation437_spill] sm:$0xff] %v6007_v47 }
 0x1d6   :  { %1845 = vst [vmem:[#allocation8 + $0x68] sm:$0xff] %v1825_v29  ;;  %v6043_v29 = vsel %vm8241_vm7, %v6005_v22, %v5987_v52  ;;  %v6073_v52 = vand.u32 2147483647, %v686_v2  ;;  %v6075_v22 = vand.u32 2147483647, %v687_v36  ;;  %vm8261_vm7 = vcmp.lt.f32.partialorder %v6019_v42, %v6030_v26 }
 0x1d7   :  { %8738 = vst [vmem:[#allocation438_spill] sm:$0xff] %v6013_v5  ;;  %vm8260_vm13 = vcmp.lt.f32.partialorder %v6071_v3, %v6043_v29  ;;  %v6088_v59 = vsel %vm8261_vm7, %v6019_v42, %v6030_v26  ;;  %v940_v2 = vsel %vm8261_vm7, 2, %v554_v60  ;;  %v1071_v36 = vsub.f32 %v5943_v53, %v5565_v34 }
 0x1d8   :  { %8739 = vst [vmem:[#allocation439_spill] sm:$0xff] %v6019_v42  ;;  %vm8259_vm11 = vcmp.lt.f32.partialorder %v6073_v52, %v6050_v51  ;;  %vm8258_vm14 = vcmp.lt.f32.partialorder %v6075_v22, %v6061_v57  ;;  %v6104_v38 = vsel %vm8260_vm13, %v6071_v3, %v6043_v29  ;;  %v941_v60 = vsel %vm8260_vm13, 2, %v555_v49 }
 0x1d9   :  { %8740 = vst [vmem:[#allocation440_spill] sm:$0xff] %v6030_v26  ;;  %v6114_v5 = vsel %vm8259_vm11, %v6073_v52, %v6050_v51  ;;  %v6121_v9 = vsel %vm8258_vm14, %v6075_v22, %v6061_v57  ;;  %v942_v47 = vsel %vm8259_vm11, 2, %v556_v4  ;;  %v943_v49 = vsel %vm8258_vm14, 2, %v557_v7 }
 0x1da   :  { %8741 = vst [vmem:[#allocation441_spill] sm:$0xff] %v6043_v29  ;;  %v1072_v29 = vsub.f32 %v5955_v56, %v5565_v34  ;;  %v6133_v26 = vand.u32 2147483647, %v1070_v10  ;;  %v6135_v42 = vand.u32 2147483647, %v1071_v36  ;;  %v1457_v4 = vsub.f32 %v5943_v53, %v5623_v8  ;;  %v6183_v36 = vld [vmem:[#allocation2 + $0x1e8] sm:$0xff] }
 0x1db   :  { %8742 = vst [vmem:[#allocation442_spill] sm:$0xff] %v6050_v51  ;;  %v1459_v7 = vsub.f32 %v5957_v11, %v5623_v8 }
 0x1dc   :  { %8743 = vst [vmem:[#allocation443_spill] sm:$0xff] %v6061_v57  ;;  %v1458_v57 = vsub.f32 %v5955_v56, %v5623_v8  ;;  %vm8266_vm14 = vcmp.lt.f32.partialorder %v6133_v26, %v6088_v59  ;;  %vm8265_vm11 = vcmp.lt.f32.partialorder %v6135_v42, %v6104_v38  ;;  %v6179_v10 = vand.u32 2147483647, %v1457_v4 }
 0x1dd   :  { %8744 = vst [vmem:[#allocation444_spill] sm:$0xff] %v6071_v3  ;;  %v1073_v3 = vsub.f32 %v5957_v11, %v5565_v34  ;;  %v6158_v48 = vsel %vm8266_vm14, %v6133_v26, %v6088_v59  ;;  %v6165_v56 = vsel %vm8265_vm11, %v6135_v42, %v6104_v38  ;;  %v1326_v11 = vsel %vm8266_vm14, 3, %v940_v2 }
 0x1de   :  { %8745 = vst [vmem:[#allocation445_spill] sm:$0xff] %v6073_v52  ;;  %v1327_v53 = vsel %vm8265_vm11, 3, %v941_v60  ;;  %v6209_v52 = vand.u32 2147483647, %v1459_v7  ;;  %vm8282_vm14 = vcmp.lt.f32.partialorder %v6179_v10, %v6165_v56  ;;  %v173_v7 = vsub.f32 %v6183_v36, %v5439_v13 }
 0x1df   :  { %8746 = vst [vmem:[#allocation446_spill] sm:$0xff] %v6075_v22  ;;  %v6145_v22 = vand.u32 2147483647, %v1072_v29  ;;  %v6147_v51 = vand.u32 2147483647, %v1073_v3  ;;  %v6181_v29 = vld [vmem:[#allocation2 + $0x1e0] sm:$0xff] }
 0x1e0   :  { %8747 = vst [vmem:[#allocation447_spill] sm:$0xff] %v6088_v59  ;;  %v6177_v3 = vand.u32 2147483647, %v1456_v61  ;;  %v6215_v59 = vld [vmem:[#allocation2 + $0x1f8] sm:$0xff] }
 0x1e1   :  { %8748 = vst [vmem:[#allocation448_spill] sm:$0xff] %v6104_v38  ;;  %vm8269_vm13 = vcmp.lt.f32.partialorder %v6145_v22, %v6114_v5  ;;  %vm8268_vm7 = vcmp.lt.f32.partialorder %v6147_v51, %v6121_v9  ;;  %v6205_v38 = vld [vmem:[#allocation2 + $0x1f0] sm:$0xff] }
 0x1e2   :  { %8749 = vst [vmem:[#allocation449_spill] sm:$0xff] %v6114_v5  ;;  %v6190_v2 = vsel %vm8269_vm13, %v6145_v22, %v6114_v5  ;;  %v6197_v61 = vsel %vm8268_vm7, %v6147_v51, %v6121_v9  ;;  %v1328_v60 = vsel %vm8269_vm13, 3, %v942_v47  ;;  %v1329_v4 = vsel %vm8268_vm7, 3, %v943_v49 }
 0x1e3   :  { %8750 = vst [vmem:[#allocation450_spill] sm:$0xff] %v6121_v9  ;;  %vm8283_vm11 = vcmp.lt.f32.partialorder %v6177_v3, %v6158_v48  ;;  %v1649_v49 = vsel %vm8282_vm14, 4, %v1327_v53  ;;  %vm8280_vm13 = vcmp.lt.f32.partialorder %v6209_v52, %v6197_v61 }
 0x1e4   :  { %8751 = vst [vmem:[#allocation451_spill] sm:$0xff] %v6133_v26  ;;  %v1648_v47 = vsel %vm8283_vm11, 4, %v1326_v11  ;;  %v174_v11 = vsub.f32 %v6205_v38, %v5439_v13 }
 0x1e5   :  { %8752 = vst [vmem:[#allocation452_spill] sm:$0xff] %v6135_v42  ;;  %v6207_v42 = vand.u32 2147483647, %v1458_v57  ;;  %v172_v57 = vsub.f32 %v6181_v29, %v5439_v13  ;;  %v1826_v9 = vpack.c.b16 %v1649_v49, %v1648_v47  ;;  %v302_v49 = vsub.f32 %v6181_v29, %v5471_v37 }
 0x1e6   :  { %8753 = vst [vmem:[#allocation453_spill] sm:$0xff] %v6145_v22  ;;  %v6243_v22 = vand.u32 2147483647, %v173_v7  ;;  %v6245_v47 = vand.u32 2147483647, %v174_v11  ;;  %v688_v7 = vsub.f32 %v6181_v29, %v5483_v33  ;;  %v689_v11 = vsub.f32 %v6183_v36, %v5483_v33 }
 0x1e7   :  { %8754 = vst [vmem:[#allocation454_spill] sm:$0xff] %v6147_v51  ;;  %vm8281_vm7 = vcmp.lt.f32.partialorder %v6207_v42, %v6190_v2  ;;  %v6241_v51 = vand.u32 2147483647, %v172_v57  ;;  %v305_v57 = vsub.f32 %v6215_v59, %v5471_v37 }
 0x1e8   :  { %8755 = vst [vmem:[#allocation455_spill] sm:$0xff] %v6158_v48  ;;  %v1650_v53 = vsel %vm8281_vm7, 4, %v1328_v60  ;;  %v303_v60 = vsub.f32 %v6183_v36, %v5471_v37 }
 0x1e9   :  { %8756 = vst [vmem:[#allocation456_spill] sm:$0xff] %v6165_v56  ;;  %v1651_v56 = vsel %vm8280_vm13, 4, %v1329_v4  ;;  %v304_v4 = vsub.f32 %v6205_v38, %v5471_v37 }
 0x1ea   :  { %8757 = vst [vmem:[#allocation457_spill] sm:$0xff] %v6177_v3  ;;  %v1827_v5 = vpack.c.b16 %v1651_v56, %v1650_v53  ;;  %v6257_v56 = vand.u32 2147483647, %v302_v49  ;;  %v6277_v49 = vand.u32 2147483647, %v689_v11 }
 0x1eb   :  { %8758 = vst [vmem:[#allocation458_spill] sm:$0xff] %v6179_v10  ;;  %v175_v10 = vsub.f32 %v6215_v59, %v5439_v13  ;;  %v6265_v53 = vand.u32 2147483647, %v304_v4 }
 0x1ec   :  { %8759 = vst [vmem:[#allocation459_spill] sm:$0xff] %v6190_v2  ;;  %v690_v2 = vsub.f32 %v6205_v38, %v5483_v33  ;;  %vm8288_vm13 = vcmp.lt.f32.partialorder %v6257_v56, %v6241_v51 }
 0x1ed   :  { %8760 = vst [vmem:[#allocation460_spill] sm:$0xff] %v6197_v61  ;;  %v6249_v48 = vand.u32 2147483647, %v175_v10  ;;  %v1828_v61 = vpack.c.b8 %v1827_v5, %v1826_v9  ;;  %v6263_v10 = vand.u32 2147483647, %v303_v60  ;;  %v691_v9 = vsub.f32 %v6215_v59, %v5483_v33 }
 0x1ee   :  { %8761 = vst [vmem:[#allocation461_spill] sm:$0xff] %v6207_v42  ;;  %v6275_v5 = vand.u32 2147483647, %v688_v7  ;;  %vm8291_vm14 = vcmp.lt.f32.partialorder %v6265_v53, %v6245_v47  ;;  %v558_v7 = vsel %vm8288_vm13, 1, %v8359_v18  ;;  %v6329_v26 = vand.u32 2147483647, %v690_v2 }
 0x1ef   :  { %8762 = vst [vmem:[#allocation462_spill] sm:$0xff] %v6209_v52  ;;  %v6267_v52 = vand.u32 2147483647, %v305_v57  ;;  %vm8289_vm7 = vcmp.lt.f32.partialorder %v6263_v10, %v6243_v22  ;;  %v6304_v4 = vsel %vm8291_vm14, %v6265_v53, %v6245_v47  ;;  %v560_v42 = vsel %vm8291_vm14, 1, %v8359_v18 }
 0x1f0   :  { %8763 = vst [vmem:[#allocation463_spill] sm:$0xff] %v6243_v22  ;;  %v6297_v60 = vsel %vm8289_vm7, %v6263_v10, %v6243_v22  ;;  %v559_v11 = vsel %vm8289_vm7, 1, %v8359_v18  ;;  %v6331_v41 = vand.u32 2147483647, %v691_v9  ;;  %v1074_v22 = vsub.f32 %v6181_v29, %v5565_v34 }
 0x1f1   :  { %8764 = vst [vmem:[#allocation464_spill] sm:$0xff] %v6245_v47  ;;  %vm8292_vm11 = vcmp.lt.f32.partialorder %v6267_v52, %v6249_v48  ;;  %vm8307_vm7 = vcmp.lt.f32.partialorder %v6277_v49, %v6297_v60  ;;  %vm8306_vm14 = vcmp.lt.f32.partialorder %v6329_v26, %v6304_v4 }
 0x1f2   :  { %8765 = vst [vmem:[#allocation465_spill] sm:$0xff] %v6249_v48  ;;  %v6311_v57 = vsel %vm8292_vm11, %v6267_v52, %v6249_v48  ;;  %v561_v3 = vsel %vm8292_vm11, 1, %v8359_v18  ;;  %v6353_v2 = vsel %vm8307_vm7, %v6277_v49, %v6297_v60  ;;  %v6365_v48 = vsel %vm8306_vm14, %v6329_v26, %v6304_v4 }
 0x1f3   :  { %8766 = vst [vmem:[#allocation466_spill] sm:$0xff] %v6265_v53  ;;  %vm8305_vm11 = vcmp.lt.f32.partialorder %v6331_v41, %v6311_v57  ;;  %v946_v47 = vsel %vm8306_vm14, 2, %v560_v42  ;;  %v1077_v42 = vsub.f32 %v6215_v59, %v5565_v34 }
 0x1f4   :  { %8767 = vst [vmem:[#allocation467_spill] sm:$0xff] %v6267_v52  ;;  %v945_v52 = vsel %vm8307_vm7, 2, %v559_v11  ;;  %v1076_v11 = vsub.f32 %v6205_v38, %v5565_v34 }
 0x1f5   :  { %1846 = vst [vmem:[#allocation8 + $0x70] sm:$0xff] %v1828_v61  ;;  %v6290_v61 = vsel %vm8288_vm13, %v6257_v56, %v6241_v51  ;;  %v6403_v53 = vand.u32 2147483647, %v1077_v42 }
 0x1f6   :  { %8768 = vst [vmem:[#allocation468_spill] sm:$0xff] %v6275_v5  ;;  %vm8308_vm13 = vcmp.lt.f32.partialorder %v6275_v5, %v6290_v61 }
 0x1f7   :  { %8769 = vst [vmem:[#allocation469_spill] sm:$0xff] %v6277_v49  ;;  %v6346_v18 = vsel %vm8308_vm13, %v6275_v5, %v6290_v61  ;;  %v944_v9 = vsel %vm8308_vm13, 2, %v558_v7  ;;  %v6378_v7 = vsel %vm8305_vm11, %v6331_v41, %v6311_v57  ;;  %v1075_v5 = vsub.f32 %v6183_v36, %v5565_v34 }
 0x1f8   :  { %8770 = vst [vmem:[#allocation470_spill] sm:$0xff] %v6290_v61  ;;  %v947_v61 = vsel %vm8305_vm11, 2, %v561_v3  ;;  %v6397_v3 = vand.u32 2147483647, %v1076_v11  ;;  %vm8313_vm13 = vcmp.lt.f32.partialorder %v6403_v53, %v6378_v7 }
 0x1f9   :  { %8771 = vst [vmem:[#allocation471_spill] sm:$0xff] %v6297_v60  ;;  %v1461_v60 = vsub.f32 %v6183_v36, %v5623_v8  ;;  %v6395_v49 = vand.u32 2147483647, %v1075_v5  ;;  %v1333_v11 = vsel %vm8313_vm13, 3, %v947_v61 }
 0x1fa   :  { %8772 = vst [vmem:[#allocation472_spill] sm:$0xff] %v6304_v4  ;;  %v6389_v4 = vand.u32 2147483647, %v1074_v22  ;;  %vm8312_vm7 = vcmp.lt.f32.partialorder %v6397_v3, %v6365_v48 }
 0x1fb   :  { %8773 = vst [vmem:[#allocation473_spill] sm:$0xff] %v6311_v57  ;;  %v1462_v57 = vsub.f32 %v6205_v38, %v5623_v8  ;;  %vm8310_vm14 = vcmp.lt.f32.partialorder %v6395_v49, %v6353_v2  ;;  %v6439_v36 = vsel %vm8312_vm7, %v6397_v3, %v6365_v48 }
 0x1fc   :  { %8774 = vst [vmem:[#allocation474_spill] sm:$0xff] %v6329_v26  ;;  %v1460_v26 = vsub.f32 %v6181_v29, %v5623_v8  ;;  %vm8311_vm11 = vcmp.lt.f32.partialorder %v6389_v4, %v6346_v18  ;;  %v6409_v29 = vand.u32 2147483647, %v1461_v60  ;;  %v1331_v5 = vsel %vm8310_vm14, 3, %v945_v52 }
 0x1fd   :  { %8775 = vst [vmem:[#allocation475_spill] sm:$0xff] %v6331_v41  ;;  %v1463_v41 = vsub.f32 %v6215_v59, %v5623_v8  ;;  %v6420_v38 = vsel %vm8311_vm11, %v6389_v4, %v6346_v18  ;;  %v6432_v59 = vsel %vm8310_vm14, %v6395_v49, %v6353_v2  ;;  %v6449_v60 = vsel %vm8313_vm13, %v6403_v53, %v6378_v7 }
 0x1fe   :  { %8776 = vst [vmem:[#allocation476_spill] sm:$0xff] %v6346_v18  ;;  %v6407_v22 = vand.u32 2147483647, %v1460_v26  ;;  %v1330_v26 = vsel %vm8311_vm11, 3, %v944_v9  ;;  %v1332_v9 = vsel %vm8312_vm7, 3, %v946_v47  ;;  %vm1589_vm11 = vcmp.lt.f32.partialorder %v6409_v29, %v6432_v59 }
 0x1ff   :  { %v6457_v42 = vand.u32 2147483647, %v1462_v57  ;;  %v6459_v18 = vand.u32 2147483647, %v1463_v41  ;;  %v562_v52 = vsel %vm370_vm0, %v5471_v37, %v5439_v13  ;;  %v1653_v47 = vsel %vm1589_vm11, 4, %v1331_v5  ;;  %v2116_v5 = vld [vmem:[#allocation2] sm:$0xff] }
 0x200   :  { %vm1588_vm14 = vcmp.lt.f32.partialorder %v6407_v22, %v6420_v38  ;;  %v948_v61 = vsel %vm756_vm4, %v5483_v33, %v562_v52  ;;  %vm8777_vm0 = vcmp.lt.f32.partialorder %v2655_v12, %v2637_v50  ;;  %1721 = vst [vmem:[#allocation7 + $0x8] sm:$0xff] %v1657_v39  ;;  %v8782_v50 = vld [vmem:[#allocation26_spill] sm:$0xff]  ;;  %v8783_v12 = vld [vmem:[#allocation28_spill] sm:$0xff] }
 0x201   :  { %vm1590_vm7 = vcmp.lt.f32.partialorder %v6457_v42, %v6439_v36  ;;  %v1652_v41 = vsel %vm1588_vm14, 4, %v1330_v26  ;;  %vm1591_vm13 = vcmp.lt.f32.partialorder %v6459_v18, %v6449_v60  ;;  %v1334_v57 = vsel %vm1142_vm8, %v5565_v34, %v948_v61  ;;  %1722 = vst [vmem:[#allocation7 + $0x10] sm:$0xff] %v1658_v45  ;;  %v8806_v45 = vld [vmem:[#allocation32_spill] sm:$0xff] }
 0x202   :  { %v1654_v15 = vsel %vm1590_vm7, 4, %v1332_v9  ;;  %v1829_v20 = vpack.c.b16 %v1653_v47, %v1652_v41  ;;  %v1655_v26 = vsel %vm1591_vm13, 4, %v1333_v11  ;;  %v1656_v27 = vsel %vm1528_vm12, %v5623_v8, %v1334_v57  ;;  %v8789_v11 = vld [vmem:[#allocation34_spill] sm:$0xff]  ;;  %v8791_v41 = vld [vmem:[#allocation23_spill] sm:$0xff]  ;;  %v8792_v47 = vld [vmem:[#allocation20_spill] sm:$0xff] }
 0x203   :  { %v1830_v54 = vpack.c.b16 %v1655_v26, %v1654_v15  ;;  %1720 = vst [vmem:[#allocation7] sm:$0xff] %v1656_v27  ;;  %v1848_v9 = vsub.f32 %v1656_v27, %v2116_v5  ;;  %v566_v28 = vsel %vm8777_vm0, %v5471_v37, %v5439_v13  ;;  %vm8784_vm4 = vcmp.lt.f32.partialorder %v8782_v50, %v8783_v12  ;;  %v8794_v15 = vld [vmem:[#allocation24_spill] sm:$0xff]  ;;  %v8800_v5 = vld [vmem:[#allocation43_spill] sm:$0xff] }
 0x204   :  { %v952_v63 = vsel %vm8784_vm4, %v5483_v33, %v566_v28  ;;  %vm8790_vm6 = vcmp.lt.f32.partialorder %v8788_v40, %v8789_v11  ;;  %vm8793_vm8 = vcmp.lt.f32.partialorder %v8791_v41, %v8792_v47  ;;  %v1913_v26 = vmul.f32 %v1849_v24, %v1849_v24  ;;  %v8803_v28 = vld [vmem:[#allocation27_spill] sm:$0xff]  ;;  %v8812_v50 = vld [vmem:[#allocation40_spill] sm:$0xff]  ;;  %v8821_v47 = vld [vmem:[#allocation45_spill] sm:$0xff] }
 0x205   :  { %v1831_v31 = vpack.c.b8 %v1830_v54, %v1829_v20  ;;  %v1912_v32 = vmul.f32 %v1848_v9, %v1848_v9  ;;  %v1338_v52 = vsel %vm8790_vm6, %v5565_v34, %v952_v63  ;;  %v567_v61 = vsel %vm8793_vm8, %v5471_v37, %v5439_v13  ;;  %v8795_v20 = vld [vmem:[#allocation21_spill] sm:$0xff]  ;;  %v8801_v9 = vld [vmem:[#allocation42_spill] sm:$0xff]  ;;  %v8813_v12 = vld [vmem:[#allocation36_spill] sm:$0xff] }
 0x206   :  { %vm8796_vm9 = vcmp.lt.f32.partialorder %v8794_v15, %v8795_v20  ;;  %v1914_v27 = vmul.f32 %v1850_v55, %v1850_v55  ;;  %v1659_v54 = vsel %vm8799_vm10, %v5623_v8, %v1337_v14  ;;  %vm8802_vm12 = vcmp.lt.f32.partialorder %v8800_v5, %v8801_v9  ;;  %v8809_v55 = vld [vmem:[#allocation39_spill] sm:$0xff]  ;;  %v2176_v38 = vld [vmem:[#allocation2 + $0x1b8] sm:$0xff] }
 0x207   :  { %1847 = vst [vmem:[#allocation8 + $0x78] sm:$0xff] %v1831_v31  ;;  %v568_v57 = vsel %vm8796_vm9, %v5471_v37, %v5439_v13  ;;  %v1660_v62 = vsel %vm8802_vm12, %v5623_v8, %v1338_v52  ;;  %v1851_v17 = vsub.f32 %v1659_v54, %v2119_v16  ;;  %v8804_v31 = vld [vmem:[#allocation29_spill] sm:$0xff]  ;;  %vm8808_vm1 = vcmp.lt.f32.partialorder %v8806_v45, %v8807_v19  ;;  %v8819_v52 = vld [vmem:[#allocation46_spill] sm:$0xff]  ;;  %v8825_v5 = vld [vmem:[#allocation31_spill] sm:$0xff] }
 0x208   :  { %2065 = dma.vmem_to_hbm [thread:$0]  %s2058_s1, 2048, %s2060_s29, [#allocation9], %s2314_s23, %s2314_s23, %s2315_s24   ;;  %1723 = vst [vmem:[#allocation7 + $0x18] sm:$0xff] %v1659_v54  ;;  %v1852_v23 = vsub.f32 %v1660_v62, %v2120_v21  ;;  %vm8805_vm0 = vcmp.lt.f32.partialorder %v8803_v28, %v8804_v31  ;;  %v954_v24 = vsel %vm8808_vm1, %v5483_v33, %v568_v57  ;;  %v1976_v46 = vadd.f32 %v1913_v26, %v1912_v32  ;;  %v8818_v32 = vld [vmem:[#allocation44_spill] sm:$0xff]  ;;  %v2121_v57 = vld [vmem:[#allocation2 + $0x28] sm:$0xff]  ;;  %v8824_v54 = vld [vmem:[#allocation33_spill] sm:$0xff] }
 0x209   :  { %v953_v39 = vsel %vm8805_vm0, %v5483_v33, %v567_v61  ;;  %1724 = vst [vmem:[#allocation7 + $0x20] sm:$0xff] %v1660_v62  ;;  %vm8811_vm2 = vcmp.lt.f32.partialorder %v8809_v55, %v8810_v58  ;;  %vm8814_vm3 = vcmp.lt.f32.partialorder %v8812_v50, %v8813_v12  ;;  %vm8817_vm4 = vcmp.lt.f32.partialorder %v8815_v1, %v8816_v6  ;;  %v8822_v61 = vld [vmem:[#allocation47_spill] sm:$0xff]  ;;  %v8827_v62 = vld [vmem:[#allocation41_spill] sm:$0xff]  ;;  %v8830_v21 = vld [vmem:[#allocation54_spill] sm:$0xff] }
 0x20a   :  { %v1339_v0 = vsel %vm8811_vm2, %v5565_v34, %v953_v39  ;;  %v1340_v63 = vsel %vm8814_vm3, %v5565_v34, %v954_v24  ;;  %v569_v14 = vsel %vm8817_vm4, %v5471_v37, %v5439_v13  ;;  %v1915_v40 = vmul.f32 %v1851_v17, %v1851_v17  ;;  %v8828_v16 = vld [vmem:[#allocation37_spill] sm:$0xff]  ;;  %v8833_v28 = vld [vmem:[#allocation55_spill] sm:$0xff]  ;;  %v8836_v45 = vld [vmem:[#allocation56_spill] sm:$0xff] }
 0x20b   :  { %v1916_v11 = vmul.f32 %v1852_v23, %v1852_v23  ;;  %vm8820_vm5 = vcmp.lt.f32.partialorder %v8818_v32, %v8819_v52  ;;  %vm8823_vm6 = vcmp.lt.f32.partialorder %v8821_v47, %v8822_v61  ;;  %v1977_v20 = vadd.f32 %v1976_v46, %v1914_v27  ;;  %v8831_v27 = vld [vmem:[#allocation50_spill] sm:$0xff]  ;;  %v8834_v31 = vld [vmem:[#allocation51_spill] sm:$0xff]  ;;  %v8837_v19 = vld [vmem:[#allocation52_spill] sm:$0xff] }
 0x20c   :  { %v1661_v41 = vsel %vm8820_vm5, %v5623_v8, %v1339_v0  ;;  %v1662_v15 = vsel %vm8823_vm6, %v5623_v8, %v1340_v63  ;;  %vm8826_vm8 = vcmp.lt.f32.partialorder %v8824_v54, %v8825_v5  ;;  %vm8829_vm9 = vcmp.lt.f32.partialorder %v8827_v62, %v8828_v16  ;;  %v8839_v0 = vld [vmem:[#allocation49_spill] sm:$0xff]  ;;  %v8840_v50 = vld [vmem:[#allocation48_spill] sm:$0xff]  ;;  %v8842_v6 = vld [vmem:[#allocation58_spill] sm:$0xff] }
 0x20d   :  { %1725 = vst [vmem:[#allocation7 + $0x28] sm:$0xff] %v1661_v41  ;;  %v1853_v26 = vsub.f32 %v1661_v41, %v2121_v57  ;;  %v1854_v44 = vsub.f32 %v1662_v15, %v2122_v30  ;;  %v955_v9 = vsel %vm8826_vm8, %v5483_v33, %v569_v14  ;;  %vm8832_vm10 = vcmp.lt.f32.partialorder %v8830_v21, %v8831_v27  ;;  %v2123_v63 = vld [vmem:[#allocation2 + $0x38] sm:$0xff]  ;;  %v8843_v14 = vld [vmem:[#allocation59_spill] sm:$0xff]  ;;  %v8849_v61 = vld [vmem:[#allocation61_spill] sm:$0xff] }
 0x20e   :  { %1726 = vst [vmem:[#allocation7 + $0x30] sm:$0xff] %v1662_v15  ;;  %v1341_v17 = vsel %vm8829_vm9, %v5565_v34, %v955_v9  ;;  %v570_v23 = vsel %vm8832_vm10, %v5471_v37, %v5439_v13  ;;  %vm8835_vm12 = vcmp.lt.f32.partialorder %v8833_v28, %v8834_v31  ;;  %vm8838_vm0 = vcmp.lt.f32.partialorder %v8836_v45, %v8837_v19  ;;  %v8845_v52 = vld [vmem:[#allocation63_spill] sm:$0xff]  ;;  %v8846_v41 = vld [vmem:[#allocation60_spill] sm:$0xff]  ;;  %v8851_v57 = vld [vmem:[#allocation70_spill] sm:$0xff] }
 0x20f   :  { %v571_v39 = vsel %vm8835_vm12, %v5471_v37, %v5439_v13  ;;  %v572_v24 = vsel %vm8838_vm0, %v5471_v37, %v5439_v13  ;;  %v1978_v46 = vadd.f32 %v1977_v20, %v1915_v40  ;;  %v1917_v55 = vmul.f32 %v1853_v26, %v1853_v26  ;;  %v8848_v47 = vld [vmem:[#allocation64_spill] sm:$0xff]  ;;  %v8852_v26 = vld [vmem:[#allocation66_spill] sm:$0xff]  ;;  %v8855_v54 = vld [vmem:[#allocation67_spill] sm:$0xff] }
 0x210   :  { %v1918_v58 = vmul.f32 %v1854_v44, %v1854_v44  ;;  %vm8841_vm1 = vcmp.lt.f32.partialorder %v8839_v0, %v8840_v50  ;;  %vm8844_vm2 = vcmp.lt.f32.partialorder %v8842_v6, %v8843_v14  ;;  %vm8847_vm3 = vcmp.lt.f32.partialorder %v8845_v52, %v8846_v41  ;;  %v8854_v44 = vld [vmem:[#allocation71_spill] sm:$0xff]  ;;  %v8857_v9 = vld [vmem:[#allocation72_spill] sm:$0xff]  ;;  %v8861_v21 = vld [vmem:[#allocation74_spill] sm:$0xff] }
 0x211   :  { %v1663_v12 = vsel %vm8841_vm1, %v5623_v8, %v1341_v17  ;;  %v956_v32 = vsel %vm8844_vm2, %v5483_v33, %v570_v23  ;;  %v957_v40 = vsel %vm8847_vm3, %v5483_v33, %v571_v39  ;;  %vm8850_vm4 = vcmp.lt.f32.partialorder %v8848_v47, %v8849_v61  ;;  %v8858_v62 = vld [vmem:[#allocation68_spill] sm:$0xff]  ;;  %v8863_v27 = vld [vmem:[#allocation77_spill] sm:$0xff]  ;;  %v8864_v23 = vld [vmem:[#allocation75_spill] sm:$0xff] }
 0x212   :  { %1727 = vst [vmem:[#allocation7 + $0x38] sm:$0xff] %v1663_v12  ;;  %v1855_v1 = vsub.f32 %v1663_v12, %v2123_v63  ;;  %v958_v15 = vsel %vm8850_vm4, %v5483_v33, %v572_v24  ;;  %v1979_v20 = vadd.f32 %v1978_v46, %v1916_v11  ;;  %vm8853_vm5 = vcmp.lt.f32.partialorder %v8851_v57, %v8852_v26  ;;  %v8860_v17 = vld [vmem:[#allocation76_spill] sm:$0xff]  ;;  %v8867_v39 = vld [vmem:[#allocation78_spill] sm:$0xff]  ;;  %v2124_v46 = vld [vmem:[#allocation2 + $0x40] sm:$0xff] }
 0x213   :  { %v1342_v30 = vsel %vm8853_vm5, %v5565_v34, %v956_v32  ;;  %vm8856_vm6 = vcmp.lt.f32.partialorder %v8854_v44, %v8855_v54  ;;  %vm8859_vm8 = vcmp.lt.f32.partialorder %v8857_v9, %v8858_v62  ;;  %vm8862_vm9 = vcmp.lt.f32.partialorder %v8860_v17, %v8861_v21  ;;  %v8866_v31 = vld [vmem:[#allocation80_spill] sm:$0xff]  ;;  %v2125_v50 = vld [vmem:[#allocation2 + $0x48] sm:$0xff]  ;;  %v8869_v63 = vld [vmem:[#allocation57_spill] sm:$0xff] }
 0x214   :  { %v1343_v5 = vsel %vm8856_vm6, %v5565_v34, %v957_v40  ;;  %v1344_v16 = vsel %vm8859_vm8, %v5565_v34, %v958_v15  ;;  %v1664_v11 = vsel %vm8862_vm9, %v5623_v8, %v1342_v30  ;;  %vm8865_vm10 = vcmp.lt.f32.partialorder %v8863_v27, %v8864_v23  ;;  %v8870_v6 = vld [vmem:[#allocation53_spill] sm:$0xff]  ;;  %v8872_v32 = vld [vmem:[#allocation86_spill] sm:$0xff]  ;;  %v8878_v47 = vld [vmem:[#allocation88_spill] sm:$0xff] }
 0x215   :  { %v1665_v28 = vsel %vm8865_vm10, %v5623_v8, %v1343_v5  ;;  %vm8868_vm12 = vcmp.lt.f32.partialorder %v8866_v31, %v8867_v39  ;;  %v1980_v19 = vadd.f32 %v1979_v20, %v1917_v55  ;;  %v1919_v24 = vmul.f32 %v1855_v1, %v1855_v1  ;;  %1728 = vst [vmem:[#allocation7 + $0x40] sm:$0xff] %v1664_v11  ;;  %v8873_v52 = vld [vmem:[#allocation82_spill] sm:$0xff]  ;;  %v8875_v55 = vld [vmem:[#allocation87_spill] sm:$0xff]  ;;  %v8879_v61 = vld [vmem:[#allocation84_spill] sm:$0xff] }
 0x216   :  { %v1666_v45 = vsel %vm8868_vm12, %v5623_v8, %v1344_v16  ;;  %v1856_v0 = vsub.f32 %v1664_v11, %v2124_v46  ;;  %v1857_v12 = vsub.f32 %v1665_v28, %v2125_v50  ;;  %1729 = vst [vmem:[#allocation7 + $0x48] sm:$0xff] %v1665_v28  ;;  %vm8871_vm0 = vcmp.lt.f32.partialorder %v8869_v63, %v8870_v6  ;;  %v8876_v1 = vld [vmem:[#allocation83_spill] sm:$0xff]  ;;  %v8881_v54 = vld [vmem:[#allocation65_spill] sm:$0xff]  ;;  %v8882_v5 = vld [vmem:[#allocation62_spill] sm:$0xff] }
 0x217   :  { %v573_v14 = vsel %vm8871_vm0, %v5471_v37, %v5439_v13  ;;  %vm8874_vm1 = vcmp.lt.f32.partialorder %v8872_v32, %v8873_v52  ;;  %vm8877_vm2 = vcmp.lt.f32.partialorder %v8875_v55, %v8876_v1  ;;  %vm8880_vm3 = vcmp.lt.f32.partialorder %v8878_v47, %v8879_v61  ;;  %1730 = vst [vmem:[#allocation7 + $0x50] sm:$0xff] %v1666_v45  ;;  %v2126_v30 = vld [vmem:[#allocation2 + $0x50] sm:$0xff]  ;;  %v8884_v62 = vld [vmem:[#allocation90_spill] sm:$0xff]  ;;  %v8885_v16 = vld [vmem:[#allocation92_spill] sm:$0xff] }
 0x218   :  { %v574_v41 = vsel %vm8874_vm1, %v5471_v37, %v5439_v13  ;;  %v575_v40 = vsel %vm8877_vm2, %v5471_v37, %v5439_v13  ;;  %v576_v15 = vsel %vm8880_vm3, %v5471_v37, %v5439_v13  ;;  %v1981_v20 = vadd.f32 %v1980_v19, %v1918_v58  ;;  %v8887_v21 = vld [vmem:[#allocation91_spill] sm:$0xff]  ;;  %v8888_v11 = vld [vmem:[#allocation93_spill] sm:$0xff]  ;;  %v8890_v27 = vld [vmem:[#allocation96_spill] sm:$0xff] }
 0x219   :  { %v1920_v57 = vmul.f32 %v1856_v0, %v1856_v0  ;;  %v1921_v26 = vmul.f32 %v1857_v12, %v1857_v12  ;;  %v1858_v44 = vsub.f32 %v1666_v45, %v2126_v30  ;;  %vm8883_vm4 = vcmp.lt.f32.partialorder %v8881_v54, %v8882_v5  ;;  %v8891_v23 = vld [vmem:[#allocation94_spill] sm:$0xff]  ;;  %v8893_v39 = vld [vmem:[#allocation73_spill] sm:$0xff]  ;;  %v8899_v12 = vld [vmem:[#allocation103_spill] sm:$0xff] }
 0x21a   :  { %v959_v9 = vsel %vm8883_vm4, %v5483_v33, %v573_v14  ;;  %vm8886_vm5 = vcmp.lt.f32.partialorder %v8884_v62, %v8885_v16  ;;  %vm8889_vm6 = vcmp.lt.f32.partialorder %v8887_v21, %v8888_v11  ;;  %vm8892_vm8 = vcmp.lt.f32.partialorder %v8890_v27, %v8891_v23  ;;  %v8894_v45 = vld [vmem:[#allocation69_spill] sm:$0xff]  ;;  %v8896_v46 = vld [vmem:[#allocation102_spill] sm:$0xff]  ;;  %v8900_v63 = vld [vmem:[#allocation99_spill] sm:$0xff] }
 0x21b   :  { %v960_v17 = vsel %vm8886_vm5, %v5483_v33, %v574_v41  ;;  %v961_v58 = vsel %vm8889_vm6, %v5483_v33, %v575_v40  ;;  %v962_v28 = vsel %vm8892_vm8, %v5483_v33, %v576_v15  ;;  %v1982_v31 = vadd.f32 %v1981_v20, %v1919_v24  ;;  %v8897_v0 = vld [vmem:[#allocation98_spill] sm:$0xff]  ;;  %v8902_v14 = vld [vmem:[#allocation81_spill] sm:$0xff]  ;;  %v8903_v32 = vld [vmem:[#allocation79_spill] sm:$0xff] }
 0x21c   :  { %vm8895_vm9 = vcmp.lt.f32.partialorder %v8893_v39, %v8894_v45  ;;  %vm8898_vm10 = vcmp.lt.f32.partialorder %v8896_v46, %v8897_v0  ;;  %vm8901_vm12 = vcmp.lt.f32.partialorder %v8899_v12, %v8900_v63  ;;  %vm8904_vm0 = vcmp.lt.f32.partialorder %v8902_v14, %v8903_v32  ;;  %v8905_v52 = vld [vmem:[#allocation106_spill] sm:$0xff]  ;;  %v8906_v41 = vld [vmem:[#allocation108_spill] sm:$0xff]  ;;  %v8908_v1 = vld [vmem:[#allocation107_spill] sm:$0xff] }
 0x21d   :  { %v1345_v19 = vsel %vm8895_vm9, %v5565_v34, %v959_v9  ;;  %v1346_v50 = vsel %vm8898_vm10, %v5565_v34, %v960_v17  ;;  %v1347_v6 = vsel %vm8901_vm12, %v5565_v34, %v961_v58  ;;  %vm8907_vm1 = vcmp.lt.f32.partialorder %v8905_v52, %v8906_v41  ;;  %v8909_v40 = vld [vmem:[#allocation109_spill] sm:$0xff]  ;;  %v8911_v61 = vld [vmem:[#allocation104_spill] sm:$0xff]  ;;  %v8915_v21 = vld [vmem:[#allocation110_spill] sm:$0xff] }
 0x21e   :  { %v1667_v24 = vsel %vm8904_vm0, %v5623_v8, %v1345_v19  ;;  %v1668_v55 = vsel %vm8907_vm1, %v5623_v8, %v1346_v50  ;;  %vm8910_vm2 = vcmp.lt.f32.partialorder %v8908_v1, %v8909_v40  ;;  %v8912_v15 = vld [vmem:[#allocation100_spill] sm:$0xff]  ;;  %v1983_v30 = vadd.f32 %v1982_v31, %v1920_v57  ;;  %v2128_v62 = vld [vmem:[#allocation2 + $0x60] sm:$0xff]  ;;  %v8920_v57 = vld [vmem:[#allocation118_spill] sm:$0xff] }
 0x21f   :  { %v1669_v47 = vsel %vm8910_vm2, %v5623_v8, %v1347_v6  ;;  %vm8913_vm3 = vcmp.lt.f32.partialorder %v8911_v61, %v8912_v15  ;;  %v1922_v54 = vmul.f32 %v1858_v44, %v1858_v44  ;;  %1731 = vst [vmem:[#allocation7 + $0x58] sm:$0xff] %v1667_v24  ;;  %v2127_v5 = vld [vmem:[#allocation2 + $0x58] sm:$0xff]  ;;  %v1860_v16 = vsub.f32 %v1668_v55, %v2128_v62  ;;  %v8917_v58 = vld [vmem:[#allocation89_spill] sm:$0xff]  ;;  %v8921_v44 = vld [vmem:[#allocation114_spill] sm:$0xff] }
 0x220   :  { %v1348_v20 = vsel %vm8913_vm3, %v5565_v34, %v962_v28  ;;  %v1859_v9 = vsub.f32 %v1667_v24, %v2127_v5  ;;  %1732 = vst [vmem:[#allocation7 + $0x60] sm:$0xff] %v1668_v55  ;;  %v8914_v17 = vld [vmem:[#allocation112_spill] sm:$0xff]  ;;  %v8918_v27 = vld [vmem:[#allocation85_spill] sm:$0xff]  ;;  %vm8922_vm6 = vcmp.lt.f32.partialorder %v8920_v57, %v8921_v44  ;;  %v8923_v31 = vld [vmem:[#allocation119_spill] sm:$0xff]  ;;  %v1984_v19 = vadd.f32 %v1983_v30, %v1921_v26 }
 0x221   :  { %vm8916_vm4 = vcmp.lt.f32.partialorder %v8914_v17, %v8915_v21  ;;  %vm8919_vm5 = vcmp.lt.f32.partialorder %v8917_v58, %v8918_v27  ;;  %v578_v28 = vsel %vm8922_vm6, %v5471_v37, %v5439_v13  ;;  %v8924_v39 = vld [vmem:[#allocation115_spill] sm:$0xff]  ;;  %v1924_v0 = vmul.f32 %v1860_v16, %v1860_v16  ;;  %1733 = vst [vmem:[#allocation7 + $0x68] sm:$0xff] %v1669_v47  ;;  %v2129_v50 = vld [vmem:[#allocation2 + $0x68] sm:$0xff]  ;;  %v8926_v14 = vld [vmem:[#allocation97_spill] sm:$0xff] }
 0x222   :  { %v1670_v11 = vsel %vm8916_vm4, %v5623_v8, %v1348_v20  ;;  %v577_v23 = vsel %vm8919_vm5, %v5471_v37, %v5439_v13  ;;  %vm8925_vm8 = vcmp.lt.f32.partialorder %v8923_v31, %v8924_v39  ;;  %v1923_v46 = vmul.f32 %v1859_v9, %v1859_v9  ;;  %v2130_v63 = vld [vmem:[#allocation2 + $0x70] sm:$0xff]  ;;  %v8929_v52 = vld [vmem:[#allocation122_spill] sm:$0xff]  ;;  %v8930_v41 = vld [vmem:[#allocation124_spill] sm:$0xff] }
 0x223   :  { %v579_v45 = vsel %vm8925_vm8, %v5471_v37, %v5439_v13  ;;  %v1861_v12 = vsub.f32 %v1669_v47, %v2129_v50  ;;  %1734 = vst [vmem:[#allocation7 + $0x70] sm:$0xff] %v1670_v11  ;;  %v1862_v6 = vsub.f32 %v1670_v11, %v2130_v63  ;;  %v8927_v32 = vld [vmem:[#allocation95_spill] sm:$0xff]  ;;  %vm8931_vm10 = vcmp.lt.f32.partialorder %v8929_v52, %v8930_v41  ;;  %v8933_v1 = vld [vmem:[#allocation125_spill] sm:$0xff]  ;;  %v8938_v30 = vld [vmem:[#allocation134_spill] sm:$0xff] }
 0x224   :  { %vm8928_vm9 = vcmp.lt.f32.partialorder %v8926_v14, %v8927_v32  ;;  %v964_v55 = vsel %vm8931_vm10, %v5483_v33, %v578_v28  ;;  %v8932_v26 = vld [vmem:[#allocation123_spill] sm:$0xff]  ;;  %v1985_v61 = vadd.f32 %v1984_v19, %v1922_v54  ;;  %v8935_v47 = vld [vmem:[#allocation105_spill] sm:$0xff]  ;;  %v8939_v5 = vld [vmem:[#allocation130_spill] sm:$0xff] }
 0x225   :  { %v963_v24 = vsel %vm8928_vm9, %v5483_v33, %v577_v23  ;;  %vm8934_vm12 = vcmp.lt.f32.partialorder %v8932_v26, %v8933_v1  ;;  %v8936_v15 = vld [vmem:[#allocation101_spill] sm:$0xff]  ;;  %vm8940_vm1 = vcmp.lt.f32.partialorder %v8938_v30, %v8939_v5  ;;  %v8941_v62 = vld [vmem:[#allocation135_spill] sm:$0xff]  ;;  %v8947_v58 = vld [vmem:[#allocation138_spill] sm:$0xff]  ;;  %v1925_v39 = vmul.f32 %v1861_v12, %v1861_v12 }
 0x226   :  { %v965_v40 = vsel %vm8934_vm12, %v5483_v33, %v579_v45  ;;  %vm8937_vm0 = vcmp.lt.f32.partialorder %v8935_v47, %v8936_v15  ;;  %v1350_v9 = vsel %vm8940_vm1, %v5565_v34, %v964_v55  ;;  %v8942_v16 = vld [vmem:[#allocation131_spill] sm:$0xff]  ;;  %v8944_v21 = vld [vmem:[#allocation113_spill] sm:$0xff]  ;;  %v8948_v27 = vld [vmem:[#allocation140_spill] sm:$0xff]  ;;  %v1986_v31 = vadd.f32 %v1985_v61, %v1923_v46 }
 0x227   :  { %v1349_v20 = vsel %vm8937_vm0, %v5565_v34, %v963_v24  ;;  %vm8943_vm2 = vcmp.lt.f32.partialorder %v8941_v62, %v8942_v16  ;;  %v8945_v11 = vld [vmem:[#allocation111_spill] sm:$0xff]  ;;  %vm8949_vm4 = vcmp.lt.f32.partialorder %v8947_v58, %v8948_v27  ;;  %v8951_v44 = vld [vmem:[#allocation141_spill] sm:$0xff]  ;;  %v1926_v45 = vmul.f32 %v1862_v6, %v1862_v6  ;;  %v2131_v19 = vld [vmem:[#allocation2 + $0x78] sm:$0xff] }
 0x228   :  { %v1351_v17 = vsel %vm8943_vm2, %v5565_v34, %v965_v40  ;;  %vm8946_vm3 = vcmp.lt.f32.partialorder %v8944_v21, %v8945_v11  ;;  %v1672_v23 = vsel %vm8949_vm4, %v5623_v8, %v1350_v9  ;;  %v8950_v57 = vld [vmem:[#allocation139_spill] sm:$0xff]  ;;  %v8953_v63 = vld [vmem:[#allocation120_spill] sm:$0xff]  ;;  %v6798_v24 = vld [vmem:[#allocation5] ss:$0 sm:$0xff]  ;;  %v1987_v40 = vadd.f32 %v1986_v31, %v1924_v0 }
 0x229   :  { %v1671_v54 = vsel %vm8946_vm3, %v5623_v8, %v1349_v20  ;;  %vm8952_vm5 = vcmp.lt.f32.partialorder %v8950_v57, %v8951_v44  ;;  %1736 = vst [vmem:[#allocation7 + $0x80] sm:$0xff] %v1672_v23  ;;  %v8954_v14 = vld [vmem:[#allocation116_spill] sm:$0xff]  ;;  %v8956_v52 = vld [vmem:[#allocation121_spill] sm:$0xff]  ;;  %v8959_v12 = vld [vmem:[#allocation150_spill] sm:$0xff] }
 0x22a   :  { %v1673_v28 = vsel %vm8952_vm5, %v5623_v8, %v1351_v17  ;;  %1735 = vst [vmem:[#allocation7 + $0x78] sm:$0xff] %v1671_v54  ;;  %v1863_v50 = vsub.f32 %v1671_v54, %v2131_v19  ;;  %vm8955_vm6 = vcmp.lt.f32.partialorder %v8953_v63, %v8954_v14  ;;  %v8957_v41 = vld [vmem:[#allocation117_spill] sm:$0xff]  ;;  %v8960_v6 = vld [vmem:[#allocation146_spill] sm:$0xff]  ;;  %v8962_v26 = vld [vmem:[#allocation151_spill] sm:$0xff] }
 0x22b   :  { %v580_v32 = vsel %vm8955_vm6, %v5471_v37, %v5439_v13  ;;  %vm8958_vm8 = vcmp.lt.f32.partialorder %v8956_v52, %v8957_v41  ;;  %vm8961_vm9 = vcmp.lt.f32.partialorder %v8959_v12, %v8960_v6  ;;  %v8963_v1 = vld [vmem:[#allocation147_spill] sm:$0xff]  ;;  %v2133_v47 = vld [vmem:[#allocation2 + $0x80] sm:$0xff]  ;;  %1737 = vst [vmem:[#allocation7 + $0x88] sm:$0xff] %v1673_v28  ;;  %v2134_v20 = vld [vmem:[#allocation2 + $0x88] sm:$0xff] }
 0x22c   :  { %v581_v46 = vsel %vm8958_vm8, %v5471_v37, %v6798_v24  ;;  %v582_v55 = vsel %vm8961_vm9, %v5471_v37, %v6798_v24  ;;  %vm8964_vm10 = vcmp.lt.f32.partialorder %v8962_v26, %v8963_v1  ;;  %v1927_v61 = vmul.f32 %v1863_v50, %v1863_v50  ;;  %v8965_v5 = vld [vmem:[#allocation128_spill] sm:$0xff]  ;;  %v8966_v9 = vld [vmem:[#allocation126_spill] sm:$0xff]  ;;  %v8968_v16 = vld [vmem:[#allocation129_spill] sm:$0xff] }
 0x22d   :  { %v583_v13 = vsel %vm8964_vm10, %v5471_v37, %v6798_v24  ;;  %v1864_v15 = vsub.f32 %v1672_v23, %v2133_v47  ;;  %v1865_v30 = vsub.f32 %v1673_v28, %v2134_v20  ;;  %vm8967_vm12 = vcmp.lt.f32.partialorder %v8965_v5, %v8966_v9  ;;  %v8969_v17 = vld [vmem:[#allocation127_spill] sm:$0xff]  ;;  %v8971_v11 = vld [vmem:[#allocation154_spill] sm:$0xff]  ;;  %v8972_v37 = vld [vmem:[#allocation156_spill] sm:$0xff] }
 0x22e   :  { %v966_v62 = vsel %vm8967_vm12, %v5483_v33, %v580_v32  ;;  %vm8970_vm0 = vcmp.lt.f32.partialorder %v8968_v16, %v8969_v17  ;;  %vm8973_vm1 = vcmp.lt.f32.partialorder %v8971_v11, %v8972_v37  ;;  %v8974_v54 = vld [vmem:[#allocation155_spill] sm:$0xff]  ;;  %v8975_v58 = vld [vmem:[#allocation157_spill] sm:$0xff]  ;;  %v1988_v23 = vadd.f32 %v1987_v40, %v1925_v39  ;;  %v8977_v57 = vld [vmem:[#allocation136_spill] sm:$0xff] }
 0x22f   :  { %v967_v21 = vsel %vm8970_vm0, %v5483_v33, %v581_v46  ;;  %v968_v0 = vsel %vm8973_vm1, %v5483_v33, %v582_v55  ;;  %vm8976_vm2 = vcmp.lt.f32.partialorder %v8974_v54, %v8975_v58  ;;  %v8978_v44 = vld [vmem:[#allocation132_spill] sm:$0xff]  ;;  %v8980_v31 = vld [vmem:[#allocation137_spill] sm:$0xff]  ;;  %v8983_v63 = vld [vmem:[#allocation166_spill] sm:$0xff]  ;;  %v1928_v20 = vmul.f32 %v1864_v15, %v1864_v15 }
 0x230   :  { %v969_v27 = vsel %vm8976_vm2, %v5483_v33, %v583_v13  ;;  %vm8979_vm3 = vcmp.lt.f32.partialorder %v8977_v57, %v8978_v44  ;;  %v8981_v19 = vld [vmem:[#allocation133_spill] sm:$0xff]  ;;  %v8984_v14 = vld [vmem:[#allocation162_spill] sm:$0xff]  ;;  %v8986_v52 = vld [vmem:[#allocation144_spill] sm:$0xff]  ;;  %v1989_v47 = vadd.f32 %v1988_v23, %v1926_v45  ;;  %v1929_v5 = vmul.f32 %v1865_v30, %v1865_v30 }
 0x231   :  { %v1352_v28 = vsel %vm8979_vm3, %v5565_v34, %v966_v62  ;;  %vm8982_vm4 = vcmp.lt.f32.partialorder %v8980_v31, %v8981_v19  ;;  %vm8985_vm5 = vcmp.lt.f32.partialorder %v8983_v63, %v8984_v14  ;;  %v8987_v41 = vld [vmem:[#allocation142_spill] sm:$0xff]  ;;  %v8989_v39 = vld [vmem:[#allocation145_spill] sm:$0xff]  ;;  %v8990_v46 = vld [vmem:[#allocation143_spill] sm:$0xff] }
 0x232   :  { %v1353_v50 = vsel %vm8982_vm4, %v5565_v34, %v967_v21  ;;  %v1354_v32 = vsel %vm8985_vm5, %v5565_v34, %v968_v0  ;;  %vm8988_vm6 = vcmp.lt.f32.partialorder %v8986_v52, %v8987_v41  ;;  %vm8991_vm8 = vcmp.lt.f32.partialorder %v8989_v39, %v8990_v46  ;;  %v8992_v6 = vld [vmem:[#allocation171_spill] sm:$0xff]  ;;  %v8993_v55 = vld [vmem:[#allocation170_spill] sm:$0xff]  ;;  %v8998_v16 = vld [vmem:[#allocation172_spill] sm:$0xff] }
 0x233   :  { %v1674_v33 = vsel %vm8988_vm6, %v5623_v8, %v1352_v28  ;;  %v1675_v12 = vsel %vm8991_vm8, %v5623_v8, %v1353_v50  ;;  %vm8994_vm9 = vcmp.lt.f32.partialorder %v8992_v6, %v8993_v55  ;;  %v8995_v1 = vld [vmem:[#allocation167_spill] sm:$0xff]  ;;  %v8999_v17 = vld [vmem:[#allocation174_spill] sm:$0xff]  ;;  %v6863_v11 = vld [vmem:[#allocation5 + $0x1] ss:$0 sm:$0xff]  ;;  %v1990_v57 = vadd.f32 %v1989_v47, %v1927_v61 }
 0x234   :  { %v1676_v26 = vsel %vm8994_vm9, %v5623_v8, %v1354_v32  ;;  %v8996_v13 = vld [vmem:[#allocation163_spill] sm:$0xff]  ;;  %1738 = vst [vmem:[#allocation7 + $0x90] sm:$0xff] %v1674_v33  ;;  %vm9000_vm12 = vcmp.lt.f32.partialorder %v8998_v16, %v8999_v17  ;;  %v9001_v37 = vld [vmem:[#allocation152_spill] sm:$0xff]  ;;  %v9004_v45 = vld [vmem:[#allocation153_spill] sm:$0xff] }
 0x235   :  { %vm8997_vm10 = vcmp.lt.f32.partialorder %v8995_v1, %v8996_v13  ;;  %v2135_v9 = vld [vmem:[#allocation2 + $0x90] sm:$0xff]  ;;  %1739 = vst [vmem:[#allocation7 + $0x98] sm:$0xff] %v1675_v12  ;;  %v9002_v0 = vld [vmem:[#allocation148_spill] sm:$0xff]  ;;  %v9005_v15 = vld [vmem:[#allocation149_spill] sm:$0xff] }
 0x236   :  { %v1355_v40 = vsel %vm8997_vm10, %v5565_v34, %v969_v27  ;;  %v1866_v62 = vsub.f32 %v1674_v33, %v2135_v9  ;;  %vm9003_vm0 = vcmp.lt.f32.partialorder %v9001_v37, %v9002_v0  ;;  %vm9006_vm1 = vcmp.lt.f32.partialorder %v9004_v45, %v9005_v15  ;;  %v9007_v58 = vld [vmem:[#allocation182_spill] sm:$0xff]  ;;  %v2137_v28 = vld [vmem:[#allocation2 + $0x98] sm:$0xff]  ;;  %1740 = vst [vmem:[#allocation7 + $0xa0] sm:$0xff] %v1676_v26  ;;  %v2138_v19 = vld [vmem:[#allocation2 + $0xa0] sm:$0xff] }
 0x237   :  { %v1677_v21 = vsel %vm9000_vm12, %v5623_v8, %v1355_v40  ;;  %v584_v54 = vsel %vm9003_vm0, %v6863_v11, %v6798_v24  ;;  %v585_v30 = vsel %vm9006_vm1, %v6863_v11, %v6798_v24  ;;  %v9008_v27 = vld [vmem:[#allocation178_spill] sm:$0xff]  ;;  %v1867_v31 = vsub.f32 %v1675_v12, %v2137_v28  ;;  %v6880_v32 = vld [vmem:[#allocation5 + $0x2] ss:$0 sm:$0xff]  ;;  %v9010_v52 = vld [vmem:[#allocation160_spill] sm:$0xff] }
 0x238   :  { %vm9009_vm2 = vcmp.lt.f32.partialorder %v9007_v58, %v9008_v27  ;;  %v1930_v44 = vmul.f32 %v1866_v62, %v1866_v62  ;;  %v1868_v50 = vsub.f32 %v1676_v26, %v2138_v19  ;;  %1741 = vst [vmem:[#allocation7 + $0xa8] sm:$0xff] %v1677_v21  ;;  %v2139_v63 = vld [vmem:[#allocation2 + $0xa8] sm:$0xff]  ;;  %v9013_v39 = vld [vmem:[#allocation161_spill] sm:$0xff]  ;;  %v9014_v46 = vld [vmem:[#allocation159_spill] sm:$0xff]  ;;  %v1991_v26 = vadd.f32 %v1990_v57, %v1928_v20 }
 0x239   :  { %v586_v23 = vsel %vm9009_vm2, %v6863_v11, %v6798_v24  ;;  %v1869_v14 = vsub.f32 %v1677_v21, %v2139_v63  ;;  %v9011_v41 = vld [vmem:[#allocation158_spill] sm:$0xff]  ;;  %vm9015_vm4 = vcmp.lt.f32.partialorder %v9013_v39, %v9014_v46  ;;  %v9017_v6 = vld [vmem:[#allocation187_spill] sm:$0xff]  ;;  %v9019_v1 = vld [vmem:[#allocation168_spill] sm:$0xff]  ;;  %v1931_v57 = vmul.f32 %v1867_v31, %v1867_v31 }
 0x23a   :  { %vm9012_vm3 = vcmp.lt.f32.partialorder %v9010_v52, %v9011_v41  ;;  %v971_v61 = vsel %vm9015_vm4, %v6880_v32, %v585_v30  ;;  %v9016_v12 = vld [vmem:[#allocation186_spill] sm:$0xff]  ;;  %v9020_v13 = vld [vmem:[#allocation164_spill] sm:$0xff]  ;;  %v9022_v47 = vld [vmem:[#allocation169_spill] sm:$0xff]  ;;  %v1932_v28 = vmul.f32 %v1868_v50, %v1868_v50 }
 0x23b   :  { %v970_v33 = vsel %vm9012_vm3, %v6880_v32, %v584_v54  ;;  %vm9018_vm5 = vcmp.lt.f32.partialorder %v9016_v12, %v9017_v6  ;;  %vm9021_vm6 = vcmp.lt.f32.partialorder %v9019_v1, %v9020_v13  ;;  %v9023_v9 = vld [vmem:[#allocation165_spill] sm:$0xff]  ;;  %v9025_v16 = vld [vmem:[#allocation198_spill] sm:$0xff]  ;;  %v9029_v0 = vld [vmem:[#allocation175_spill] sm:$0xff]  ;;  %v1933_v19 = vmul.f32 %v1869_v14, %v1869_v14 }
 0x23c   :  { %v972_v55 = vsel %vm9018_vm5, %v6880_v32, %v586_v23  ;;  %v1356_v40 = vsel %vm9021_vm6, %v5565_v34, %v970_v33  ;;  %vm9024_vm8 = vcmp.lt.f32.partialorder %v9022_v47, %v9023_v9  ;;  %v9026_v17 = vld [vmem:[#allocation194_spill] sm:$0xff]  ;;  %v9028_v37 = vld [vmem:[#allocation173_spill] sm:$0xff]  ;;  %v9032_v45 = vld [vmem:[#allocation176_spill] sm:$0xff]  ;;  %v1992_v23 = vadd.f32 %v1991_v26, %v1929_v5 }
 0x23d   :  { %v1357_v62 = vsel %vm9024_vm8, %v5565_v34, %v971_v61  ;;  %vm9027_vm9 = vcmp.lt.f32.partialorder %v9025_v16, %v9026_v17  ;;  %vm9030_vm10 = vcmp.lt.f32.partialorder %v9028_v37, %v9029_v0  ;;  %v9031_v54 = vld [vmem:[#allocation177_spill] sm:$0xff]  ;;  %v9034_v30 = vld [vmem:[#allocation204_spill] sm:$0xff]  ;;  %v9035_v58 = vld [vmem:[#allocation202_spill] sm:$0xff] }
 0x23e   :  { %v1358_v21 = vsel %vm9027_vm9, %v5565_v34, %v972_v55  ;;  %v1678_v20 = vsel %vm9030_vm10, %v5623_v8, %v1356_v40  ;;  %vm9033_vm12 = vcmp.lt.f32.partialorder %v9031_v54, %v9032_v45  ;;  %vm9036_vm0 = vcmp.lt.f32.partialorder %v9034_v30, %v9035_v58  ;;  %v9037_v34 = vld [vmem:[#allocation183_spill] sm:$0xff]  ;;  %v9040_v41 = vld [vmem:[#allocation184_spill] sm:$0xff]  ;;  %v9044_v5 = vld [vmem:[#allocation181_spill] sm:$0xff] }
 0x23f   :  { %v1679_v15 = vsel %vm9033_vm12, %v5623_v8, %v1357_v62  ;;  %v1680_v27 = vsel %vm9036_vm0, %v5623_v8, %v1358_v21  ;;  %1742 = vst [vmem:[#allocation7 + $0xb0] sm:$0xff] %v1678_v20  ;;  %v9038_v63 = vld [vmem:[#allocation179_spill] sm:$0xff]  ;;  %v9041_v33 = vld [vmem:[#allocation180_spill] sm:$0xff]  ;;  %v9043_v8 = vld [vmem:[#allocation185_spill] sm:$0xff]  ;;  %v1993_v61 = vadd.f32 %v1992_v23, %v1930_v44 }
 0x240   :  { %1743 = vst [vmem:[#allocation7 + $0xb8] sm:$0xff] %v1679_v15  ;;  %vm9039_vm1 = vcmp.lt.f32.partialorder %v9037_v34, %v9038_v63  ;;  %vm9042_vm2 = vcmp.lt.f32.partialorder %v9040_v41, %v9041_v33  ;;  %vm9045_vm3 = vcmp.lt.f32.partialorder %v9043_v8, %v9044_v5  ;;  %v9046_v50 = vld [vmem:[#allocation214_spill] sm:$0xff]  ;;  %v2141_v12 = vld [vmem:[#allocation2 + $0xb0] sm:$0xff]  ;;  %v2142_v55 = vld [vmem:[#allocation2 + $0xb8] sm:$0xff] }
 0x241   :  { %v587_v52 = vsel %vm9039_vm1, %v6863_v11, %v6798_v24  ;;  %v588_v39 = vsel %vm9042_vm2, %v6863_v11, %v6798_v24  ;;  %v589_v31 = vsel %vm9045_vm3, %v6863_v11, %v6798_v24  ;;  %v9047_v14 = vld [vmem:[#allocation210_spill] sm:$0xff]  ;;  %v1870_v6 = vsub.f32 %v1678_v20, %v2141_v12  ;;  %1744 = vst [vmem:[#allocation7 + $0xc0] sm:$0xff] %v1680_v27  ;;  %v2143_v1 = vld [vmem:[#allocation2 + $0xc0] sm:$0xff]  ;;  %v9049_v40 = vld [vmem:[#allocation191_spill] sm:$0xff] }
 0x242   :  { %vm9048_vm4 = vcmp.lt.f32.partialorder %v9046_v50, %v9047_v14  ;;  %v1871_v26 = vsub.f32 %v1679_v15, %v2142_v55  ;;  %v1872_v13 = vsub.f32 %v1680_v27, %v2143_v1  ;;  %v9050_v47 = vld [vmem:[#allocation188_spill] sm:$0xff]  ;;  %v9053_v16 = vld [vmem:[#allocation189_spill] sm:$0xff]  ;;  %v9056_v44 = vld [vmem:[#allocation190_spill] sm:$0xff]  ;;  %v1994_v45 = vadd.f32 %v1993_v61, %v1931_v57 }
 0x243   :  { %v590_v46 = vsel %vm9048_vm4, %v6863_v11, %v6798_v24  ;;  %vm9051_vm5 = vcmp.lt.f32.partialorder %v9049_v40, %v9050_v47  ;;  %v9052_v62 = vld [vmem:[#allocation192_spill] sm:$0xff]  ;;  %v9055_v21 = vld [vmem:[#allocation193_spill] sm:$0xff]  ;;  %v9058_v0 = vld [vmem:[#allocation218_spill] sm:$0xff]  ;;  %v1934_v1 = vmul.f32 %v1870_v6, %v1870_v6 }
 0x244   :  { %v973_v9 = vsel %vm9051_vm5, %v6880_v32, %v587_v52  ;;  %vm9054_vm6 = vcmp.lt.f32.partialorder %v9052_v62, %v9053_v16  ;;  %vm9057_vm8 = vcmp.lt.f32.partialorder %v9055_v21, %v9056_v44  ;;  %v9059_v20 = vld [vmem:[#allocation220_spill] sm:$0xff]  ;;  %v6954_v15 = vld [vmem:[#allocation5 + $0x3] ss:$0 sm:$0xff]  ;;  %v9061_v30 = vld [vmem:[#allocation199_spill] sm:$0xff]  ;;  %v1995_v55 = vadd.f32 %v1994_v45, %v1932_v28 }
 0x245   :  { %v974_v17 = vsel %vm9054_vm6, %v6880_v32, %v588_v39  ;;  %v975_v37 = vsel %vm9057_vm8, %v6880_v32, %v589_v31  ;;  %vm9060_vm9 = vcmp.lt.f32.partialorder %v9058_v0, %v9059_v20  ;;  %v9062_v58 = vld [vmem:[#allocation195_spill] sm:$0xff]  ;;  %v9064_v23 = vld [vmem:[#allocation200_spill] sm:$0xff]  ;;  %v9067_v52 = vld [vmem:[#allocation201_spill] sm:$0xff]  ;;  %v1935_v40 = vmul.f32 %v1871_v26, %v1871_v26 }
 0x246   :  { %v976_v54 = vsel %vm9060_vm9, %v6880_v32, %v590_v46  ;;  %vm9063_vm10 = vcmp.lt.f32.partialorder %v9061_v30, %v9062_v58  ;;  %v9065_v34 = vld [vmem:[#allocation196_spill] sm:$0xff]  ;;  %v9068_v41 = vld [vmem:[#allocation197_spill] sm:$0xff]  ;;  %v9071_v8 = vld [vmem:[#allocation203_spill] sm:$0xff]  ;;  %v1996_v45 = vadd.f32 %v1995_v55, %v1933_v19  ;;  %v1936_v30 = vmul.f32 %v1872_v13, %v1872_v13 }
 0x247   :  { %v1359_v27 = vsel %vm9063_vm10, %v6954_v15, %v973_v9  ;;  %vm9066_vm12 = vcmp.lt.f32.partialorder %v9064_v23, %v9065_v34  ;;  %vm9069_vm0 = vcmp.lt.f32.partialorder %v9067_v52, %v9068_v41  ;;  %v6968_v39 = vld [vmem:[#allocation5 + $0x4] ss:$0 sm:$0xff]  ;;  %v9073_v31 = vld [vmem:[#allocation208_spill] sm:$0xff]  ;;  %v9074_v50 = vld [vmem:[#allocation206_spill] sm:$0xff] }
 0x248   :  { %v1360_v63 = vsel %vm9066_vm12, %v6954_v15, %v974_v17  ;;  %v1361_v33 = vsel %vm9069_vm0, %v6954_v15, %v975_v37  ;;  %v9070_v57 = vld [vmem:[#allocation205_spill] sm:$0xff]  ;;  %vm9075_vm2 = vcmp.lt.f32.partialorder %v9073_v31, %v9074_v50  ;;  %v9076_v46 = vld [vmem:[#allocation230_spill] sm:$0xff]  ;;  %v9080_v9 = vld [vmem:[#allocation207_spill] sm:$0xff] }
 0x249   :  { %vm9072_vm1 = vcmp.lt.f32.partialorder %v9070_v57, %v9071_v8  ;;  %v1682_v14 = vsel %vm9075_vm2, %v6968_v39, %v1360_v63  ;;  %v9077_v61 = vld [vmem:[#allocation226_spill] sm:$0xff]  ;;  %v9079_v47 = vld [vmem:[#allocation209_spill] sm:$0xff]  ;;  %v9082_v21 = vld [vmem:[#allocation215_spill] sm:$0xff] }
 0x24a   :  { %v1681_v5 = vsel %vm9072_vm1, %v6968_v39, %v1359_v27  ;;  %vm9078_vm3 = vcmp.lt.f32.partialorder %v9076_v46, %v9077_v61  ;;  %vm9081_vm4 = vcmp.lt.f32.partialorder %v9079_v47, %v9080_v9  ;;  %v2146_v16 = vld [vmem:[#allocation2 + $0xc8] sm:$0xff]  ;;  %1746 = vst [vmem:[#allocation7 + $0xd0] sm:$0xff] %v1682_v14  ;;  %v9083_v44 = vld [vmem:[#allocation211_spill] sm:$0xff]  ;;  %v9085_v28 = vld [vmem:[#allocation216_spill] sm:$0xff]  ;;  %v1997_v46 = vadd.f32 %v1996_v45, %v1934_v1 }
 0x24b   :  { %v1362_v12 = vsel %vm9078_vm3, %v6954_v15, %v976_v54  ;;  %1745 = vst [vmem:[#allocation7 + $0xc8] sm:$0xff] %v1681_v5  ;;  %v1683_v62 = vsel %vm9081_vm4, %v6968_v39, %v1361_v33  ;;  %v1873_v17 = vsub.f32 %v1681_v5, %v2146_v16  ;;  %vm9084_vm5 = vcmp.lt.f32.partialorder %v9082_v21, %v9083_v44  ;;  %v9086_v6 = vld [vmem:[#allocation212_spill] sm:$0xff]  ;;  %v9088_v0 = vld [vmem:[#allocation217_spill] sm:$0xff]  ;;  %v2147_v58 = vld [vmem:[#allocation2 + $0xd0] sm:$0xff] }
 0x24c   :  { %v591_v37 = vsel %vm9084_vm5, %v6863_v11, %v6798_v24  ;;  %vm9087_vm6 = vcmp.lt.f32.partialorder %v9085_v28, %v9086_v6  ;;  %v9089_v20 = vld [vmem:[#allocation213_spill] sm:$0xff]  ;;  %v1874_v27 = vsub.f32 %v1682_v14, %v2147_v58  ;;  %1747 = vst [vmem:[#allocation7 + $0xd8] sm:$0xff] %v1683_v62  ;;  %v9091_v23 = vld [vmem:[#allocation234_spill] sm:$0xff]  ;;  %v9092_v34 = vld [vmem:[#allocation236_spill] sm:$0xff] }
 0x24d   :  { %v592_v26 = vsel %vm9087_vm6, %v6863_v11, %v6798_v24  ;;  %vm9090_vm8 = vcmp.lt.f32.partialorder %v9088_v0, %v9089_v20  ;;  %vm9093_vm9 = vcmp.lt.f32.partialorder %v9091_v23, %v9092_v34  ;;  %v2148_v52 = vld [vmem:[#allocation2 + $0xd8] sm:$0xff]  ;;  %v9094_v33 = vld [vmem:[#allocation219_spill] sm:$0xff]  ;;  %v9095_v57 = vld [vmem:[#allocation221_spill] sm:$0xff] }
 0x24e   :  { %v593_v54 = vsel %vm9090_vm8, %v6863_v11, %v6798_v24  ;;  %v1684_v63 = vsel %vm9093_vm9, %v6968_v39, %v1362_v12  ;;  %v1875_v41 = vsub.f32 %v1683_v62, %v2148_v52  ;;  %vm9096_vm10 = vcmp.lt.f32.partialorder %v9094_v33, %v9095_v57  ;;  %v9097_v5 = vld [vmem:[#allocation224_spill] sm:$0xff]  ;;  %v9098_v19 = vld [vmem:[#allocation222_spill] sm:$0xff]  ;;  %v9100_v31 = vld [vmem:[#allocation225_spill] sm:$0xff] }
 0x24f   :  { %1748 = vst [vmem:[#allocation7 + $0xe0] sm:$0xff] %v1684_v63  ;;  %v977_v8 = vsel %vm9096_vm10, %v6880_v32, %v591_v37  ;;  %vm9099_vm12 = vcmp.lt.f32.partialorder %v9097_v5, %v9098_v19  ;;  %v9101_v50 = vld [vmem:[#allocation223_spill] sm:$0xff]  ;;  %v9106_v47 = vld [vmem:[#allocation232_spill] sm:$0xff]  ;;  %v9109_v16 = vld [vmem:[#allocation233_spill] sm:$0xff]  ;;  %v1937_v37 = vmul.f32 %v1873_v17, %v1873_v17  ;;  %v1938_v45 = vmul.f32 %v1874_v27, %v1874_v27 }
 0x250   :  { %v978_v13 = vsel %vm9099_vm12, %v6880_v32, %v592_v26  ;;  %vm9102_vm0 = vcmp.lt.f32.partialorder %v9100_v31, %v9101_v50  ;;  %v9103_v61 = vld [vmem:[#allocation231_spill] sm:$0xff]  ;;  %v9107_v9 = vld [vmem:[#allocation228_spill] sm:$0xff]  ;;  %v9110_v21 = vld [vmem:[#allocation229_spill] sm:$0xff] }
 0x251   :  { %v979_v14 = vsel %vm9102_vm0, %v6880_v32, %v593_v54  ;;  %v9104_v12 = vld [vmem:[#allocation227_spill] sm:$0xff]  ;;  %vm9108_vm2 = vcmp.lt.f32.partialorder %v9106_v47, %v9107_v9  ;;  %vm9111_vm3 = vcmp.lt.f32.partialorder %v9109_v16, %v9110_v21  ;;  %v9113_v6 = vld [vmem:[#allocation237_spill] sm:$0xff]  ;;  %v9115_v26 = vld [vmem:[#allocation240_spill] sm:$0xff]  ;;  %v1998_v54 = vadd.f32 %v1997_v46, %v1935_v40 }
 0x252   :  { %vm9105_vm1 = vcmp.lt.f32.partialorder %v9103_v61, %v9104_v12  ;;  %v1364_v62 = vsel %vm9108_vm2, %v6954_v15, %v978_v13  ;;  %v1365_v44 = vsel %vm9111_vm3, %v6954_v15, %v979_v14  ;;  %v9112_v28 = vld [vmem:[#allocation235_spill] sm:$0xff]  ;;  %v9116_v0 = vld [vmem:[#allocation238_spill] sm:$0xff]  ;;  %v2149_v58 = vld [vmem:[#allocation2 + $0xe0] sm:$0xff]  ;;  %v1939_v61 = vmul.f32 %v1875_v41, %v1875_v41 }
 0x253   :  { %v1363_v55 = vsel %vm9105_vm1, %v6954_v15, %v977_v8  ;;  %vm9114_vm4 = vcmp.lt.f32.partialorder %v9112_v28, %v9113_v6  ;;  %vm9117_vm5 = vcmp.lt.f32.partialorder %v9115_v26, %v9116_v0  ;;  %v1876_v23 = vsub.f32 %v1684_v63, %v2149_v58  ;;  %v9118_v34 = vld [vmem:[#allocation241_spill] sm:$0xff]  ;;  %v9119_v52 = vld [vmem:[#allocation239_spill] sm:$0xff]  ;;  %v9121_v33 = vld [vmem:[#allocation246_spill] sm:$0xff] }
 0x254   :  { %v1685_v1 = vsel %vm9114_vm4, %v6968_v39, %v1363_v55  ;;  %v1686_v20 = vsel %vm9117_vm5, %v6968_v39, %v1364_v62  ;;  %vm9120_vm6 = vcmp.lt.f32.partialorder %v9118_v34, %v9119_v52  ;;  %v9122_v57 = vld [vmem:[#allocation242_spill] sm:$0xff]  ;;  %v9124_v5 = vld [vmem:[#allocation247_spill] sm:$0xff]  ;;  %v9127_v63 = vld [vmem:[#allocation248_spill] sm:$0xff]  ;;  %v1999_v46 = vadd.f32 %v1998_v54, %v1936_v30 }
 0x255   :  { %1749 = vst [vmem:[#allocation7 + $0xe8] sm:$0xff] %v1685_v1  ;;  %v1687_v17 = vsel %vm9120_vm6, %v6968_v39, %v1365_v44  ;;  %vm9123_vm8 = vcmp.lt.f32.partialorder %v9121_v33, %v9122_v57  ;;  %v9125_v40 = vld [vmem:[#allocation243_spill] sm:$0xff]  ;;  %v9128_v19 = vld [vmem:[#allocation244_spill] sm:$0xff]  ;;  %v9130_v31 = vld [vmem:[#allocation249_spill] sm:$0xff] }
 0x256   :  { %1750 = vst [vmem:[#allocation7 + $0xf0] sm:$0xff] %v1686_v20  ;;  %v594_v8 = vsel %vm9123_vm8, %v6863_v11, %v6798_v24  ;;  %vm9126_vm9 = vcmp.lt.f32.partialorder %v9124_v5, %v9125_v40  ;;  %vm9129_vm10 = vcmp.lt.f32.partialorder %v9127_v63, %v9128_v19  ;;  %v9131_v50 = vld [vmem:[#allocation245_spill] sm:$0xff]  ;;  %v2150_v12 = vld [vmem:[#allocation2 + $0xe8] sm:$0xff]  ;;  %v2151_v47 = vld [vmem:[#allocation2 + $0xf0] sm:$0xff]  ;;  %v2000_v54 = vadd.f32 %v1999_v46, %v1937_v37 }
 0x257   :  { %v595_v27 = vsel %vm9126_vm9, %v6863_v11, %v6798_v24  ;;  %v596_v13 = vsel %vm9129_vm10, %v6863_v11, %v6798_v24  ;;  %vm9132_vm12 = vcmp.lt.f32.partialorder %v9130_v31, %v9131_v50  ;;  %v1877_v55 = vsub.f32 %v1685_v1, %v2150_v12  ;;  %1751 = vst [vmem:[#allocation7 + $0xf8] sm:$0xff] %v1687_v17  ;;  %v9133_v62 = vld [vmem:[#allocation250_spill] sm:$0xff]  ;;  %v9134_v16 = vld [vmem:[#allocation252_spill] sm:$0xff]  ;;  %v9136_v44 = vld [vmem:[#allocation251_spill] sm:$0xff] }
 0x258   :  { %v597_v14 = vsel %vm9132_vm12, %v6863_v11, %v6798_v24  ;;  %v1878_v9 = vsub.f32 %v1686_v20, %v2151_v47  ;;  %vm9135_vm0 = vcmp.lt.f32.partialorder %v9133_v62, %v9134_v16  ;;  %v9137_v28 = vld [vmem:[#allocation253_spill] sm:$0xff]  ;;  %v9139_v26 = vld [vmem:[#allocation256_spill] sm:$0xff]  ;;  %v9140_v0 = vld [vmem:[#allocation254_spill] sm:$0xff]  ;;  %v1940_v63 = vmul.f32 %v1876_v23, %v1876_v23 }
 0x259   :  { %v980_v21 = vsel %vm9135_vm0, %v6880_v32, %v594_v8  ;;  %vm9138_vm1 = vcmp.lt.f32.partialorder %v9136_v44, %v9137_v28  ;;  %vm9141_vm2 = vcmp.lt.f32.partialorder %v9139_v26, %v9140_v0  ;;  %v9142_v41 = vld [vmem:[#allocation257_spill] sm:$0xff]  ;;  %v9143_v1 = vld [vmem:[#allocation255_spill] sm:$0xff]  ;;  %v9145_v58 = vld [vmem:[#allocation262_spill] sm:$0xff]  ;;  %v2001_v46 = vadd.f32 %v2000_v54, %v1938_v45 }
 0x25a   :  { %v981_v6 = vsel %vm9138_vm1, %v6880_v32, %v595_v27  ;;  %v982_v30 = vsel %vm9141_vm2, %v6880_v32, %v596_v13  ;;  %vm9144_vm3 = vcmp.lt.f32.partialorder %v9142_v41, %v9143_v1  ;;  %v9146_v34 = vld [vmem:[#allocation258_spill] sm:$0xff]  ;;  %v9148_v33 = vld [vmem:[#allocation263_spill] sm:$0xff]  ;;  %v9151_v5 = vld [vmem:[#allocation264_spill] sm:$0xff]  ;;  %v1941_v12 = vmul.f32 %v1877_v55, %v1877_v55 }
 0x25b   :  { %v983_v20 = vsel %vm9144_vm3, %v6880_v32, %v597_v14  ;;  %vm9147_vm4 = vcmp.lt.f32.partialorder %v9145_v58, %v9146_v34  ;;  %v9149_v57 = vld [vmem:[#allocation259_spill] sm:$0xff]  ;;  %v9152_v40 = vld [vmem:[#allocation260_spill] sm:$0xff]  ;;  %v9154_v19 = vld [vmem:[#allocation266_spill] sm:$0xff]  ;;  %v2002_v54 = vadd.f32 %v2001_v46, %v1939_v61  ;;  %v1942_v58 = vmul.f32 %v1878_v9, %v1878_v9 }
 0x25c   :  { %v1366_v52 = vsel %vm9147_vm4, %v6954_v15, %v980_v21  ;;  %vm9150_vm5 = vcmp.lt.f32.partialorder %v9148_v33, %v9149_v57  ;;  %vm9153_vm6 = vcmp.lt.f32.partialorder %v9151_v5, %v9152_v40  ;;  %v9155_v13 = vld [vmem:[#allocation268_spill] sm:$0xff]  ;;  %v9157_v31 = vld [vmem:[#allocation265_spill] sm:$0xff]  ;;  %v9160_v16 = vld [vmem:[#allocation267_spill] sm:$0xff] }
 0x25d   :  { %v1367_v8 = vsel %vm9150_vm5, %v6954_v15, %v981_v6  ;;  %v1368_v27 = vsel %vm9153_vm6, %v6954_v15, %v982_v30  ;;  %vm9156_vm8 = vcmp.lt.f32.partialorder %v9154_v19, %v9155_v13  ;;  %v9158_v50 = vld [vmem:[#allocation261_spill] sm:$0xff]  ;;  %v2152_v47 = vld [vmem:[#allocation2 + $0xf8] sm:$0xff]  ;;  %v9164_v28 = vld [vmem:[#allocation270_spill] sm:$0xff] }
 0x25e   :  { %v1688_v37 = vsel %vm9156_vm8, %v6968_v39, %v1366_v52  ;;  %vm9159_vm9 = vcmp.lt.f32.partialorder %v9157_v31, %v9158_v50  ;;  %v1879_v62 = vsub.f32 %v1687_v17, %v2152_v47  ;;  %v9161_v21 = vld [vmem:[#allocation269_spill] sm:$0xff]  ;;  %v9163_v44 = vld [vmem:[#allocation272_spill] sm:$0xff]  ;;  %v9166_v26 = vld [vmem:[#allocation278_spill] sm:$0xff]  ;;  %v2003_v47 = vadd.f32 %v2002_v54, %v1940_v63 }
 0x25f   :  { %v1369_v14 = vsel %vm9159_vm9, %v6954_v15, %v983_v20  ;;  %1752 = vst [vmem:[#allocation7 + $0x100] sm:$0xff] %v1688_v37  ;;  %vm9162_vm10 = vcmp.lt.f32.partialorder %v9160_v16, %v9161_v21  ;;  %vm9165_vm12 = vcmp.lt.f32.partialorder %v9163_v44, %v9164_v28  ;;  %v9167_v0 = vld [vmem:[#allocation274_spill] sm:$0xff]  ;;  %v9169_v17 = vld [vmem:[#allocation279_spill] sm:$0xff]  ;;  %v9172_v41 = vld [vmem:[#allocation280_spill] sm:$0xff] }
 0x260   :  { %v1689_v23 = vsel %vm9162_vm10, %v6968_v39, %v1367_v8  ;;  %v1690_v6 = vsel %vm9165_vm12, %v6968_v39, %v1368_v27  ;;  %vm9168_vm0 = vcmp.lt.f32.partialorder %v9166_v26, %v9167_v0  ;;  %v9170_v55 = vld [vmem:[#allocation275_spill] sm:$0xff]  ;;  %v9173_v1 = vld [vmem:[#allocation276_spill] sm:$0xff]  ;;  %v2153_v34 = vld [vmem:[#allocation2 + $0x100] sm:$0xff] }
 0x261   :  { %1753 = vst [vmem:[#allocation7 + $0x108] sm:$0xff] %v1689_v23  ;;  %v598_v45 = vsel %vm9168_vm0, %v6863_v11, %v6798_v24  ;;  %vm9171_vm1 = vcmp.lt.f32.partialorder %v9169_v17, %v9170_v55  ;;  %vm9174_vm2 = vcmp.lt.f32.partialorder %v9172_v41, %v9173_v1  ;;  %v1880_v52 = vsub.f32 %v1688_v37, %v2153_v34  ;;  %v9175_v33 = vld [vmem:[#allocation273_spill] sm:$0xff]  ;;  %v9176_v57 = vld [vmem:[#allocation271_spill] sm:$0xff]  ;;  %v2154_v5 = vld [vmem:[#allocation2 + $0x108] sm:$0xff] }
 0x262   :  { %v599_v30 = vsel %vm9171_vm1, %v6863_v11, %v6798_v24  ;;  %v600_v20 = vsel %vm9174_vm2, %v6863_v11, %v6798_v24  ;;  %1754 = vst [vmem:[#allocation7 + $0x110] sm:$0xff] %v1690_v6  ;;  %vm9177_vm3 = vcmp.lt.f32.partialorder %v9175_v33, %v9176_v57  ;;  %v1881_v40 = vsub.f32 %v1689_v23, %v2154_v5  ;;  %v9178_v27 = vld [vmem:[#allocation282_spill] sm:$0xff]  ;;  %v9179_v19 = vld [vmem:[#allocation284_spill] sm:$0xff]  ;;  %v9181_v31 = vld [vmem:[#allocation283_spill] sm:$0xff] }
 0x263   :  { %v1691_v8 = vsel %vm9177_vm3, %v6968_v39, %v1369_v14  ;;  %vm9180_vm4 = vcmp.lt.f32.partialorder %v9178_v27, %v9179_v19  ;;  %v9182_v61 = vld [vmem:[#allocation285_spill] sm:$0xff]  ;;  %v9184_v37 = vld [vmem:[#allocation288_spill] sm:$0xff]  ;;  %v9185_v50 = vld [vmem:[#allocation286_spill] sm:$0xff]  ;;  %v1943_v17 = vmul.f32 %v1879_v62, %v1879_v62  ;;  %v1944_v54 = vmul.f32 %v1880_v52, %v1880_v52 }
 0x264   :  { %1755 = vst [vmem:[#allocation7 + $0x118] sm:$0xff] %v1691_v8  ;;  %v984_v13 = vsel %vm9180_vm4, %v6880_v32, %v598_v45  ;;  %vm9183_vm5 = vcmp.lt.f32.partialorder %v9181_v31, %v9182_v61  ;;  %vm9186_vm6 = vcmp.lt.f32.partialorder %v9184_v37, %v9185_v50  ;;  %v9187_v14 = vld [vmem:[#allocation294_spill] sm:$0xff]  ;;  %v9190_v23 = vld [vmem:[#allocation295_spill] sm:$0xff]  ;;  %v9193_v26 = vld [vmem:[#allocation296_spill] sm:$0xff] }
 0x265   :  { %v985_v9 = vsel %vm9183_vm5, %v6880_v32, %v599_v30  ;;  %v986_v46 = vsel %vm9186_vm6, %v6880_v32, %v600_v20  ;;  %v9188_v16 = vld [vmem:[#allocation290_spill] sm:$0xff]  ;;  %v9191_v44 = vld [vmem:[#allocation291_spill] sm:$0xff]  ;;  %v9194_v0 = vld [vmem:[#allocation292_spill] sm:$0xff]  ;;  %v2004_v20 = vadd.f32 %v2003_v47, %v1941_v12 }
 0x266   :  { %vm9189_vm8 = vcmp.lt.f32.partialorder %v9187_v14, %v9188_v16  ;;  %vm9192_vm9 = vcmp.lt.f32.partialorder %v9190_v23, %v9191_v44  ;;  %vm9195_vm10 = vcmp.lt.f32.partialorder %v9193_v26, %v9194_v0  ;;  %v2155_v55 = vld [vmem:[#allocation2 + $0x110] sm:$0xff]  ;;  %v9197_v41 = vld [vmem:[#allocation298_spill] sm:$0xff]  ;;  %v9199_v34 = vld [vmem:[#allocation300_spill] sm:$0xff]  ;;  %v1945_v16 = vmul.f32 %v1881_v40, %v1881_v40 }
 0x267   :  { %v1370_v21 = vsel %vm9189_vm8, %v6954_v15, %v984_v13  ;;  %v1371_v28 = vsel %vm9192_vm9, %v6954_v15, %v985_v9  ;;  %v1372_v45 = vsel %vm9195_vm10, %v6954_v15, %v986_v46  ;;  %v1882_v30 = vsub.f32 %v1690_v6, %v2155_v55  ;;  %v9196_v63 = vld [vmem:[#allocation299_spill] sm:$0xff]  ;;  %v9200_v33 = vld [vmem:[#allocation302_spill] sm:$0xff]  ;;  %v9202_v5 = vld [vmem:[#allocation301_spill] sm:$0xff] }
 0x268   :  { %vm9198_vm12 = vcmp.lt.f32.partialorder %v9196_v63, %v9197_v41  ;;  %vm9201_vm0 = vcmp.lt.f32.partialorder %v9199_v34, %v9200_v33  ;;  %v9203_v27 = vld [vmem:[#allocation303_spill] sm:$0xff]  ;;  %v9205_v6 = vld [vmem:[#allocation281_spill] sm:$0xff]  ;;  %v9208_v12 = vld [vmem:[#allocation310_spill] sm:$0xff]  ;;  %v2005_v14 = vadd.f32 %v2004_v20, %v1942_v58 }
 0x269   :  { %v1692_v1 = vsel %vm9198_vm12, %v6968_v39, %v1370_v21  ;;  %v1693_v57 = vsel %vm9201_vm0, %v6968_v39, %v1371_v28  ;;  %vm9204_vm1 = vcmp.lt.f32.partialorder %v9202_v5, %v9203_v27  ;;  %v9206_v19 = vld [vmem:[#allocation277_spill] sm:$0xff]  ;;  %v9209_v52 = vld [vmem:[#allocation306_spill] sm:$0xff]  ;;  %v9211_v61 = vld [vmem:[#allocation311_spill] sm:$0xff] }
 0x26a   :  { %1756 = vst [vmem:[#allocation7 + $0x120] sm:$0xff] %v1692_v1  ;;  %v1694_v62 = vsel %vm9204_vm1, %v6968_v39, %v1372_v45  ;;  %vm9207_vm2 = vcmp.lt.f32.partialorder %v9205_v6, %v9206_v19  ;;  %vm9210_vm3 = vcmp.lt.f32.partialorder %v9208_v12, %v9209_v52  ;;  %v9212_v9 = vld [vmem:[#allocation307_spill] sm:$0xff]  ;;  %v9214_v50 = vld [vmem:[#allocation312_spill] sm:$0xff]  ;;  %v2157_v44 = vld [vmem:[#allocation2 + $0x120] sm:$0xff]  ;;  %v2006_v20 = vadd.f32 %v2005_v14, %v1943_v17 }
 0x26b   :  { %1757 = vst [vmem:[#allocation7 + $0x128] sm:$0xff] %v1693_v57  ;;  %v601_v13 = vsel %vm9207_vm2, %v6863_v11, %v6798_v24  ;;  %v602_v31 = vsel %vm9210_vm3, %v6863_v11, %v6798_v24  ;;  %vm9213_vm4 = vcmp.lt.f32.partialorder %v9211_v61, %v9212_v9  ;;  %v9215_v46 = vld [vmem:[#allocation308_spill] sm:$0xff]  ;;  %v1884_v28 = vsub.f32 %v1692_v1, %v2157_v44  ;;  %v9217_v26 = vld [vmem:[#allocation289_spill] sm:$0xff]  ;;  %v9218_v0 = vld [vmem:[#allocation287_spill] sm:$0xff] }
 0x26c   :  { %v603_v37 = vsel %vm9213_vm4, %v6863_v11, %v6798_v24  ;;  %vm9216_vm5 = vcmp.lt.f32.partialorder %v9214_v50, %v9215_v46  ;;  %v2156_v21 = vld [vmem:[#allocation2 + $0x118] sm:$0xff]  ;;  %1758 = vst [vmem:[#allocation7 + $0x130] sm:$0xff] %v1694_v62  ;;  %vm9219_vm6 = vcmp.lt.f32.partialorder %v9217_v26, %v9218_v0  ;;  %v9220_v55 = vld [vmem:[#allocation314_spill] sm:$0xff]  ;;  %v9221_v63 = vld [vmem:[#allocation315_spill] sm:$0xff]  ;;  %v1946_v9 = vmul.f32 %v1882_v30, %v1882_v30 }
 0x26d   :  { %v604_v47 = vsel %vm9216_vm5, %v6863_v11, %v6798_v24  ;;  %v1883_v23 = vsub.f32 %v1691_v8, %v2156_v21  ;;  %v987_v45 = vsel %vm9219_vm6, %v6880_v32, %v601_v13  ;;  %vm9222_vm8 = vcmp.lt.f32.partialorder %v9220_v55, %v9221_v63  ;;  %v9223_v34 = vld [vmem:[#allocation319_spill] sm:$0xff]  ;;  %v9224_v33 = vld [vmem:[#allocation316_spill] sm:$0xff]  ;;  %v9227_v40 = vld [vmem:[#allocation317_spill] sm:$0xff] }
 0x26e   :  { %v988_v41 = vsel %vm9222_vm8, %v6880_v32, %v602_v31  ;;  %vm9225_vm9 = vcmp.lt.f32.partialorder %v9223_v34, %v9224_v33  ;;  %v9226_v8 = vld [vmem:[#allocation320_spill] sm:$0xff]  ;;  %v9229_v5 = vld [vmem:[#allocation297_spill] sm:$0xff]  ;;  %v9232_v19 = vld [vmem:[#allocation326_spill] sm:$0xff]  ;;  %v2007_v21 = vadd.f32 %v2006_v20, %v1944_v54 }
 0x26f   :  { %v989_v58 = vsel %vm9225_vm9, %v6880_v32, %v603_v37  ;;  %vm9228_vm10 = vcmp.lt.f32.partialorder %v9226_v8, %v9227_v40  ;;  %v9230_v27 = vld [vmem:[#allocation293_spill] sm:$0xff]  ;;  %v9233_v13 = vld [vmem:[#allocation322_spill] sm:$0xff]  ;;  %v9235_v52 = vld [vmem:[#allocation327_spill] sm:$0xff] }
 0x270   :  { %v990_v1 = vsel %vm9228_vm10, %v6880_v32, %v604_v47  ;;  %vm9231_vm12 = vcmp.lt.f32.partialorder %v9229_v5, %v9230_v27  ;;  %vm9234_vm0 = vcmp.lt.f32.partialorder %v9232_v19, %v9233_v13  ;;  %v9236_v31 = vld [vmem:[#allocation323_spill] sm:$0xff]  ;;  %v9238_v37 = vld [vmem:[#allocation305_spill] sm:$0xff]  ;;  %v9239_v50 = vld [vmem:[#allocation304_spill] sm:$0xff]  ;;  %v2008_v27 = vadd.f32 %v2007_v21, %v1945_v16 }
 0x271   :  { %v1373_v6 = vsel %vm9231_vm12, %v6954_v15, %v987_v45  ;;  %v1374_v12 = vsel %vm9234_vm0, %v6954_v15, %v988_v41  ;;  %vm9237_vm1 = vcmp.lt.f32.partialorder %v9235_v52, %v9236_v31  ;;  %vm9240_vm2 = vcmp.lt.f32.partialorder %v9238_v37, %v9239_v50  ;;  %v9241_v46 = vld [vmem:[#allocation328_spill] sm:$0xff]  ;;  %v2158_v44 = vld [vmem:[#allocation2 + $0x128] sm:$0xff]  ;;  %v2159_v0 = vld [vmem:[#allocation2 + $0x130] sm:$0xff] }
 0x272   :  { %v1375_v61 = vsel %vm9237_vm1, %v6954_v15, %v989_v58  ;;  %v1695_v17 = vsel %vm9240_vm2, %v6968_v39, %v1373_v6  ;;  %v9242_v47 = vld [vmem:[#allocation324_spill] sm:$0xff]  ;;  %v1885_v26 = vsub.f32 %v1693_v57, %v2158_v44  ;;  %v1886_v45 = vsub.f32 %v1694_v62, %v2159_v0  ;;  %v9245_v63 = vld [vmem:[#allocation330_spill] sm:$0xff]  ;;  %v9247_v41 = vld [vmem:[#allocation333_spill] sm:$0xff] }
 0x273   :  { %vm9243_vm3 = vcmp.lt.f32.partialorder %v9241_v46, %v9242_v47  ;;  %1759 = vst [vmem:[#allocation7 + $0x138] sm:$0xff] %v1695_v17  ;;  %v9244_v55 = vld [vmem:[#allocation332_spill] sm:$0xff]  ;;  %v9248_v34 = vld [vmem:[#allocation331_spill] sm:$0xff]  ;;  %v9250_v58 = vld [vmem:[#allocation313_spill] sm:$0xff]  ;;  %v1947_v6 = vmul.f32 %v1883_v23, %v1883_v23  ;;  %v1948_v19 = vmul.f32 %v1884_v28, %v1884_v28  ;;  %v2009_v0 = vadd.f32 %v2008_v27, %v1946_v9 }
 0x274   :  { %v1376_v14 = vsel %vm9243_vm3, %v6954_v15, %v990_v1  ;;  %vm9246_vm4 = vcmp.lt.f32.partialorder %v9244_v55, %v9245_v63  ;;  %vm9249_vm5 = vcmp.lt.f32.partialorder %v9247_v41, %v9248_v34  ;;  %v9251_v54 = vld [vmem:[#allocation309_spill] sm:$0xff]  ;;  %v9253_v62 = vld [vmem:[#allocation342_spill] sm:$0xff]  ;;  %v9256_v1 = vld [vmem:[#allocation343_spill] sm:$0xff] }
 0x275   :  { %v1696_v30 = vsel %vm9246_vm4, %v6968_v39, %v1374_v12  ;;  %v1697_v33 = vsel %vm9249_vm5, %v6968_v39, %v1375_v61  ;;  %vm9252_vm6 = vcmp.lt.f32.partialorder %v9250_v58, %v9251_v54  ;;  %v9254_v8 = vld [vmem:[#allocation338_spill] sm:$0xff]  ;;  %v9257_v20 = vld [vmem:[#allocation339_spill] sm:$0xff]  ;;  %v9259_v13 = vld [vmem:[#allocation336_spill] sm:$0xff] }
 0x276   :  { %1760 = vst [vmem:[#allocation7 + $0x140] sm:$0xff] %v1696_v30  ;;  %v605_v57 = vsel %vm9252_vm6, %v6863_v11, %v6798_v24  ;;  %vm9255_vm8 = vcmp.lt.f32.partialorder %v9253_v62, %v9254_v8  ;;  %vm9258_vm9 = vcmp.lt.f32.partialorder %v9256_v1, %v9257_v20  ;;  %v9260_v12 = vld [vmem:[#allocation334_spill] sm:$0xff]  ;;  %v2160_v31 = vld [vmem:[#allocation2 + $0x138] sm:$0xff]  ;;  %v9262_v37 = vld [vmem:[#allocation321_spill] sm:$0xff]  ;;  %v1949_v62 = vmul.f32 %v1885_v26, %v1885_v26 }
 0x277   :  { %v606_v40 = vsel %vm9255_vm8, %v6863_v11, %v6798_v24  ;;  %v607_v5 = vsel %vm9258_vm9, %v6863_v11, %v6798_v24  ;;  %1761 = vst [vmem:[#allocation7 + $0x148] sm:$0xff] %v1697_v33  ;;  %vm9261_vm10 = vcmp.lt.f32.partialorder %v9259_v13, %v9260_v12  ;;  %v1887_v61 = vsub.f32 %v1695_v17, %v2160_v31  ;;  %v9263_v50 = vld [vmem:[#allocation318_spill] sm:$0xff]  ;;  %v9266_v44 = vld [vmem:[#allocation348_spill] sm:$0xff]  ;;  %v9268_v23 = vld [vmem:[#allocation347_spill] sm:$0xff] }
 0x278   :  { %v1698_v52 = vsel %vm9261_vm10, %v6968_v39, %v1376_v14  ;;  %vm9264_vm12 = vcmp.lt.f32.partialorder %v9262_v37, %v9263_v50  ;;  %v9265_v47 = vld [vmem:[#allocation346_spill] sm:$0xff]  ;;  %v9269_v28 = vld [vmem:[#allocation349_spill] sm:$0xff]  ;;  %v9277_v58 = vld [vmem:[#allocation359_spill] sm:$0xff]  ;;  %v1950_v8 = vmul.f32 %v1886_v45, %v1886_v45  ;;  %v2010_v20 = vadd.f32 %v2009_v0, %v1947_v6 }
 0x279   :  { %1762 = vst [vmem:[#allocation7 + $0x150] sm:$0xff] %v1698_v52  ;;  %v991_v46 = vsel %vm9264_vm12, %v6880_v32, %v605_v57  ;;  %vm9267_vm0 = vcmp.lt.f32.partialorder %v9265_v47, %v9266_v44  ;;  %vm9270_vm1 = vcmp.lt.f32.partialorder %v9268_v23, %v9269_v28  ;;  %v9271_v14 = vld [vmem:[#allocation329_spill] sm:$0xff]  ;;  %v9274_v63 = vld [vmem:[#allocation358_spill] sm:$0xff]  ;;  %v9278_v54 = vld [vmem:[#allocation355_spill] sm:$0xff] }
 0x27a   :  { %v992_v16 = vsel %vm9267_vm0, %v6880_v32, %v606_v40  ;;  %v993_v21 = vsel %vm9270_vm1, %v6880_v32, %v607_v5  ;;  %v9272_v17 = vld [vmem:[#allocation325_spill] sm:$0xff]  ;;  %v9275_v41 = vld [vmem:[#allocation354_spill] sm:$0xff]  ;;  %vm9279_vm4 = vcmp.lt.f32.partialorder %v9277_v58, %v9278_v54  ;;  %v9281_v9 = vld [vmem:[#allocation335_spill] sm:$0xff] }
 0x27b   :  { %vm9273_vm2 = vcmp.lt.f32.partialorder %v9271_v14, %v9272_v17  ;;  %vm9276_vm3 = vcmp.lt.f32.partialorder %v9274_v63, %v9275_v41  ;;  %v1379_v57 = vsel %vm9279_vm4, %v6954_v15, %v993_v21  ;;  %v9280_v40 = vld [vmem:[#allocation337_spill] sm:$0xff]  ;;  %v9283_v13 = vld [vmem:[#allocation362_spill] sm:$0xff]  ;;  %v9284_v12 = vld [vmem:[#allocation364_spill] sm:$0xff]  ;;  %v2011_v17 = vadd.f32 %v2010_v20, %v1948_v19 }
 0x27c   :  { %v1377_v55 = vsel %vm9273_vm2, %v6954_v15, %v991_v46  ;;  %v1378_v34 = vsel %vm9276_vm3, %v6954_v15, %v992_v16  ;;  %vm9282_vm5 = vcmp.lt.f32.partialorder %v9280_v40, %v9281_v9  ;;  %v2161_v5 = vld [vmem:[#allocation2 + $0x140] sm:$0xff]  ;;  %vm9285_vm6 = vcmp.lt.f32.partialorder %v9283_v13, %v9284_v12  ;;  %v9286_v37 = vld [vmem:[#allocation363_spill] sm:$0xff]  ;;  %v9289_v45 = vld [vmem:[#allocation344_spill] sm:$0xff] }
 0x27d   :  { %v1699_v1 = vsel %vm9282_vm5, %v6968_v39, %v1377_v55  ;;  %v1888_v27 = vsub.f32 %v1696_v30, %v2161_v5  ;;  %v1700_v31 = vsel %vm9285_vm6, %v6968_v39, %v1378_v34  ;;  %v9287_v50 = vld [vmem:[#allocation365_spill] sm:$0xff]  ;;  %v9290_v46 = vld [vmem:[#allocation340_spill] sm:$0xff]  ;;  %v9295_v16 = vld [vmem:[#allocation374_spill] sm:$0xff]  ;;  %v1951_v55 = vmul.f32 %v1887_v61, %v1887_v61 }
 0x27e   :  { %1763 = vst [vmem:[#allocation7 + $0x158] sm:$0xff] %v1699_v1  ;;  %vm9288_vm8 = vcmp.lt.f32.partialorder %v9286_v37, %v9287_v50  ;;  %vm9291_vm9 = vcmp.lt.f32.partialorder %v9289_v45, %v9290_v46  ;;  %v9292_v30 = vld [vmem:[#allocation345_spill] sm:$0xff]  ;;  %v9296_v23 = vld [vmem:[#allocation370_spill] sm:$0xff]  ;;  %v9298_v21 = vld [vmem:[#allocation375_spill] sm:$0xff]  ;;  %v2012_v20 = vadd.f32 %v2011_v17, %v1949_v62 }
 0x27f   :  { %v1701_v26 = vsel %vm9288_vm8, %v6968_v39, %v1379_v57  ;;  %1764 = vst [vmem:[#allocation7 + $0x160] sm:$0xff] %v1700_v31  ;;  %v608_v6 = vsel %vm9291_vm9, %v6863_v11, %v6798_v24  ;;  %v9293_v47 = vld [vmem:[#allocation341_spill] sm:$0xff]  ;;  %vm9297_vm12 = vcmp.lt.f32.partialorder %v9295_v16, %v9296_v23  ;;  %v9299_v0 = vld [vmem:[#allocation371_spill] sm:$0xff]  ;;  %v2162_v63 = vld [vmem:[#allocation2 + $0x148] sm:$0xff]  ;;  %vm9319_vm8 = vcmp.lt.f32.partialorder %v5619_v43, %v5580_v25 }
 0x280   :  { %vm9294_vm10 = vcmp.lt.f32.partialorder %v9292_v30, %v9293_v47  ;;  %v610_v28 = vsel %vm9297_vm12, %v6863_v11, %v6798_v24  ;;  %vm9300_vm0 = vcmp.lt.f32.partialorder %v9298_v21, %v9299_v0  ;;  %v1889_v41 = vsub.f32 %v1697_v33, %v2162_v63  ;;  %v2163_v34 = vld [vmem:[#allocation2 + $0x150] sm:$0xff]  ;;  %1765 = vst [vmem:[#allocation7 + $0x168] sm:$0xff] %v1701_v26  ;;  %v9301_v54 = vld [vmem:[#allocation352_spill] sm:$0xff]  ;;  %v9302_v57 = vld [vmem:[#allocation350_spill] sm:$0xff] }
 0x281   :  { %v609_v44 = vsel %vm9294_vm10, %v6863_v11, %v6798_v24  ;;  %v611_v14 = vsel %vm9300_vm0, %v6863_v11, %v6798_v24  ;;  %v1890_v58 = vsub.f32 %v1698_v52, %v2163_v34  ;;  %vm9303_vm1 = vcmp.lt.f32.partialorder %v9301_v54, %v9302_v57  ;;  %v9304_v9 = vld [vmem:[#allocation353_spill] sm:$0xff]  ;;  %v9305_v5 = vld [vmem:[#allocation351_spill] sm:$0xff]  ;;  %v9307_v12 = vld [vmem:[#allocation378_spill] sm:$0xff] }
 0x282   :  { %v994_v40 = vsel %vm9303_vm1, %v6880_v32, %v608_v6  ;;  %vm9306_vm2 = vcmp.lt.f32.partialorder %v9304_v9, %v9305_v5  ;;  %v9308_v37 = vld [vmem:[#allocation380_spill] sm:$0xff]  ;;  %v9310_v33 = vld [vmem:[#allocation379_spill] sm:$0xff]  ;;  %v9311_v61 = vld [vmem:[#allocation381_spill] sm:$0xff]  ;;  %v1952_v16 = vmul.f32 %v1888_v27, %v1888_v27 }
 0x283   :  { %v995_v13 = vsel %vm9306_vm2, %v6880_v32, %v609_v44  ;;  %vm9309_vm3 = vcmp.lt.f32.partialorder %v9307_v12, %v9308_v37  ;;  %vm9312_vm4 = vcmp.lt.f32.partialorder %v9310_v33, %v9311_v61  ;;  %v9313_v50 = vld [vmem:[#allocation360_spill] sm:$0xff]  ;;  %v9316_v6 = vld [vmem:[#allocation361_spill] sm:$0xff]  ;;  %v9323_v21 = vld [vmem:[#allocation386_spill] sm:$0xff]  ;;  %v1953_v61 = vmul.f32 %v1889_v41, %v1889_v41 }
 0x284   :  { %v996_v19 = vsel %vm9309_vm3, %v6880_v32, %v610_v28  ;;  %v997_v52 = vsel %vm9312_vm4, %v6880_v32, %v611_v14  ;;  %v9314_v45 = vld [vmem:[#allocation356_spill] sm:$0xff]  ;;  %v9317_v30 = vld [vmem:[#allocation357_spill] sm:$0xff]  ;;  %v9321_v28 = vld [vmem:[#allocation366_spill] sm:$0xff]  ;;  %vm9324_vm10 = vcmp.lt.f32.partialorder %v5621_v35, %v9323_v21  ;;  %v2013_v14 = vadd.f32 %v2012_v20, %v1950_v8 }
 0x285   :  { %vm9315_vm5 = vcmp.lt.f32.partialorder %v9313_v50, %v9314_v45  ;;  %vm9318_vm6 = vcmp.lt.f32.partialorder %v9316_v6, %v9317_v30  ;;  %v1382_v44 = vsel %vm9319_vm8, %v6954_v15, %v996_v19  ;;  %v9320_v23 = vld [vmem:[#allocation368_spill] sm:$0xff]  ;;  %v1383_v0 = vsel %vm9324_vm10, %v6954_v15, %v997_v52  ;;  %v2165_v34 = vld [vmem:[#allocation2 + $0x160] sm:$0xff]  ;;  %v9326_v25 = vld [vmem:[#allocation367_spill] sm:$0xff] }
 0x286   :  { %v1380_v46 = vsel %vm9315_vm5, %v6954_v15, %v994_v40  ;;  %v1381_v47 = vsel %vm9318_vm6, %v6954_v15, %v995_v13  ;;  %vm9322_vm9 = vcmp.lt.f32.partialorder %v9320_v23, %v9321_v28  ;;  %v2164_v17 = vld [vmem:[#allocation2 + $0x158] sm:$0xff]  ;;  %v1892_v54 = vsub.f32 %v1700_v31, %v2165_v34  ;;  %v9325_v43 = vld [vmem:[#allocation369_spill] sm:$0xff]  ;;  %v9328_v57 = vld [vmem:[#allocation391_spill] sm:$0xff] }
 0x287   :  { %v1702_v62 = vsel %vm9322_vm9, %v6968_v39, %v1380_v46  ;;  %v1891_v63 = vsub.f32 %v1699_v1, %v2164_v17  ;;  %vm9327_vm12 = vcmp.lt.f32.partialorder %v9325_v43, %v9326_v25  ;;  %v9329_v40 = vld [vmem:[#allocation393_spill] sm:$0xff]  ;;  %v9331_v35 = vld [vmem:[#allocation376_spill] sm:$0xff]  ;;  %v9337_v12 = vld [vmem:[#allocation403_spill] sm:$0xff]  ;;  %v2014_v33 = vadd.f32 %v2013_v14, %v1951_v55 }
 0x288   :  { %1766 = vst [vmem:[#allocation7 + $0x170] sm:$0xff] %v1702_v62  ;;  %v1703_v27 = vsel %vm9327_vm12, %v6968_v39, %v1381_v47  ;;  %vm9330_vm0 = vcmp.lt.f32.partialorder %v9328_v57, %v9329_v40  ;;  %v9332_v8 = vld [vmem:[#allocation372_spill] sm:$0xff]  ;;  %v9334_v31 = vld [vmem:[#allocation377_spill] sm:$0xff]  ;;  %v9338_v37 = vld [vmem:[#allocation399_spill] sm:$0xff]  ;;  %v1954_v52 = vmul.f32 %v1890_v58, %v1890_v58 }
 0x289   :  { %1767 = vst [vmem:[#allocation7 + $0x178] sm:$0xff] %v1703_v27  ;;  %v1704_v9 = vsel %vm9330_vm0, %v6968_v39, %v1382_v44  ;;  %vm9333_vm1 = vcmp.lt.f32.partialorder %v9331_v35, %v9332_v8  ;;  %v9335_v5 = vld [vmem:[#allocation373_spill] sm:$0xff]  ;;  %vm9339_vm3 = vcmp.lt.f32.partialorder %v9337_v12, %v9338_v37  ;;  %v9340_v20 = vld [vmem:[#allocation392_spill] sm:$0xff]  ;;  %v9341_v50 = vld [vmem:[#allocation394_spill] sm:$0xff]  ;;  %v2015_v14 = vadd.f32 %v2014_v33, %v1952_v16 }
 0x28a   :  { %v612_v1 = vsel %vm9333_vm1, %v6863_v11, %v6798_v24  ;;  %vm9336_vm2 = vcmp.lt.f32.partialorder %v9334_v31, %v9335_v5  ;;  %v614_v19 = vsel %vm9339_vm3, %v6863_v11, %v6798_v24  ;;  %1768 = vst [vmem:[#allocation7 + $0x180] sm:$0xff] %v1704_v9  ;;  %vm9342_vm4 = vcmp.lt.f32.partialorder %v9340_v20, %v9341_v50  ;;  %v2166_v46 = vld [vmem:[#allocation2 + $0x168] sm:$0xff]  ;;  %v9343_v30 = vld [vmem:[#allocation384_spill] sm:$0xff]  ;;  %v9346_v23 = vld [vmem:[#allocation385_spill] sm:$0xff] }
 0x28b   :  { %v613_v13 = vsel %vm9336_vm2, %v6863_v11, %v6798_v24  ;;  %v1705_v45 = vsel %vm9342_vm4, %v6968_v39, %v1383_v0  ;;  %v1893_v6 = vsub.f32 %v1701_v26, %v2166_v46  ;;  %v9344_v47 = vld [vmem:[#allocation382_spill] sm:$0xff]  ;;  %v9347_v28 = vld [vmem:[#allocation383_spill] sm:$0xff]  ;;  %v9350_v58 = vld [vmem:[#allocation409_spill] sm:$0xff]  ;;  %v1955_v8 = vmul.f32 %v1891_v63, %v1891_v63 }
 0x28c   :  { %1769 = vst [vmem:[#allocation7 + $0x188] sm:$0xff] %v1705_v45  ;;  %vm9345_vm5 = vcmp.lt.f32.partialorder %v9343_v30, %v9344_v47  ;;  %vm9348_vm6 = vcmp.lt.f32.partialorder %v9346_v23, %v9347_v28  ;;  %v9349_v41 = vld [vmem:[#allocation407_spill] sm:$0xff]  ;;  %v9352_v0 = vld [vmem:[#allocation389_spill] sm:$0xff]  ;;  %v9355_v34 = vld [vmem:[#allocation390_spill] sm:$0xff] }
 0x28d   :  { %v998_v44 = vsel %vm9345_vm5, %v6880_v32, %v612_v1  ;;  %v999_v55 = vsel %vm9348_vm6, %v6880_v32, %v613_v13  ;;  %vm9351_vm8 = vcmp.lt.f32.partialorder %v9349_v41, %v9350_v58  ;;  %v9353_v26 = vld [vmem:[#allocation387_spill] sm:$0xff]  ;;  %v9356_v43 = vld [vmem:[#allocation388_spill] sm:$0xff]  ;;  %v1956_v1 = vmul.f32 %v1892_v54, %v1892_v54  ;;  %v9361_v31 = vld [vmem:[#allocation397_spill] sm:$0xff] }
 0x28e   :  { %v1000_v21 = vsel %vm9351_vm8, %v6880_v32, %v614_v19  ;;  %vm9354_vm9 = vcmp.lt.f32.partialorder %v9352_v0, %v9353_v26  ;;  %vm9357_vm10 = vcmp.lt.f32.partialorder %v9355_v34, %v9356_v43  ;;  %v9358_v57 = vld [vmem:[#allocation419_spill] sm:$0xff]  ;;  %v2016_v13 = vadd.f32 %v2015_v14, %v1953_v61  ;;  %v9364_v19 = vld [vmem:[#allocation398_spill] sm:$0xff]  ;;  %v9365_v33 = vld [vmem:[#allocation396_spill] sm:$0xff] }
 0x28f   :  { %v1384_v17 = vsel %vm9354_vm9, %v6954_v15, %v998_v44  ;;  %v1385_v25 = vsel %vm9357_vm10, %v6954_v15, %v999_v55  ;;  %v9359_v40 = vld [vmem:[#allocation415_spill] sm:$0xff]  ;;  %vm9366_vm1 = vcmp.lt.f32.partialorder %v9364_v19, %v9365_v33  ;;  %v9369_v54 = vld [vmem:[#allocation404_spill] sm:$0xff]  ;;  %v9373_v47 = vld [vmem:[#allocation401_spill] sm:$0xff]  ;;  %v1957_v0 = vmul.f32 %v1893_v6, %v1893_v6 }
 0x290   :  { %vm9360_vm12 = vcmp.lt.f32.partialorder %v9358_v57, %v9359_v40  ;;  %v9362_v16 = vld [vmem:[#allocation395_spill] sm:$0xff]  ;;  %v1707_v20 = vsel %vm9366_vm1, %v6968_v39, %v1385_v25  ;;  %v9370_v30 = vld [vmem:[#allocation400_spill] sm:$0xff]  ;;  %v9375_v23 = vld [vmem:[#allocation406_spill] sm:$0xff]  ;;  %v2017_v14 = vadd.f32 %v2016_v13, %v1954_v52 }
 0x291   :  { %v1386_v35 = vsel %vm9360_vm12, %v6954_v15, %v1000_v21  ;;  %vm9363_vm0 = vcmp.lt.f32.partialorder %v9361_v31, %v9362_v16  ;;  %v2167_v12 = vld [vmem:[#allocation2 + $0x170] sm:$0xff]  ;;  %1771 = vst [vmem:[#allocation7 + $0x198] sm:$0xff] %v1707_v20  ;;  %vm9371_vm2 = vcmp.lt.f32.partialorder %v9369_v54, %v9370_v30  ;;  %v9376_v28 = vld [vmem:[#allocation402_spill] sm:$0xff]  ;;  %v2168_v26 = vld [vmem:[#allocation2 + $0x178] sm:$0xff] }
 0x292   :  { %v1706_v5 = vsel %vm9363_vm0, %v6968_v39, %v1384_v17  ;;  %v1894_v37 = vsub.f32 %v1702_v62, %v2167_v12  ;;  %v1708_v63 = vsel %vm1580_vm15, %v6968_v39, %v1386_v35  ;;  %v615_v61 = vsel %vm9371_vm2, %v6863_v11, %v6798_v24  ;;  %v9372_v62 = vld [vmem:[#allocation405_spill] sm:$0xff]  ;;  %v9378_v41 = vld [vmem:[#allocation435_spill] sm:$0xff]  ;;  %v9381_v25 = vld [vmem:[#allocation408_spill] sm:$0xff] }
 0x293   :  { %1770 = vst [vmem:[#allocation7 + $0x190] sm:$0xff] %v1706_v5  ;;  %vm9374_vm3 = vcmp.lt.f32.partialorder %v9372_v62, %v9373_v47  ;;  %vm9377_vm4 = vcmp.lt.f32.partialorder %v9375_v23, %v9376_v28  ;;  %v9379_v58 = vld [vmem:[#allocation431_spill] sm:$0xff]  ;;  %v1895_v17 = vsub.f32 %v1703_v27, %v2168_v26  ;;  %v2169_v34 = vld [vmem:[#allocation2 + $0x180] sm:$0xff]  ;;  %v9382_v57 = vld [vmem:[#allocation410_spill] sm:$0xff]  ;;  %v2018_v13 = vadd.f32 %v2017_v14, %v1955_v8 }
 0x294   :  { %v616_v44 = vsel %vm9374_vm3, %v6863_v11, %v6798_v24  ;;  %v617_v55 = vsel %vm9377_vm4, %v6863_v11, %v6798_v24  ;;  %vm9380_vm15 = vcmp.lt.f32.partialorder %v9378_v41, %v9379_v58  ;;  %v1896_v43 = vsub.f32 %v1704_v9, %v2169_v34  ;;  %1772 = vst [vmem:[#allocation7 + $0x1a0] sm:$0xff] %v1708_v63  ;;  %v9384_v35 = vld [vmem:[#allocation413_spill] sm:$0xff]  ;;  %v9385_v31 = vld [vmem:[#allocation411_spill] sm:$0xff]  ;;  %v9387_v12 = vld [vmem:[#allocation414_spill] sm:$0xff] }
 0x295   :  { %v618_v21 = vsel %vm9380_vm15, %v6863_v11, %v6798_v24  ;;  %vm9383_vm5 = vcmp.lt.f32.partialorder %v9381_v25, %v9382_v57  ;;  %vm9386_vm6 = vcmp.lt.f32.partialorder %v9384_v35, %v9385_v31  ;;  %v9388_v19 = vld [vmem:[#allocation412_spill] sm:$0xff]  ;;  %v9390_v27 = vld [vmem:[#allocation439_spill] sm:$0xff]  ;;  %v9396_v54 = vld [vmem:[#allocation421_spill] sm:$0xff]  ;;  %v1958_v23 = vmul.f32 %v1894_v37, %v1894_v37 }
 0x296   :  { %v1001_v40 = vsel %vm9383_vm5, %v6880_v32, %v615_v61  ;;  %v1002_v16 = vsel %vm9386_vm6, %v6880_v32, %v616_v44  ;;  %vm9389_vm8 = vcmp.lt.f32.partialorder %v9387_v12, %v9388_v19  ;;  %v9391_v6 = vld [vmem:[#allocation440_spill] sm:$0xff]  ;;  %v9397_v30 = vld [vmem:[#allocation417_spill] sm:$0xff]  ;;  %v9399_v62 = vld [vmem:[#allocation422_spill] sm:$0xff]  ;;  %v2019_v14 = vadd.f32 %v2018_v13, %v1956_v1 }
 0x297   :  { %v1003_v52 = vsel %vm9389_vm8, %v6880_v32, %v617_v55  ;;  %vm9392_vm9 = vcmp.lt.f32.partialorder %v9390_v27, %v9391_v6  ;;  %v9393_v33 = vld [vmem:[#allocation420_spill] sm:$0xff]  ;;  %vm9398_vm12 = vcmp.lt.f32.partialorder %v9396_v54, %v9397_v30  ;;  %v9400_v47 = vld [vmem:[#allocation418_spill] sm:$0xff]  ;;  %v9402_v28 = vld [vmem:[#allocation425_spill] sm:$0xff]  ;;  %v1959_v26 = vmul.f32 %v1895_v17, %v1895_v17 }
 0x298   :  { %v1004_v9 = vsel %vm9392_vm9, %v6880_v32, %v618_v21  ;;  %v9394_v50 = vld [vmem:[#allocation416_spill] sm:$0xff]  ;;  %v1388_v61 = vsel %vm9398_vm12, %v6954_v15, %v1002_v16  ;;  %vm9401_vm0 = vcmp.lt.f32.partialorder %v9399_v62, %v9400_v47  ;;  %v9403_v55 = vld [vmem:[#allocation427_spill] sm:$0xff]  ;;  %v2170_v34 = vld [vmem:[#allocation2 + $0x188] sm:$0xff]  ;;  %v2020_v13 = vadd.f32 %v2019_v14, %v1957_v0 }
 0x299   :  { %vm9395_vm10 = vcmp.lt.f32.partialorder %v9393_v33, %v9394_v50  ;;  %v1389_v44 = vsel %vm9401_vm0, %v6954_v15, %v1003_v52  ;;  %vm9404_vm1 = vcmp.lt.f32.partialorder %v9402_v28, %v9403_v55  ;;  %v9405_v41 = vld [vmem:[#allocation451_spill] sm:$0xff]  ;;  %v1897_v25 = vsub.f32 %v1705_v45, %v2170_v34  ;;  %v9408_v57 = vld [vmem:[#allocation426_spill] sm:$0xff]  ;;  %v9412_v31 = vld [vmem:[#allocation429_spill] sm:$0xff] }
 0x29a   :  { %v1387_v46 = vsel %vm9395_vm10, %v6954_v15, %v1001_v40  ;;  %v9406_v58 = vld [vmem:[#allocation447_spill] sm:$0xff]  ;;  %v9409_v40 = vld [vmem:[#allocation428_spill] sm:$0xff]  ;;  %v9411_v35 = vld [vmem:[#allocation430_spill] sm:$0xff]  ;;  %v1960_v33 = vmul.f32 %v1896_v43, %v1896_v43  ;;  %v2021_v14 = vadd.f32 %v2020_v13, %v1958_v23 }
 0x29b   :  { %v1709_v8 = vsel %vm9404_vm1, %v6968_v39, %v1387_v46  ;;  %vm9407_vm2 = vcmp.lt.f32.partialorder %v9405_v41, %v9406_v58  ;;  %vm9410_vm3 = vcmp.lt.f32.partialorder %v9408_v57, %v9409_v40  ;;  %vm9413_vm4 = vcmp.lt.f32.partialorder %v9411_v35, %v9412_v31  ;;  %v9414_v12 = vld [vmem:[#allocation436_spill] sm:$0xff]  ;;  %v9417_v45 = vld [vmem:[#allocation437_spill] sm:$0xff]  ;;  %v9420_v27 = vld [vmem:[#allocation438_spill] sm:$0xff] }
 0x29c   :  { %v1390_v21 = vsel %vm9407_vm2, %v6954_v15, %v1004_v9  ;;  %1773 = vst [vmem:[#allocation7 + $0x1a8] sm:$0xff] %v1709_v8  ;;  %v1710_v37 = vsel %vm9410_vm3, %v6968_v39, %v1388_v61  ;;  %v7462_v16 = vsel %vm9413_vm4, %v6968_v39, %v1389_v44  ;;  %v9415_v1 = vld [vmem:[#allocation432_spill] sm:$0xff]  ;;  %v9418_v19 = vld [vmem:[#allocation433_spill] sm:$0xff]  ;;  %v9421_v6 = vld [vmem:[#allocation434_spill] sm:$0xff] }
 0x29d   :  { %1774 = vst [vmem:[#allocation7 + $0x1b0] sm:$0xff] %v1710_v37  ;;  %vm9416_vm15 = vcmp.lt.f32.partialorder %v9414_v12, %v9415_v1  ;;  %vm9419_vm5 = vcmp.lt.f32.partialorder %v9417_v45, %v9418_v19  ;;  %vm9422_vm6 = vcmp.lt.f32.partialorder %v9420_v27, %v9421_v6  ;;  %v2171_v50 = vld [vmem:[#allocation2 + $0x190] sm:$0xff]  ;;  %v9423_v54 = vld [vmem:[#allocation457_spill] sm:$0xff]  ;;  %v2172_v62 = vld [vmem:[#allocation2 + $0x198] sm:$0xff]  ;;  %v1961_v45 = vmul.f32 %v1897_v25, %v1897_v25 }
 0x29e   :  { %v619_v17 = vsel %vm9416_vm15, %v6863_v11, %v6798_v24  ;;  %v620_v52 = vsel %vm9419_vm5, %v6863_v11, %v6798_v24  ;;  %v621_v9 = vsel %vm9422_vm6, %v6863_v11, %v6798_v24  ;;  %v1898_v46 = vsub.f32 %v1706_v5, %v2171_v50  ;;  %1775 = vst [vmem:[#allocation7 + $0x1b8] sm:$0xff] %v7462_v16  ;;  %v9424_v30 = vld [vmem:[#allocation455_spill] sm:$0xff]  ;;  %v9426_v44 = vld [vmem:[#allocation444_spill] sm:$0xff]  ;;  %v9427_v28 = vld [vmem:[#allocation441_spill] sm:$0xff] }
 0x29f   :  { %vm9425_vm8 = vcmp.lt.f32.partialorder %v9423_v54, %v9424_v30  ;;  %v1899_v47 = vsub.f32 %v1707_v20, %v2172_v62  ;;  %vm9428_vm9 = vcmp.lt.f32.partialorder %v9426_v44, %v9427_v28  ;;  %v9429_v43 = vld [vmem:[#allocation445_spill] sm:$0xff]  ;;  %v9430_v5 = vld [vmem:[#allocation442_spill] sm:$0xff]  ;;  %v9433_v58 = vld [vmem:[#allocation443_spill] sm:$0xff]  ;;  %v2022_v27 = vadd.f32 %v2021_v14, %v1959_v26 }
 0x2a0   :  { %v7484_v61 = vsel %vm9425_vm8, %v6968_v39, %v1390_v21  ;;  %v1005_v0 = vsel %vm9428_vm9, %v6880_v32, %v619_v17  ;;  %vm9431_vm10 = vcmp.lt.f32.partialorder %v9429_v43, %v9430_v5  ;;  %v9432_v41 = vld [vmem:[#allocation446_spill] sm:$0xff]  ;;  %v9435_v20 = vld [vmem:[#allocation452_spill] sm:$0xff]  ;;  %v9438_v40 = vld [vmem:[#allocation453_spill] sm:$0xff]  ;;  %vm9453_vm5 = vcmp.lt.f32.partialorder %v6257_v56, %v6241_v51 }
 0x2a1   :  { %1776 = vst [vmem:[#allocation7 + $0x1c0] sm:$0xff] %v7484_v61  ;;  %v1006_v55 = vsel %vm9431_vm10, %v6880_v32, %v620_v52  ;;  %vm9434_vm12 = vcmp.lt.f32.partialorder %v9432_v41, %v9433_v58  ;;  %v9436_v34 = vld [vmem:[#allocation448_spill] sm:$0xff]  ;;  %v9439_v35 = vld [vmem:[#allocation449_spill] sm:$0xff]  ;;  %v9441_v12 = vld [vmem:[#allocation454_spill] sm:$0xff]  ;;  %v622_v26 = vsel %vm9453_vm5, %v6863_v11, %v6798_v24  ;;  %v2023_v51 = vadd.f32 %v2022_v27, %v1960_v33 }
 0x2a2   :  { %v1007_v21 = vsel %vm9434_vm12, %v6880_v32, %v621_v9  ;;  %vm9437_vm0 = vcmp.lt.f32.partialorder %v9435_v20, %v9436_v34  ;;  %vm9440_vm1 = vcmp.lt.f32.partialorder %v9438_v40, %v9439_v35  ;;  %v9442_v1 = vld [vmem:[#allocation450_spill] sm:$0xff]  ;;  %v9445_v52 = vld [vmem:[#allocation456_spill] sm:$0xff]  ;;  %v2173_v6 = vld [vmem:[#allocation2 + $0x1a0] sm:$0xff]  ;;  %v1962_v56 = vmul.f32 %v1898_v46, %v1898_v46 }
 0x2a3   :  { %v1391_v57 = vsel %vm9437_vm0, %v6954_v15, %v1005_v0  ;;  %v1392_v31 = vsel %vm9440_vm1, %v6954_v15, %v1006_v55  ;;  %vm9443_vm2 = vcmp.lt.f32.partialorder %v9441_v12, %v9442_v1  ;;  %v9444_v19 = vld [vmem:[#allocation458_spill] sm:$0xff]  ;;  %v1900_v9 = vsub.f32 %v1708_v63, %v2173_v6  ;;  %v9447_v13 = vld [vmem:[#allocation461_spill] sm:$0xff]  ;;  %v9448_v50 = vld [vmem:[#allocation459_spill] sm:$0xff] }
 0x2a4   :  { %v1393_v17 = vsel %vm9443_vm2, %v6954_v15, %v1007_v21  ;;  %vm9446_vm3 = vcmp.lt.f32.partialorder %v9444_v19, %v9445_v52  ;;  %vm9449_vm4 = vcmp.lt.f32.partialorder %v9447_v13, %v9448_v50  ;;  %v9450_v30 = vld [vmem:[#allocation462_spill] sm:$0xff]  ;;  %v9451_v62 = vld [vmem:[#allocation460_spill] sm:$0xff]  ;;  %v9454_v63 = vld [vmem:[#allocation463_spill] sm:$0xff]  ;;  %v1963_v58 = vmul.f32 %v1899_v47, %v1899_v47 }
 0x2a5   :  { %v1713_v23 = vsel %vm9446_vm3, %v6968_v39, %v1391_v57  ;;  %v1714_v54 = vsel %vm9449_vm4, %v6968_v39, %v1392_v31  ;;  %vm9452_vm15 = vcmp.lt.f32.partialorder %v9450_v30, %v9451_v62  ;;  %vm9455_vm6 = vcmp.lt.f32.partialorder %v6263_v10, %v9454_v63  ;;  %v9456_v28 = vld [vmem:[#allocation466_spill] sm:$0xff]  ;;  %v9457_v0 = vld [vmem:[#allocation464_spill] sm:$0xff]  ;;  %v9459_v5 = vld [vmem:[#allocation467_spill] sm:$0xff] }
 0x2a6   :  { %1777 = vst [vmem:[#allocation7 + $0x1c8] sm:$0xff] %v1713_v23  ;;  %v1715_v44 = vsel %vm9452_vm15, %v6968_v39, %v1393_v17  ;;  %v623_v25 = vsel %vm9455_vm6, %v6863_v11, %v6798_v24  ;;  %vm9458_vm8 = vcmp.lt.f32.partialorder %v9456_v28, %v9457_v0  ;;  %v9460_v55 = vld [vmem:[#allocation465_spill] sm:$0xff]  ;;  %v2174_v21 = vld [vmem:[#allocation2 + $0x1a8] sm:$0xff]  ;;  %v9462_v10 = vld [vmem:[#allocation468_spill] sm:$0xff]  ;;  %v2024_v46 = vadd.f32 %v2023_v51, %v1961_v45 }
 0x2a7   :  { %1778 = vst [vmem:[#allocation7 + $0x1d0] sm:$0xff] %v1714_v54  ;;  %v624_v43 = vsel %vm9458_vm8, %v6863_v11, %v6798_v24  ;;  %vm9461_vm9 = vcmp.lt.f32.partialorder %v9459_v5, %v9460_v55  ;;  %v1901_v14 = vsub.f32 %v1709_v8, %v2174_v21  ;;  %v9463_v20 = vld [vmem:[#allocation470_spill] sm:$0xff]  ;;  %v9465_v57 = vld [vmem:[#allocation469_spill] sm:$0xff]  ;;  %v9466_v40 = vld [vmem:[#allocation471_spill] sm:$0xff]  ;;  %vm9476_vm3 = vcmp.lt.f32.partialorder %v6395_v49, %v6353_v2 }
 0x2a8   :  { %v625_v41 = vsel %vm9461_vm9, %v6863_v11, %v6798_v24  ;;  %1779 = vst [vmem:[#allocation7 + $0x1d8] sm:$0xff] %v1715_v44  ;;  %vm9464_vm10 = vcmp.lt.f32.partialorder %v9462_v10, %v9463_v20  ;;  %vm9467_vm12 = vcmp.lt.f32.partialorder %v9465_v57, %v9466_v40  ;;  %v9468_v31 = vld [vmem:[#allocation474_spill] sm:$0xff]  ;;  %v9469_v12 = vld [vmem:[#allocation472_spill] sm:$0xff]  ;;  %v9471_v11 = vld [vmem:[#allocation475_spill] sm:$0xff]  ;;  %vm9477_vm4 = vcmp.lt.f32.partialorder %v6397_v3, %v6365_v48 }
 0x2a9   :  { %v1008_v34 = vsel %vm9464_vm10, %v6880_v32, %v622_v26  ;;  %v1009_v35 = vsel %vm9467_vm12, %v6880_v32, %v623_v25  ;;  %vm9470_vm0 = vcmp.lt.f32.partialorder %v9468_v31, %v9469_v12  ;;  %v9472_v33 = vld [vmem:[#allocation473_spill] sm:$0xff]  ;;  %v9474_v47 = vld [vmem:[#allocation476_spill] sm:$0xff]  ;;  %vm9478_vm15 = vcmp.lt.f32.partialorder %v6403_v53, %v6378_v7  ;;  %v2175_v3 = vld [vmem:[#allocation2 + $0x1b0] sm:$0xff] }
 0x2aa   :  { %v1010_v24 = vsel %vm9470_vm0, %v6880_v32, %v624_v43  ;;  %vm9473_vm1 = vcmp.lt.f32.partialorder %v9471_v11, %v9472_v33  ;;  %vm9475_vm2 = vcmp.lt.f32.partialorder %v6389_v4, %v9474_v47  ;;  %v1395_v17 = vsel %vm9476_vm3, %v6954_v15, %v1009_v35  ;;  %v2177_v52 = vld [vmem:[#allocation2 + $0x1c0] sm:$0xff]  ;;  %v2178_v6 = vld [vmem:[#allocation2 + $0x1c8] sm:$0xff]  ;;  %v2179_v50 = vld [vmem:[#allocation2 + $0x1d0] sm:$0xff] }
 0x2ab   :  { %v1011_v8 = vsel %vm9473_vm1, %v6880_v32, %v625_v41  ;;  %v1394_v1 = vsel %vm9475_vm2, %v6954_v15, %v1008_v34  ;;  %v1396_v19 = vsel %vm9477_vm4, %v6954_v15, %v1010_v24  ;;  %v2025_v48 = vadd.f32 %v2024_v46, %v1962_v56  ;;  %v2181_v25 = vld [vmem:[#allocation2 + $0x1e0] sm:$0xff]  ;;  %v2182_v43 = vld [vmem:[#allocation2 + $0x1e8] sm:$0xff]  ;;  %v2183_v51 = vld [vmem:[#allocation2 + $0x1f0] sm:$0xff] }
 0x2ac   :  { %v1716_v4 = vsel %vm1588_vm14, %v6968_v39, %v1394_v1  ;;  %v1397_v49 = vsel %vm9478_vm15, %v6954_v15, %v1011_v8  ;;  %v1964_v2 = vmul.f32 %v1900_v9, %v1900_v9  ;;  %v1902_v32 = vsub.f32 %v1710_v37, %v2175_v3  ;;  %v2184_v21 = vld [vmem:[#allocation2 + $0x1f8] sm:$0xff] }
 0x2ad   :  { %1780 = vst [vmem:[#allocation7 + $0x1e0] sm:$0xff] %v1716_v4  ;;  %v1717_v45 = vsel %vm1589_vm11, %v6968_v39, %v1395_v17  ;;  %v1718_v22 = vsel %vm1590_vm7, %v6968_v39, %v1396_v19  ;;  %v2026_v53 = vadd.f32 %v2025_v48, %v1963_v58  ;;  %v1965_v7 = vmul.f32 %v1901_v14, %v1901_v14 }
 0x2ae   :  { %1781 = vst [vmem:[#allocation7 + $0x1e8] sm:$0xff] %v1717_v45  ;;  %v1903_v15 = vsub.f32 %v7462_v16, %v2176_v38  ;;  %v1719_v29 = vsel %vm1591_vm13, %v6968_v39, %v1397_v49  ;;  %v1966_v37 = vmul.f32 %v1902_v32, %v1902_v32  ;;  %v1904_v36 = vsub.f32 %v7484_v61, %v2177_v52  ;;  %v2180_v39 = vld [vmem:[#allocation2 + $0x1d8] sm:$0xff] }
 0x2af   :  { %1782 = vst [vmem:[#allocation7 + $0x1f0] sm:$0xff] %v1718_v22  ;;  %v2027_v59 = vadd.f32 %v2026_v53, %v1964_v2  ;;  %v1905_v16 = vsub.f32 %v1713_v23, %v2178_v6  ;;  %v1906_v30 = vsub.f32 %v1714_v54, %v2179_v50  ;;  %v1907_v62 = vsub.f32 %v1715_v44, %v2180_v39 }
 0x2b0   :  { %1783 = vst [vmem:[#allocation7 + $0x1f8] sm:$0xff] %v1719_v29  ;;  %v1967_v27 = vmul.f32 %v1903_v15, %v1903_v15  ;;  %v1968_v13 = vmul.f32 %v1904_v36, %v1904_v36  ;;  %v1908_v61 = vsub.f32 %v1716_v4, %v2181_v25  ;;  %v1909_v5 = vsub.f32 %v1717_v45, %v2182_v43 }
 0x2b1   :  { %2052 = dma.vmem_to_hbm [thread:$0]  %s2045_s30, 8192, %s2047_s7, [#allocation4], %s2314_s23, %s2314_s23, %s2315_s24   ;;  %v2028_v42 = vadd.f32 %v2027_v59, %v1965_v7  ;;  %v1969_v60 = vmul.f32 %v1905_v16, %v1905_v16  ;;  %v1970_v63 = vmul.f32 %v1906_v30, %v1906_v30  ;;  %v1971_v0 = vmul.f32 %v1907_v62, %v1907_v62 }
 0x2b2   :  { %v1972_v41 = vmul.f32 %v1908_v61, %v1908_v61  ;;  %v1910_v23 = vsub.f32 %v1718_v22, %v2183_v51  ;;  %v1973_v58 = vmul.f32 %v1909_v5, %v1909_v5  ;;  %v1911_v54 = vsub.f32 %v1719_v29, %v2184_v21 }
 0x2b3   :  { %v2029_v9 = vadd.f32 %v2028_v42, %v1966_v37 }
 0x2b4   :  { %v1974_v10 = vmul.f32 %v1910_v23, %v1910_v23  ;;  %v1975_v44 = vmul.f32 %v1911_v54, %v1911_v54 }
 0x2b5   :  { %v2030_v18 = vadd.f32 %v2029_v9, %v1967_v27 }
 0x2b7   :  { %v2031_v26 = vadd.f32 %v2030_v18, %v1968_v13 }
 0x2b9   :  { %v2032_v28 = vadd.f32 %v2031_v26, %v1969_v60 }
 0x2bb   :  { %v2033_v55 = vadd.f32 %v2032_v28, %v1970_v63 }
 0x2bd   :  { %v2034_v56 = vadd.f32 %v2033_v55, %v1971_v0 }
 0x2bf   :  { %v2035_v14 = vadd.f32 %v2034_v56, %v1972_v41 }
 0x2c1   :  { %v2036_v20 = vadd.f32 %v2035_v14, %v1973_v58 }
 0x2c3   :  { %v2037_v34 = vadd.f32 %v2036_v20, %v1974_v10 }
 0x2c5   :  { %v2038_v57 = vadd.f32 %v2037_v34, %v1975_v44 }
 0x2c7   :  { %2039 = vst [vmem:[#allocation10] sm:$0xff] %v2038_v57 }
 0x2c8   :  { %2076 = dma.vmem_to_hbm [thread:$0]  %s2072_s8, 128, %s2074_s11, [#allocation9]  }
 0x2c9   :  { %2309 = dma.done.wait [#allocation4], 8192  }
 0x2ca   :  { %2310 = vsyncadd [#allocation4], 4294959104 }
 0x2cb   :  { %2311 = dma.done.wait [#allocation9], 2176  }
 0x2cc   :  { %2312 = vsyncadd [#allocation9], 4294965120 }
 0x2cd   :  { %2089 = vsyncpa [#allocation3], 1 }
 0x2ce   :  { %2090 = vsyncpa [#allocation6], 1 }
 0x2cf   :  { %2091 = vsyncpa [#allocation4], 1 }
 0x2d0   :  { %2092 = vsyncpa [#allocation9], 1 }

</bundles_post_ra>
